<compile_context>
chip_gen: v6e
topology: v6e:2x2x1
jax: 0.10.0
libtpu: 0.0.40
codegen_flags: <defaults>
</compile_context>

<pallas_src>
import functools
import math

import jax
import jax.numpy as jnp
from jax import lax
from jax.experimental import pallas as pl
from jax.experimental.pallas import tpu as pltpu


def _wide_basic_kernel(stride, cin_tap, cout_tap, identity_shortcut, *refs):
    """Per-sample fused WideBasic forward.

    x_ref     : (Ho, s, Wo, s*Cin)   phase-split input block (bf16)
    w1_ref    : (9*cin_tap,  Cout)   im2col weights of the strided 3x3 conv (bf16)
    w2_ref    : (9*cout_tap, Cout)   im2col weights of the stride-1 3x3 conv (bf16)
    wsc_ref   : (Cin, Cout)          1x1 shortcut conv weights (bf16; absent if identity)
    out_ref   : (1, Ho*Wo, Cout)     output block
    pad*_ref  : zero-padded activation planes (VMEM scratch, bf16)
    patch*_ref: im2col patch slabs (VMEM scratch, bf16)
    """
    if identity_shortcut:
        (x_ref, s1_ref, t1_ref, w1_ref, b1_ref, s2_ref, t2_ref, w2_ref, b2_ref,
         out_ref, pad1_ref, patch1_ref, pad2_ref, patch2_ref) = refs
        wsc_ref = bsc_ref = None
    else:
        (x_ref, s1_ref, t1_ref, w1_ref, b1_ref, s2_ref, t2_ref, w2_ref, b2_ref,
         wsc_ref, bsc_ref,
         out_ref, pad1_ref, patch1_ref, pad2_ref, patch2_ref) = refs

    s = stride
    f32 = jnp.float32
    bf16 = jnp.bfloat16
    Ho, _, Wo, sCin = x_ref.shape
    Cin = sCin // s
    Cout = w1_ref.shape[1]

    # ---- zero only the 1-pixel halo of the padded scratches; interiors are fully
    #      rewritten every grid step (safe under "parallel" batch sharding).
    pad1_ref[0] = jnp.zeros((s, Wo + 2, sCin), bf16)
    pad1_ref[Ho + 1] = jnp.zeros((s, Wo + 2, sCin), bf16)
    pad1_ref[:, :, 0, :] = jnp.zeros((Ho + 2, s, sCin), bf16)
    pad1_ref[:, :, Wo + 1, :] = jnp.zeros((Ho + 2, s, sCin), bf16)
    pad2_ref[0] = jnp.zeros((Wo + 2, Cout), bf16)
    pad2_ref[Ho + 1] = jnp.zeros((Wo + 2, Cout), bf16)
    pad2_ref[:, 0, :] = jnp.zeros((Ho + 2, Cout), bf16)
    pad2_ref[:, Wo + 1, :] = jnp.zeros((Ho + 2, Cout), bf16)

    # ---- zero the lane-padding columns of the patch slabs (only when tap slots are
    #      padded to a multiple of 128; no-op at compact widths).
    if cin_tap > Cin:
        for t in range(9):
            patch1_ref[:, :, pl.ds(t * cin_tap + Cin, cin_tap - Cin)] = (
                jnp.zeros((Ho, Wo, cin_tap - Cin), bf16))
    if cout_tap > Cout:
        for t in range(9):
            patch2_ref[:, :, pl.ds(t * cout_tap + Cout, cout_tap - Cout)] = (
                jnp.zeros((Ho, Wo, cout_tap - Cout), bf16))

    # ---- BN1 (folded) + ReLU: f32 math, bf16 store into the padded phase-split plane.
    x32 = x_ref[...].astype(f32)                                  # (Ho, s, Wo, s*Cin)
    h1 = jnp.maximum(x32 * s1_ref[...] + t1_ref[...], 0.0)
    pad1_ref[pl.ds(1, Ho), :, pl.ds(1, Wo), :] = h1.astype(bf16)

    # ---- strided 3x3 conv #1 as ONE im2col matmul over exactly Ho*Wo outputs.
    #      tap (di, dj) needs input pixel (s*oi + di - 1, s*oj + dj - 1); in the padded
    #      phase-split scratch that is block (oi + (di-1)//s, oj + (dj-1)//s) at
    #      phase ((di-1) % s, (dj-1) % s) -> plain static slices, no strided loads.
    for di in range(3):
        for dj in range(3):
            qi, pi = (di - 1) // s + 1, (di - 1) % s
            qj, pj = (dj - 1) // s + 1, (dj - 1) % s
            t = 3 * di + dj
            patch1_ref[:, :, pl.ds(t * cin_tap, Cin)] = pad1_ref[
                pl.ds(qi, Ho), pi, pl.ds(qj, Wo), pl.ds(pj * Cin, Cin)]

    p1 = patch1_ref[...].reshape(Ho * Wo, 9 * cin_tap)
    acc1 = jnp.dot(p1, w1_ref[...], preferred_element_type=f32) + b1_ref[...]

    # ---- BN2 (folded) + ReLU in f32, bf16 store.
    # TODO(synk): nn.Dropout() sits here in the module; identity in eval mode.
    h2 = jnp.maximum(acc1 * s2_ref[...] + t2_ref[...], 0.0)
    pad2_ref[pl.ds(1, Ho), pl.ds(1, Wo), :] = h2.reshape(Ho, Wo, Cout).astype(bf16)

    # ---- 3x3 conv #2 (stride 1) as ONE im2col matmul.
    for di in range(3):
        for dj in range(3):
            t = 3 * di + dj
            patch2_ref[:, :, pl.ds(t * cout_tap, Cout)] = pad2_ref[
                pl.ds(di, Ho), pl.ds(dj, Wo), :]
    p2 = patch2_ref[...].reshape(Ho * Wo, 9 * cout_tap)
    res = jnp.dot(p2, w2_ref[...], preferred_element_type=f32) + b2_ref[...]

    # ---- shortcut: phase (0, 0) of the phase-split layout == x[::s, ::s, :].
    xs = x_ref[:, 0, :, pl.ds(0, Cin)].reshape(Ho * Wo, Cin)       # bf16, no f32 round trip
    if identity_shortcut:
        sc = xs.astype(f32)
    else:
        sc = jnp.dot(xs, wsc_ref[...], preferred_element_type=f32) + bsc_ref[...]

    out_ref[0] = (res + sc).astype(out_ref.dtype)


def _tap_stride(c):
    # Lane-align each tap's channel slot for real WRN widths (160/320/640 -> 256/384/640);
    # keep the compact layout for tiny widths where padding to 128 would dominate.
    return ((c + 127) // 128) * 128 if c >= 128 else c


def _im2col_weights(w_hwio, tap):
    kh, kw, cin, cout = w_hwio.shape
    if tap > cin:
        w_hwio = jnp.pad(w_hwio, ((0, 0), (0, 0), (0, tap - cin), (0, 0)))
    return w_hwio.astype(jnp.bfloat16).reshape(kh * kw * tap, cout)


def _nbytes(shape, dtype):
    return math.prod(shape) * jnp.dtype(dtype).itemsize


def wide_basic_forward(x_in, params, stride, *, x_layout="NCHW",
                       out_layout="NCHW", out_dtype=jnp.float32):
    """params = (s1, t1, w1, b1, s2, t2, w2, b2[, wsc, bsc]); the 8-tuple form is the
    identity-shortcut configuration (requires Cin == Cout and stride == 1)."""
    if len(params) == 10:
        (s1, t1, w1, b1, s2, t2, w2, b2, wsc, bsc) = params
    else:
        (s1, t1, w1, b1, s2, t2, w2, b2) = params
        wsc = bsc = None

    s = int(stride)
    f32, bf16 = jnp.float32, jnp.bfloat16

    x_nhwc = jnp.transpose(x_in, (0, 2, 3, 1)) if x_layout == "NCHW" else x_in
    N, H, W, Cin = x_nhwc.shape
    Cout = w1.shape[3]
    assert H % s == 0 and W % s == 0, "spatial dims must be divisible by stride"
    Ho, Wo = H // s, W // s

    identity = wsc is None
    if identity:
        assert Cin == Cout and s == 1, "identity shortcut requires Cin==Cout and stride==1"

    # NHWC bf16 -> phase-split (N*Ho, s, Wo, s*Cin): pure layout plumbing, no gather.
    x = x_nhwc.astype(bf16).reshape(N * Ho, s, Wo, s * Cin)

    cin_tap, cout_tap = _tap_stride(Cin), _tap_stride(Cout)
    w1c = _im2col_weights(w1, cin_tap)                      # (9*cin_tap,  Cout) bf16
    w2c = _im2col_weights(w2, cout_tap)                     # (9*cout_tap, Cout) bf16

    # Folded-BN scale/shift; BN1 params tiled over the column phases of the split layout.
    s1p = jnp.tile(s1.astype(f32), (1, s))
    t1p = jnp.tile(t1.astype(f32), (1, s))
    const_args = [s1p, t1p, w1c, b1.astype(f32), s2.astype(f32), t2.astype(f32),
                  w2c, b2.astype(f32)]
    if not identity:
        const_args += [wsc.astype(bf16), bsc.astype(f32)]

    def full(a):
        nd = a.ndim
        return pl.BlockSpec(a.shape, lambda n, _nd=nd: (0,) * _nd)

    scratch_shapes = [pltpu.VMEM((Ho + 2, s, Wo + 2, s * Cin), bf16),  # padded BN1 plane
                      pltpu.VMEM((Ho, Wo, 9 * cin_tap), bf16),         # im2col for conv1
                      pltpu.VMEM((Ho + 2, Wo + 2, Cout), bf16),        # padded BN2 plane
                      pltpu.VMEM((Ho, Wo, 9 * cout_tap), bf16)]        # im2col for conv2

    # Per-step VMEM bound (portable to v7x 64 MiB / v5e 16 MiB scoped default).
    scratch_bytes = (_nbytes((Ho + 2, s, Wo + 2, s * Cin), bf16)
                     + _nbytes((Ho, Wo, 9 * cin_tap), bf16)
                     + _nbytes((Ho + 2, Wo + 2, Cout), bf16)
                     + _nbytes((Ho, Wo, 9 * cout_tap), bf16))
    stream_bytes = 2 * (_nbytes((Ho, s, Wo, s * Cin), bf16)
                        + _nbytes((1, Ho * Wo, Cout), out_dtype))
    param_bytes = 2 * sum(_nbytes(a.shape, a.dtype) for a in const_args)
    vmem_limit = int(min(64 << 20,
                         max(8 << 20, 2 * (scratch_bytes + stream_bytes + param_bytes))))

    flops = 2 * N * Ho * Wo * Cout * (9 * cin_tap + 9 * cout_tap
                                      + (0 if identity else Cin))
    bytes_accessed = (_nbytes(x.shape, bf16)
                      + sum(_nbytes(a.shape, a.dtype) for a in const_args)
                      + _nbytes((N, Ho * Wo, Cout), out_dtype))

    out = pl.pallas_call(
        functools.partial(_wide_basic_kernel, s, cin_tap, cout_tap, identity),
        out_shape=jax.ShapeDtypeStruct((N, Ho * Wo, Cout), out_dtype),
        grid=(N,),
        in_specs=[pl.BlockSpec((Ho, s, Wo, s * Cin), lambda n: (n, 0, 0, 0))]
                 + [full(a) for a in const_args],
        out_specs=pl.BlockSpec((1, Ho * Wo, Cout), lambda n: (n, 0, 0)),
        scratch_shapes=scratch_shapes,
        compiler_params=pltpu.CompilerParams(dimension_semantics=("parallel",),
                                             vmem_limit_bytes=vmem_limit),
        cost_estimate=pl.CostEstimate(flops=flops, transcendentals=0,
                                      bytes_accessed=bytes_accessed),
    )(x, *const_args)

    y = out.reshape(N, Ho, Wo, Cout)
    return y if out_layout == "NHWC" else jnp.transpose(y, (0, 3, 1, 2))


def ref_forward(x_nchw, params, stride, bf16_operands=True):
    """Pure-JAX reference.  With bf16_operands=True it rounds exactly the tensors the
    kernel feeds to the MXU to bf16 (accumulation stays f32) -> tight check; with
    False it is the exact f32 semantics of the PyTorch module -> loose check."""
    if len(params) == 10:
        (s1, t1, w1, b1, s2, t2, w2, b2, wsc, bsc) = params
    else:
        (s1, t1, w1, b1, s2, t2, w2, b2) = params
        wsc = bsc = None
    f32 = jnp.float32

    def rnd(a):
        return a.astype(jnp.bfloat16).astype(f32) if bf16_operands else a.astype(f32)

    x = rnd(jnp.transpose(x_nchw, (0, 2, 3, 1)).astype(f32))
    dn = ("NHWC", "HWIO", "NHWC")
    hp = lax.Precision.HIGHEST
    h = rnd(jax.nn.relu(x * s1[0] + t1[0]))
    h = lax.conv_general_dilated(h, rnd(w1), (stride, stride), ((1, 1), (1, 1)),
                                 dimension_numbers=dn, precision=hp) + b1[0]
    h = rnd(jax.nn.relu(h * s2[0] + t2[0]))
    h = lax.conv_general_dilated(h, rnd(w2), (1, 1), ((1, 1), (1, 1)),
                                 dimension_numbers=dn, precision=hp) + b2[0]
    if wsc is None:
        sc = x                                       # identity shortcut
    else:
        sc = lax.conv_general_dilated(x, rnd(wsc).reshape(1, 1, *wsc.shape),
                                      (stride, stride), ((0, 0), (0, 0)),
                                      dimension_numbers=dn, precision=hp) + bsc[0]
    return jnp.transpose(h + sc, (0, 3, 1, 2))


if __name__ == "__main__":
    eps = 1e-5
    key = jax.random.PRNGKey(0)

    def bn_params(k, C):
        k1, k2, k3, k4 = jax.random.split(k, 4)
        gamma = 1.0 + 0.1 * jax.random.normal(k1, (C,), jnp.float32)
        beta = 0.1 * jax.random.normal(k2, (C,), jnp.float32)
        mean = 0.1 * jax.random.normal(k3, (C,), jnp.float32)
        var = 1.0 + 0.1 * jnp.abs(jax.random.normal(k4, (C,), jnp.float32))
        scale = gamma / jnp.sqrt(var + eps)
        shift = beta - mean * scale
        return scale.reshape(1, C), shift.reshape(1, C)

    # ---------------- Test 1: projection shortcut (Cin != Cout, stride 2) ------------
    N, Cin, Cout, H, W, stride = 2, 4, 8, 16, 16, 2
    ks = jax.random.split(key, 9)
    s1, t1 = bn_params(ks[0], Cin)
    s2, t2 = bn_params(ks[1], Cout)
    w1 = 0.1 * jax.random.normal(ks[2], (3, 3, Cin, Cout), jnp.float32)   # HWIO
    b1 = 0.1 * jax.random.normal(ks[3], (1, Cout), jnp.float32)
    w2 = 0.1 * jax.random.normal(ks[4], (3, 3, Cout, Cout), jnp.float32)
    b2 = 0.1 * jax.random.normal(ks[5], (1, Cout), jnp.float32)
    wsc = 0.1 * jax.random.normal(ks[6], (Cin, Cout), jnp.float32)
    bsc = 0.1 * jax.random.normal(ks[7], (1, Cout), jnp.float32)
    params = (s1, t1, w1, b1, s2, t2, w2, b2, wsc, bsc)
    x = jax.random.normal(ks[8], (N, Cin, H, W), jnp.float32)             # NCHW

    out = jax.block_until_ready(wide_basic_forward(x, params, stride))
    ref_bf16 = jax.block_until_ready(ref_forward(x, params, stride, bf16_operands=True))
    ref_f32 = jax.block_until_ready(ref_forward(x, params, stride, bf16_operands=False))

    assert out.shape == (N, Cout, H // stride, W // stride), out.shape
    assert jnp.allclose(out, ref_bf16, atol=5e-3, rtol=5e-3), \
        float(jnp.max(jnp.abs(out - ref_bf16)))
    assert jnp.allclose(out, ref_f32, atol=5e-2, rtol=5e-2), \
        float(jnp.max(jnp.abs(out - ref_f32)))

    # bf16 / NHWC output path (for chaining blocks without transposes / f32 writeback).
    out_nhwc = jax.block_until_ready(
        wide_basic_forward(x, params, stride, out_dtype=jnp.bfloat16, out_layout="NHWC"))
    assert out_nhwc.shape == (N, H // stride, W // stride, Cout)
    assert jnp.allclose(out_nhwc.astype(jnp.float32),
                        jnp.transpose(out, (0, 2, 3, 1)), atol=3e-2, rtol=2e-2)

    # ---------------- Test 2: identity shortcut (Cin == Cout, stride 1) --------------
    C2 = 8
    ks2 = jax.random.split(jax.random.PRNGKey(1), 7)
    s1b, t1b = bn_params(ks2[0], C2)
    s2b, t2b = bn_params(ks2[1], C2)
    w1b = 0.1 * jax.random.normal(ks2[2], (3, 3, C2, C2), jnp.float32)
    b1b = 0.1 * jax.random.normal(ks2[3], (1, C2), jnp.float32)
    w2b = 0.1 * jax.random.normal(ks2[4], (3, 3, C2, C2), jnp.float32)
    b2b = 0.1 * jax.random.normal(ks2[5], (1, C2), jnp.float32)
    params2 = (s1b, t1b, w1b, b1b, s2b, t2b, w2b, b2b)                    # no wsc/bsc
    x2 = jax.random.normal(ks2[6], (N, C2, H, W), jnp.float32)

    out2 = jax.block_until_ready(wide_basic_forward(x2, params2, 1))
    ref2_bf16 = jax.block_until_ready(ref_forward(x2, params2, 1, bf16_operands=True))
    ref2_f32 = jax.block_until_ready(ref_forward(x2, params2, 1, bf16_operands=False))
    assert out2.shape == (N, C2, H, W), out2.shape
    assert jnp.allclose(out2, ref2_bf16, atol=5e-3, rtol=5e-3), \
        float(jnp.max(jnp.abs(out2 - ref2_bf16)))
    assert jnp.allclose(out2, ref2_f32, atol=5e-2, rtol=5e-2), \
        float(jnp.max(jnp.abs(out2 - ref2_f32)))

    print("KERNEL_OK")
</pallas_src>

<mosaic_0001>
module attributes {stable_mosaic.version = 11 : i64} {
  func.func @_wide_basic_kernel(%arg0: i32, %arg1: memref<8x2x8x8xbf16, #tpu.memory_space<vmem>>, %arg2: memref<1x8xf32, #tpu.memory_space<vmem>>, %arg3: memref<1x8xf32, #tpu.memory_space<vmem>>, %arg4: memref<36x8xbf16, #tpu.memory_space<vmem>>, %arg5: memref<1x8xf32, #tpu.memory_space<vmem>>, %arg6: memref<1x8xf32, #tpu.memory_space<vmem>>, %arg7: memref<1x8xf32, #tpu.memory_space<vmem>>, %arg8: memref<72x8xbf16, #tpu.memory_space<vmem>>, %arg9: memref<1x8xf32, #tpu.memory_space<vmem>>, %arg10: memref<4x8xbf16, #tpu.memory_space<vmem>>, %arg11: memref<1x8xf32, #tpu.memory_space<vmem>>, %arg12: memref<1x64x8xf32, #tpu.memory_space<vmem>>, %arg13: memref<10x2x10x8xbf16, #tpu.memory_space<vmem>>, %arg14: memref<8x8x36xbf16, #tpu.memory_space<vmem>>, %arg15: memref<10x10x8xbf16, #tpu.memory_space<vmem>>, %arg16: memref<8x8x72xbf16, #tpu.memory_space<vmem>>) attributes {dimension_semantics = [#tpu.dimension_semantics<parallel>], iteration_bounds = array<i64: 2>, scalar_prefetch = 0 : i64, scratch_operands = 4 : i64, tpu.core_type = #tpu.core_type<tc>, window_params = [{transform_indices = @transform_0, window_bounds = array<i64: 8, 2, 8, 8>}, {pipeline_mode = #tpu.pipeline_mode<synchronous>, transform_indices = @transform_1, window_bounds = array<i64: 1, 8>}, {pipeline_mode = #tpu.pipeline_mode<synchronous>, transform_indices = @transform_2, window_bounds = array<i64: 1, 8>}, {pipeline_mode = #tpu.pipeline_mode<synchronous>, transform_indices = @transform_3, window_bounds = array<i64: 36, 8>}, {pipeline_mode = #tpu.pipeline_mode<synchronous>, transform_indices = @transform_4, window_bounds = array<i64: 1, 8>}, {pipeline_mode = #tpu.pipeline_mode<synchronous>, transform_indices = @transform_5, window_bounds = array<i64: 1, 8>}, {pipeline_mode = #tpu.pipeline_mode<synchronous>, transform_indices = @transform_6, window_bounds = array<i64: 1, 8>}, {pipeline_mode = #tpu.pipeline_mode<synchronous>, transform_indices = @transform_7, window_bounds = array<i64: 72, 8>}, {pipeline_mode = #tpu.pipeline_mode<synchronous>, transform_indices = @transform_8, window_bounds = array<i64: 1, 8>}, {pipeline_mode = #tpu.pipeline_mode<synchronous>, transform_indices = @transform_9, window_bounds = array<i64: 4, 8>}, {pipeline_mode = #tpu.pipeline_mode<synchronous>, transform_indices = @transform_10, window_bounds = array<i64: 1, 8>}, {transform_indices = @transform_11, window_bounds = array<i64: 1, 64, 8>}]} {
    %cst = arith.constant 0.000000e+00 : bf16
    %0 = vector.broadcast %cst : bf16 to vector<2x10x8xbf16>
    %c0 = arith.constant 0 : index
    %c0_0 = arith.constant 0 : index
    %c0_1 = arith.constant 0 : index
    %c0_2 = arith.constant 0 : index
    %1 = vector.load %arg13[%c0, %c0_0, %c0_1, %c0_2] : memref<10x2x10x8xbf16, #tpu.memory_space<vmem>>, vector<1x2x10x8xbf16>
    %2 = vector.shape_cast %1 : vector<1x2x10x8xbf16> to vector<2x10x8xbf16>
    %3 = vector.shape_cast %0 : vector<2x10x8xbf16> to vector<1x2x10x8xbf16>
    tpu.vector_store %arg13[%c0, %c0_0, %c0_1, %c0_2], %3 {strides = array<i32>} : memref<10x2x10x8xbf16, #tpu.memory_space<vmem>>, vector<1x2x10x8xbf16>,
    %cst_3 = arith.constant 0.000000e+00 : bf16
    %4 = vector.broadcast %cst_3 : bf16 to vector<2x10x8xbf16>
    %c9 = arith.constant 9 : index
    %c0_4 = arith.constant 0 : index
    %c0_5 = arith.constant 0 : index
    %c0_6 = arith.constant 0 : index
    %5 = vector.load %arg13[%c9, %c0_4, %c0_5, %c0_6] : memref<10x2x10x8xbf16, #tpu.memory_space<vmem>>, vector<1x2x10x8xbf16>
    %6 = vector.shape_cast %5 : vector<1x2x10x8xbf16> to vector<2x10x8xbf16>
    %7 = vector.shape_cast %4 : vector<2x10x8xbf16> to vector<1x2x10x8xbf16>
    tpu.vector_store %arg13[%c9, %c0_4, %c0_5, %c0_6], %7 {strides = array<i32>} : memref<10x2x10x8xbf16, #tpu.memory_space<vmem>>, vector<1x2x10x8xbf16>,
    %cst_7 = arith.constant 0.000000e+00 : bf16
    %8 = vector.broadcast %cst_7 : bf16 to vector<10x2x8xbf16>
    %c0_8 = arith.constant 0 : index
    %c0_9 = arith.constant 0 : index
    %c0_10 = arith.constant 0 : index
    %c0_11 = arith.constant 0 : index
    %9 = vector.load %arg13[%c0_8, %c0_9, %c0_10, %c0_11] : memref<10x2x10x8xbf16, #tpu.memory_space<vmem>>, vector<10x2x1x8xbf16>
    %10 = vector.shape_cast %9 : vector<10x2x1x8xbf16> to vector<10x2x8xbf16>
    %11 = vector.shape_cast %8 : vector<10x2x8xbf16> to vector<10x2x1x8xbf16>
    tpu.vector_store %arg13[%c0_8, %c0_9, %c0_10, %c0_11], %11 {strides = array<i32>} : memref<10x2x10x8xbf16, #tpu.memory_space<vmem>>, vector<10x2x1x8xbf16>,
    %cst_12 = arith.constant 0.000000e+00 : bf16
    %12 = vector.broadcast %cst_12 : bf16 to vector<10x2x8xbf16>
    %c0_13 = arith.constant 0 : index
    %c0_14 = arith.constant 0 : index
    %c9_15 = arith.constant 9 : index
    %c0_16 = arith.constant 0 : index
    %13 = vector.load %arg13[%c0_13, %c0_14, %c9_15, %c0_16] : memref<10x2x10x8xbf16, #tpu.memory_space<vmem>>, vector<10x2x1x8xbf16>
    %14 = vector.shape_cast %13 : vector<10x2x1x8xbf16> to vector<10x2x8xbf16>
    %15 = vector.shape_cast %12 : vector<10x2x8xbf16> to vector<10x2x1x8xbf16>
    tpu.vector_store %arg13[%c0_13, %c0_14, %c9_15, %c0_16], %15 {strides = array<i32>} : memref<10x2x10x8xbf16, #tpu.memory_space<vmem>>, vector<10x2x1x8xbf16>,
    %cst_17 = arith.constant 0.000000e+00 : bf16
    %16 = vector.broadcast %cst_17 : bf16 to vector<10x8xbf16>
    %c0_18 = arith.constant 0 : index
    %c0_19 = arith.constant 0 : index
    %c0_20 = arith.constant 0 : index
    %17 = vector.load %arg15[%c0_18, %c0_19, %c0_20] : memref<10x10x8xbf16, #tpu.memory_space<vmem>>, vector<1x10x8xbf16>
    %18 = vector.shape_cast %17 : vector<1x10x8xbf16> to vector<10x8xbf16>
    %19 = vector.shape_cast %16 : vector<10x8xbf16> to vector<1x10x8xbf16>
    tpu.vector_store %arg15[%c0_18, %c0_19, %c0_20], %19 {strides = array<i32>} : memref<10x10x8xbf16, #tpu.memory_space<vmem>>, vector<1x10x8xbf16>,
    %cst_21 = arith.constant 0.000000e+00 : bf16
    %20 = vector.broadcast %cst_21 : bf16 to vector<10x8xbf16>
    %c9_22 = arith.constant 9 : index
    %c0_23 = arith.constant 0 : index
    %c0_24 = arith.constant 0 : index
    %21 = vector.load %arg15[%c9_22, %c0_23, %c0_24] : memref<10x10x8xbf16, #tpu.memory_space<vmem>>, vector<1x10x8xbf16>
    %22 = vector.shape_cast %21 : vector<1x10x8xbf16> to vector<10x8xbf16>
    %23 = vector.shape_cast %20 : vector<10x8xbf16> to vector<1x10x8xbf16>
    tpu.vector_store %arg15[%c9_22, %c0_23, %c0_24], %23 {strides = array<i32>} : memref<10x10x8xbf16, #tpu.memory_space<vmem>>, vector<1x10x8xbf16>,
    %cst_25 = arith.constant 0.000000e+00 : bf16
    %24 = vector.broadcast %cst_25 : bf16 to vector<10x8xbf16>
    %c0_26 = arith.constant 0 : index
    %c0_27 = arith.constant 0 : index
    %c0_28 = arith.constant 0 : index
    %25 = vector.load %arg15[%c0_26, %c0_27, %c0_28] : memref<10x10x8xbf16, #tpu.memory_space<vmem>>, vector<10x1x8xbf16>
    %26 = vector.shape_cast %25 : vector<10x1x8xbf16> to vector<10x8xbf16>
    %27 = vector.shape_cast %24 : vector<10x8xbf16> to vector<10x1x8xbf16>
    tpu.vector_store %arg15[%c0_26, %c0_27, %c0_28], %27 {strides = array<i32>} : memref<10x10x8xbf16, #tpu.memory_space<vmem>>, vector<10x1x8xbf16>,
    %cst_29 = arith.constant 0.000000e+00 : bf16
    %28 = vector.broadcast %cst_29 : bf16 to vector<10x8xbf16>
    %c0_30 = arith.constant 0 : index
    %c9_31 = arith.constant 9 : index
    %c0_32 = arith.constant 0 : index
    %29 = vector.load %arg15[%c0_30, %c9_31, %c0_32] : memref<10x10x8xbf16, #tpu.memory_space<vmem>>, vector<10x1x8xbf16>
    %30 = vector.shape_cast %29 : vector<10x1x8xbf16> to vector<10x8xbf16>
    %31 = vector.shape_cast %28 : vector<10x8xbf16> to vector<10x1x8xbf16>
    tpu.vector_store %arg15[%c0_30, %c9_31, %c0_32], %31 {strides = array<i32>} : memref<10x10x8xbf16, #tpu.memory_space<vmem>>, vector<10x1x8xbf16>,
    %c0_33 = arith.constant 0 : index
    %c0_34 = arith.constant 0 : index
    %c0_35 = arith.constant 0 : index
    %c0_36 = arith.constant 0 : index
    %32 = vector.load %arg1[%c0_33, %c0_34, %c0_35, %c0_36] : memref<8x2x8x8xbf16, #tpu.memory_space<vmem>>, vector<8x2x8x8xbf16>
    %33 = arith.extf %32 : vector<8x2x8x8xbf16> to vector<8x2x8x8xf32>
    %c0_37 = arith.constant 0 : index
    %c0_38 = arith.constant 0 : index
    %34 = vector.load %arg2[%c0_37, %c0_38] : memref<1x8xf32, #tpu.memory_space<vmem>>, vector<1x8xf32>
    %35 = vector.shape_cast %34 : vector<1x8xf32> to vector<1x1x1x8xf32>
    %36 = vector.broadcast %35 : vector<1x1x1x8xf32> to vector<8x2x8x8xf32>
    %37 = arith.mulf %33, %36 : vector<8x2x8x8xf32>
    %c0_39 = arith.constant 0 : index
    %c0_40 = arith.constant 0 : index
    %38 = vector.load %arg3[%c0_39, %c0_40] : memref<1x8xf32, #tpu.memory_space<vmem>>, vector<1x8xf32>
    %39 = vector.shape_cast %38 : vector<1x8xf32> to vector<1x1x1x8xf32>
    %40 = vector.broadcast %39 : vector<1x1x1x8xf32> to vector<8x2x8x8xf32>
    %41 = arith.addf %37, %40 : vector<8x2x8x8xf32>
    %cst_41 = arith.constant 0.000000e+00 : f32
    %42 = vector.broadcast %cst_41 : f32 to vector<8x2x8x8xf32>
    %43 = arith.maximumf %41, %42 : vector<8x2x8x8xf32>
    %44 = arith.truncf %43 : vector<8x2x8x8xf32> to vector<8x2x8x8xbf16>
    %c1 = arith.constant 1 : index
    %c0_42 = arith.constant 0 : index
    %c1_43 = arith.constant 1 : index
    %c0_44 = arith.constant 0 : index
    %45 = vector.load %arg13[%c1, %c0_42, %c1_43, %c0_44] : memref<10x2x10x8xbf16, #tpu.memory_space<vmem>>, vector<8x2x8x8xbf16>
    tpu.vector_store %arg13[%c1, %c0_42, %c1_43, %c0_44], %44 {strides = array<i32>} : memref<10x2x10x8xbf16, #tpu.memory_space<vmem>>, vector<8x2x8x8xbf16>,
    %c0_45 = arith.constant 0 : index
    %c1_46 = arith.constant 1 : index
    %c0_47 = arith.constant 0 : index
    %c4 = arith.constant 4 : index
    %46 = vector.load %arg13[%c0_45, %c1_46, %c0_47, %c4] : memref<10x2x10x8xbf16, #tpu.memory_space<vmem>>, vector<8x1x8x4xbf16>
    %47 = vector.shape_cast %46 : vector<8x1x8x4xbf16> to vector<8x8x4xbf16>
    %c0_48 = arith.constant 0 : index
    %c0_49 = arith.constant 0 : index
    %c0_50 = arith.constant 0 : index
    %48 = vector.load %arg14[%c0_48, %c0_49, %c0_50] : memref<8x8x36xbf16, #tpu.memory_space<vmem>>, vector<8x8x4xbf16>
    tpu.vector_store %arg14[%c0_48, %c0_49, %c0_50], %47 {strides = array<i32>} : memref<8x8x36xbf16, #tpu.memory_space<vmem>>, vector<8x8x4xbf16>,
    %c0_51 = arith.constant 0 : index
    %c1_52 = arith.constant 1 : index
    %c1_53 = arith.constant 1 : index
    %c0_54 = arith.constant 0 : index
    %49 = vector.load %arg13[%c0_51, %c1_52, %c1_53, %c0_54] : memref<10x2x10x8xbf16, #tpu.memory_space<vmem>>, vector<8x1x8x4xbf16>
    %50 = vector.shape_cast %49 : vector<8x1x8x4xbf16> to vector<8x8x4xbf16>
    %c0_55 = arith.constant 0 : index
    %c0_56 = arith.constant 0 : index
    %c4_57 = arith.constant 4 : index
    %51 = vector.load %arg14[%c0_55, %c0_56, %c4_57] : memref<8x8x36xbf16, #tpu.memory_space<vmem>>, vector<8x8x4xbf16>
    tpu.vector_store %arg14[%c0_55, %c0_56, %c4_57], %50 {strides = array<i32>} : memref<8x8x36xbf16, #tpu.memory_space<vmem>>, vector<8x8x4xbf16>,
    %c0_58 = arith.constant 0 : index
    %c1_59 = arith.constant 1 : index
    %c1_60 = arith.constant 1 : index
    %c4_61 = arith.constant 4 : index
    %52 = vector.load %arg13[%c0_58, %c1_59, %c1_60, %c4_61] : memref<10x2x10x8xbf16, #tpu.memory_space<vmem>>, vector<8x1x8x4xbf16>
    %53 = vector.shape_cast %52 : vector<8x1x8x4xbf16> to vector<8x8x4xbf16>
    %c0_62 = arith.constant 0 : index
    %c0_63 = arith.constant 0 : index
    %c8 = arith.constant 8 : index
    %54 = vector.load %arg14[%c0_62, %c0_63, %c8] : memref<8x8x36xbf16, #tpu.memory_space<vmem>>, vector<8x8x4xbf16>
    tpu.vector_store %arg14[%c0_62, %c0_63, %c8], %53 {strides = array<i32>} : memref<8x8x36xbf16, #tpu.memory_space<vmem>>, vector<8x8x4xbf16>,
    %c1_64 = arith.constant 1 : index
    %c0_65 = arith.constant 0 : index
    %c0_66 = arith.constant 0 : index
    %c4_67 = arith.constant 4 : index
    %55 = vector.load %arg13[%c1_64, %c0_65, %c0_66, %c4_67] : memref<10x2x10x8xbf16, #tpu.memory_space<vmem>>, vector<8x1x8x4xbf16>
    %56 = vector.shape_cast %55 : vector<8x1x8x4xbf16> to vector<8x8x4xbf16>
    %c0_68 = arith.constant 0 : index
    %c0_69 = arith.constant 0 : index
    %c12 = arith.constant 12 : index
    %57 = vector.load %arg14[%c0_68, %c0_69, %c12] : memref<8x8x36xbf16, #tpu.memory_space<vmem>>, vector<8x8x4xbf16>
    tpu.vector_store %arg14[%c0_68, %c0_69, %c12], %56 {strides = array<i32>} : memref<8x8x36xbf16, #tpu.memory_space<vmem>>, vector<8x8x4xbf16>,
    %c1_70 = arith.constant 1 : index
    %c0_71 = arith.constant 0 : index
    %c1_72 = arith.constant 1 : index
    %c0_73 = arith.constant 0 : index
    %58 = vector.load %arg13[%c1_70, %c0_71, %c1_72, %c0_73] : memref<10x2x10x8xbf16, #tpu.memory_space<vmem>>, vector<8x1x8x4xbf16>
    %59 = vector.shape_cast %58 : vector<8x1x8x4xbf16> to vector<8x8x4xbf16>
    %c0_74 = arith.constant 0 : index
    %c0_75 = arith.constant 0 : index
    %c16 = arith.constant 16 : index
    %60 = vector.load %arg14[%c0_74, %c0_75, %c16] : memref<8x8x36xbf16, #tpu.memory_space<vmem>>, vector<8x8x4xbf16>
    tpu.vector_store %arg14[%c0_74, %c0_75, %c16], %59 {strides = array<i32>} : memref<8x8x36xbf16, #tpu.memory_space<vmem>>, vector<8x8x4xbf16>,
    %c1_76 = arith.constant 1 : index
    %c0_77 = arith.constant 0 : index
    %c1_78 = arith.constant 1 : index
    %c4_79 = arith.constant 4 : index
    %61 = vector.load %arg13[%c1_76, %c0_77, %c1_78, %c4_79] : memref<10x2x10x8xbf16, #tpu.memory_space<vmem>>, vector<8x1x8x4xbf16>
    %62 = vector.shape_cast %61 : vector<8x1x8x4xbf16> to vector<8x8x4xbf16>
    %c0_80 = arith.constant 0 : index
    %c0_81 = arith.constant 0 : index
    %c20 = arith.constant 20 : index
    %63 = vector.load %arg14[%c0_80, %c0_81, %c20] : memref<8x8x36xbf16, #tpu.memory_space<vmem>>, vector<8x8x4xbf16>
    tpu.vector_store %arg14[%c0_80, %c0_81, %c20], %62 {strides = array<i32>} : memref<8x8x36xbf16, #tpu.memory_space<vmem>>, vector<8x8x4xbf16>,
    %c1_82 = arith.constant 1 : index
    %c1_83 = arith.constant 1 : index
    %c0_84 = arith.constant 0 : index
    %c4_85 = arith.constant 4 : index
    %64 = vector.load %arg13[%c1_82, %c1_83, %c0_84, %c4_85] : memref<10x2x10x8xbf16, #tpu.memory_space<vmem>>, vector<8x1x8x4xbf16>
    %65 = vector.shape_cast %64 : vector<8x1x8x4xbf16> to vector<8x8x4xbf16>
    %c0_86 = arith.constant 0 : index
    %c0_87 = arith.constant 0 : index
    %c24 = arith.constant 24 : index
    %66 = vector.load %arg14[%c0_86, %c0_87, %c24] : memref<8x8x36xbf16, #tpu.memory_space<vmem>>, vector<8x8x4xbf16>
    tpu.vector_store %arg14[%c0_86, %c0_87, %c24], %65 {strides = array<i32>} : memref<8x8x36xbf16, #tpu.memory_space<vmem>>, vector<8x8x4xbf16>,
    %c1_88 = arith.constant 1 : index
    %c1_89 = arith.constant 1 : index
    %c1_90 = arith.constant 1 : index
    %c0_91 = arith.constant 0 : index
    %67 = vector.load %arg13[%c1_88, %c1_89, %c1_90, %c0_91] : memref<10x2x10x8xbf16, #tpu.memory_space<vmem>>, vector<8x1x8x4xbf16>
    %68 = vector.shape_cast %67 : vector<8x1x8x4xbf16> to vector<8x8x4xbf16>
    %c0_92 = arith.constant 0 : index
    %c0_93 = arith.constant 0 : index
    %c28 = arith.constant 28 : index
    %69 = vector.load %arg14[%c0_92, %c0_93, %c28] : memref<8x8x36xbf16, #tpu.memory_space<vmem>>, vector<8x8x4xbf16>
    tpu.vector_store %arg14[%c0_92, %c0_93, %c28], %68 {strides = array<i32>} : memref<8x8x36xbf16, #tpu.memory_space<vmem>>, vector<8x8x4xbf16>,
    %c1_94 = arith.constant 1 : index
    %c1_95 = arith.constant 1 : index
    %c1_96 = arith.constant 1 : index
    %c4_97 = arith.constant 4 : index
    %70 = vector.load %arg13[%c1_94, %c1_95, %c1_96, %c4_97] : memref<10x2x10x8xbf16, #tpu.memory_space<vmem>>, vector<8x1x8x4xbf16>
    %71 = vector.shape_cast %70 : vector<8x1x8x4xbf16> to vector<8x8x4xbf16>
    %c0_98 = arith.constant 0 : index
    %c0_99 = arith.constant 0 : index
    %c32 = arith.constant 32 : index
    %72 = vector.load %arg14[%c0_98, %c0_99, %c32] : memref<8x8x36xbf16, #tpu.memory_space<vmem>>, vector<8x8x4xbf16>
    tpu.vector_store %arg14[%c0_98, %c0_99, %c32], %71 {strides = array<i32>} : memref<8x8x36xbf16, #tpu.memory_space<vmem>>, vector<8x8x4xbf16>,
    %c0_100 = arith.constant 0 : index
    %c0_101 = arith.constant 0 : index
    %c0_102 = arith.constant 0 : index
    %73 = vector.load %arg14[%c0_100, %c0_101, %c0_102] : memref<8x8x36xbf16, #tpu.memory_space<vmem>>, vector<8x8x36xbf16>
    %74 = vector.shape_cast %73 : vector<8x8x36xbf16> to vector<64x36xbf16>
    %c0_103 = arith.constant 0 : index
    %c0_104 = arith.constant 0 : index
    %75 = vector.load %arg4[%c0_103, %c0_104] : memref<36x8xbf16, #tpu.memory_space<vmem>>, vector<36x8xbf16>
    %cst_105 = arith.constant dense<0.000000e+00> : vector<64x8xf32>
    %76 = tpu.matmul %74, %75, %cst_105 {dimension_numbers = #tpu.dot_dimension_numbers<[1], [0], [0], [1], [0, 0, 1, 1], [], []>} : vector<64x36xbf16>, vector<36x8xbf16>, vector<64x8xf32> -> vector<64x8xf32>
    %c0_106 = arith.constant 0 : index
    %c0_107 = arith.constant 0 : index
    %77 = vector.load %arg5[%c0_106, %c0_107] : memref<1x8xf32, #tpu.memory_space<vmem>>, vector<1x8xf32>
    %78 = vector.broadcast %77 : vector<1x8xf32> to vector<64x8xf32>
    %79 = arith.addf %76, %78 : vector<64x8xf32>
    %c0_108 = arith.constant 0 : index
    %c0_109 = arith.constant 0 : index
    %80 = vector.load %arg6[%c0_108, %c0_109] : memref<1x8xf32, #tpu.memory_space<vmem>>, vector<1x8xf32>
    %81 = vector.broadcast %80 : vector<1x8xf32> to vector<64x8xf32>
    %82 = arith.mulf %79, %81 : vector<64x8xf32>
    %c0_110 = arith.constant 0 : index
    %c0_111 = arith.constant 0 : index
    %83 = vector.load %arg7[%c0_110, %c0_111] : memref<1x8xf32, #tpu.memory_space<vmem>>, vector<1x8xf32>
    %84 = vector.broadcast %83 : vector<1x8xf32> to vector<64x8xf32>
    %85 = arith.addf %82, %84 : vector<64x8xf32>
    %cst_112 = arith.constant 0.000000e+00 : f32
    %86 = vector.broadcast %cst_112 : f32 to vector<64x8xf32>
    %87 = arith.maximumf %85, %86 : vector<64x8xf32>
    %88 = vector.shape_cast %87 : vector<64x8xf32> to vector<8x8x8xf32>
    %89 = arith.truncf %88 : vector<8x8x8xf32> to vector<8x8x8xbf16>
    %c1_113 = arith.constant 1 : index
    %c1_114 = arith.constant 1 : index
    %c0_115 = arith.constant 0 : index
    %90 = vector.load %arg15[%c1_113, %c1_114, %c0_115] : memref<10x10x8xbf16, #tpu.memory_space<vmem>>, vector<8x8x8xbf16>
    tpu.vector_store %arg15[%c1_113, %c1_114, %c0_115], %89 {strides = array<i32>} : memref<10x10x8xbf16, #tpu.memory_space<vmem>>, vector<8x8x8xbf16>,
    %c0_116 = arith.constant 0 : index
    %c0_117 = arith.constant 0 : index
    %c0_118 = arith.constant 0 : index
    %91 = vector.load %arg15[%c0_116, %c0_117, %c0_118] : memref<10x10x8xbf16, #tpu.memory_space<vmem>>, vector<8x8x8xbf16>
    %c0_119 = arith.constant 0 : index
    %c0_120 = arith.constant 0 : index
    %c0_121 = arith.constant 0 : index
    %92 = vector.load %arg16[%c0_119, %c0_120, %c0_121] : memref<8x8x72xbf16, #tpu.memory_space<vmem>>, vector<8x8x8xbf16>
    tpu.vector_store %arg16[%c0_119, %c0_120, %c0_121], %91 {strides = array<i32>} : memref<8x8x72xbf16, #tpu.memory_space<vmem>>, vector<8x8x8xbf16>,
    %c0_122 = arith.constant 0 : index
    %c1_123 = arith.constant 1 : index
    %c0_124 = arith.constant 0 : index
    %93 = vector.load %arg15[%c0_122, %c1_123, %c0_124] : memref<10x10x8xbf16, #tpu.memory_space<vmem>>, vector<8x8x8xbf16>
    %c0_125 = arith.constant 0 : index
    %c0_126 = arith.constant 0 : index
    %c8_127 = arith.constant 8 : index
    %94 = vector.load %arg16[%c0_125, %c0_126, %c8_127] : memref<8x8x72xbf16, #tpu.memory_space<vmem>>, vector<8x8x8xbf16>
    tpu.vector_store %arg16[%c0_125, %c0_126, %c8_127], %93 {strides = array<i32>} : memref<8x8x72xbf16, #tpu.memory_space<vmem>>, vector<8x8x8xbf16>,
    %c0_128 = arith.constant 0 : index
    %c2 = arith.constant 2 : index
    %c0_129 = arith.constant 0 : index
    %95 = vector.load %arg15[%c0_128, %c2, %c0_129] : memref<10x10x8xbf16, #tpu.memory_space<vmem>>, vector<8x8x8xbf16>
    %c0_130 = arith.constant 0 : index
    %c0_131 = arith.constant 0 : index
    %c16_132 = arith.constant 16 : index
    %96 = vector.load %arg16[%c0_130, %c0_131, %c16_132] : memref<8x8x72xbf16, #tpu.memory_space<vmem>>, vector<8x8x8xbf16>
    tpu.vector_store %arg16[%c0_130, %c0_131, %c16_132], %95 {strides = array<i32>} : memref<8x8x72xbf16, #tpu.memory_space<vmem>>, vector<8x8x8xbf16>,
    %c1_133 = arith.constant 1 : index
    %c0_134 = arith.constant 0 : index
    %c0_135 = arith.constant 0 : index
    %97 = vector.load %arg15[%c1_133, %c0_134, %c0_135] : memref<10x10x8xbf16, #tpu.memory_space<vmem>>, vector<8x8x8xbf16>
    %c0_136 = arith.constant 0 : index
    %c0_137 = arith.constant 0 : index
    %c24_138 = arith.constant 24 : index
    %98 = vector.load %arg16[%c0_136, %c0_137, %c24_138] : memref<8x8x72xbf16, #tpu.memory_space<vmem>>, vector<8x8x8xbf16>
    tpu.vector_store %arg16[%c0_136, %c0_137, %c24_138], %97 {strides = array<i32>} : memref<8x8x72xbf16, #tpu.memory_space<vmem>>, vector<8x8x8xbf16>,
    %c1_139 = arith.constant 1 : index
    %c1_140 = arith.constant 1 : index
    %c0_141 = arith.constant 0 : index
    %99 = vector.load %arg15[%c1_139, %c1_140, %c0_141] : memref<10x10x8xbf16, #tpu.memory_space<vmem>>, vector<8x8x8xbf16>
    %c0_142 = arith.constant 0 : index
    %c0_143 = arith.constant 0 : index
    %c32_144 = arith.constant 32 : index
    %100 = vector.load %arg16[%c0_142, %c0_143, %c32_144] : memref<8x8x72xbf16, #tpu.memory_space<vmem>>, vector<8x8x8xbf16>
    tpu.vector_store %arg16[%c0_142, %c0_143, %c32_144], %99 {strides = array<i32>} : memref<8x8x72xbf16, #tpu.memory_space<vmem>>, vector<8x8x8xbf16>,
    %c1_145 = arith.constant 1 : index
    %c2_146 = arith.constant 2 : index
    %c0_147 = arith.constant 0 : index
    %101 = vector.load %arg15[%c1_145, %c2_146, %c0_147] : memref<10x10x8xbf16, #tpu.memory_space<vmem>>, vector<8x8x8xbf16>
    %c0_148 = arith.constant 0 : index
    %c0_149 = arith.constant 0 : index
    %c40 = arith.constant 40 : index
    %102 = vector.load %arg16[%c0_148, %c0_149, %c40] : memref<8x8x72xbf16, #tpu.memory_space<vmem>>, vector<8x8x8xbf16>
    tpu.vector_store %arg16[%c0_148, %c0_149, %c40], %101 {strides = array<i32>} : memref<8x8x72xbf16, #tpu.memory_space<vmem>>, vector<8x8x8xbf16>,
    %c2_150 = arith.constant 2 : index
    %c0_151 = arith.constant 0 : index
    %c0_152 = arith.constant 0 : index
    %103 = vector.load %arg15[%c2_150, %c0_151, %c0_152] : memref<10x10x8xbf16, #tpu.memory_space<vmem>>, vector<8x8x8xbf16>
    %c0_153 = arith.constant 0 : index
    %c0_154 = arith.constant 0 : index
    %c48 = arith.constant 48 : index
    %104 = vector.load %arg16[%c0_153, %c0_154, %c48] : memref<8x8x72xbf16, #tpu.memory_space<vmem>>, vector<8x8x8xbf16>
    tpu.vector_store %arg16[%c0_153, %c0_154, %c48], %103 {strides = array<i32>} : memref<8x8x72xbf16, #tpu.memory_space<vmem>>, vector<8x8x8xbf16>,
    %c2_155 = arith.constant 2 : index
    %c1_156 = arith.constant 1 : index
    %c0_157 = arith.constant 0 : index
    %105 = vector.load %arg15[%c2_155, %c1_156, %c0_157] : memref<10x10x8xbf16, #tpu.memory_space<vmem>>, vector<8x8x8xbf16>
    %c0_158 = arith.constant 0 : index
    %c0_159 = arith.constant 0 : index
    %c56 = arith.constant 56 : index
    %106 = vector.load %arg16[%c0_158, %c0_159, %c56] : memref<8x8x72xbf16, #tpu.memory_space<vmem>>, vector<8x8x8xbf16>
    tpu.vector_store %arg16[%c0_158, %c0_159, %c56], %105 {strides = array<i32>} : memref<8x8x72xbf16, #tpu.memory_space<vmem>>, vector<8x8x8xbf16>,
    %c2_160 = arith.constant 2 : index
    %c2_161 = arith.constant 2 : index
    %c0_162 = arith.constant 0 : index
    %107 = vector.load %arg15[%c2_160, %c2_161, %c0_162] : memref<10x10x8xbf16, #tpu.memory_space<vmem>>, vector<8x8x8xbf16>
    %c0_163 = arith.constant 0 : index
    %c0_164 = arith.constant 0 : index
    %c64 = arith.constant 64 : index
    %108 = vector.load %arg16[%c0_163, %c0_164, %c64] : memref<8x8x72xbf16, #tpu.memory_space<vmem>>, vector<8x8x8xbf16>
    tpu.vector_store %arg16[%c0_163, %c0_164, %c64], %107 {strides = array<i32>} : memref<8x8x72xbf16, #tpu.memory_space<vmem>>, vector<8x8x8xbf16>,
    %c0_165 = arith.constant 0 : index
    %c0_166 = arith.constant 0 : index
    %c0_167 = arith.constant 0 : index
    %109 = vector.load %arg16[%c0_165, %c0_166, %c0_167] : memref<8x8x72xbf16, #tpu.memory_space<vmem>>, vector<8x8x72xbf16>
    %110 = vector.shape_cast %109 : vector<8x8x72xbf16> to vector<64x72xbf16>
    %c0_168 = arith.constant 0 : index
    %c0_169 = arith.constant 0 : index
    %111 = vector.load %arg8[%c0_168, %c0_169] : memref<72x8xbf16, #tpu.memory_space<vmem>>, vector<72x8xbf16>
    %cst_170 = arith.constant dense<0.000000e+00> : vector<64x8xf32>
    %112 = tpu.matmul %110, %111, %cst_170 {dimension_numbers = #tpu.dot_dimension_numbers<[1], [0], [0], [1], [0, 0, 1, 1], [], []>} : vector<64x72xbf16>, vector<72x8xbf16>, vector<64x8xf32> -> vector<64x8xf32>
    %c0_171 = arith.constant 0 : index
    %c0_172 = arith.constant 0 : index
    %113 = vector.load %arg9[%c0_171, %c0_172] : memref<1x8xf32, #tpu.memory_space<vmem>>, vector<1x8xf32>
    %114 = vector.broadcast %113 : vector<1x8xf32> to vector<64x8xf32>
    %115 = arith.addf %112, %114 : vector<64x8xf32>
    %c0_173 = arith.constant 0 : index
    %c0_174 = arith.constant 0 : index
    %c0_175 = arith.constant 0 : index
    %c0_176 = arith.constant 0 : index
    %116 = vector.load %arg1[%c0_173, %c0_174, %c0_175, %c0_176] : memref<8x2x8x8xbf16, #tpu.memory_space<vmem>>, vector<8x1x8x4xbf16>
    %117 = vector.shape_cast %116 : vector<8x1x8x4xbf16> to vector<8x8x4xbf16>
    %118 = vector.shape_cast %117 : vector<8x8x4xbf16> to vector<64x4xbf16>
    %c0_177 = arith.constant 0 : index
    %c0_178 = arith.constant 0 : index
    %119 = vector.load %arg10[%c0_177, %c0_178] : memref<4x8xbf16, #tpu.memory_space<vmem>>, vector<4x8xbf16>
    %cst_179 = arith.constant dense<0.000000e+00> : vector<64x8xf32>
    %120 = tpu.matmul %118, %119, %cst_179 {dimension_numbers = #tpu.dot_dimension_numbers<[1], [0], [0], [1], [0, 0, 1, 1], [], []>} : vector<64x4xbf16>, vector<4x8xbf16>, vector<64x8xf32> -> vector<64x8xf32>
    %c0_180 = arith.constant 0 : index
    %c0_181 = arith.constant 0 : index
    %121 = vector.load %arg11[%c0_180, %c0_181] : memref<1x8xf32, #tpu.memory_space<vmem>>, vector<1x8xf32>
    %122 = vector.broadcast %121 : vector<1x8xf32> to vector<64x8xf32>
    %123 = arith.addf %120, %122 : vector<64x8xf32>
    %124 = arith.addf %115, %123 : vector<64x8xf32>
    %c0_182 = arith.constant 0 : index
    %c0_183 = arith.constant 0 : index
    %c0_184 = arith.constant 0 : index
    %125 = vector.load %arg12[%c0_182, %c0_183, %c0_184] : memref<1x64x8xf32, #tpu.memory_space<vmem>>, vector<1x64x8xf32>
    %126 = vector.shape_cast %125 : vector<1x64x8xf32> to vector<64x8xf32>
    %127 = vector.shape_cast %124 : vector<64x8xf32> to vector<1x64x8xf32>
    tpu.vector_store %arg12[%c0_182, %c0_183, %c0_184], %127 {strides = array<i32>} : memref<1x64x8xf32, #tpu.memory_space<vmem>>, vector<1x64x8xf32>,
    return
  }
  func.func @transform_0(%arg0: i32) -> (i32, i32, i32, i32) {
    %c0_i32 = arith.constant 0 : i32
    %c0_i32_0 = arith.constant 0 : i32
    %c0_i32_1 = arith.constant 0 : i32
    %c0_i32_2 = arith.constant 0 : i32
    return %arg0, %c0_i32, %c0_i32_0, %c0_i32_1 : i32, i32, i32, i32
  }
  func.func @transform_1(%arg0: i32) -> (i32, i32) {
    %c0_i32 = arith.constant 0 : i32
    %c0_i32_0 = arith.constant 0 : i32
    %c0_i32_1 = arith.constant 0 : i32
    return %c0_i32, %c0_i32_0 : i32, i32
  }
  func.func @transform_2(%arg0: i32) -> (i32, i32) {
    %c0_i32 = arith.constant 0 : i32
    %c0_i32_0 = arith.constant 0 : i32
    %c0_i32_1 = arith.constant 0 : i32
    return %c0_i32, %c0_i32_0 : i32, i32
  }
  func.func @transform_3(%arg0: i32) -> (i32, i32) {
    %c0_i32 = arith.constant 0 : i32
    %c0_i32_0 = arith.constant 0 : i32
    %c0_i32_1 = arith.constant 0 : i32
    return %c0_i32, %c0_i32_0 : i32, i32
  }
  func.func @transform_4(%arg0: i32) -> (i32, i32) {
    %c0_i32 = arith.constant 0 : i32
    %c0_i32_0 = arith.constant 0 : i32
    %c0_i32_1 = arith.constant 0 : i32
    return %c0_i32, %c0_i32_0 : i32, i32
  }
  func.func @transform_5(%arg0: i32) -> (i32, i32) {
    %c0_i32 = arith.constant 0 : i32
    %c0_i32_0 = arith.constant 0 : i32
    %c0_i32_1 = arith.constant 0 : i32
    return %c0_i32, %c0_i32_0 : i32, i32
  }
  func.func @transform_6(%arg0: i32) -> (i32, i32) {
    %c0_i32 = arith.constant 0 : i32
    %c0_i32_0 = arith.constant 0 : i32
    %c0_i32_1 = arith.constant 0 : i32
    return %c0_i32, %c0_i32_0 : i32, i32
  }
  func.func @transform_7(%arg0: i32) -> (i32, i32) {
    %c0_i32 = arith.constant 0 : i32
    %c0_i32_0 = arith.constant 0 : i32
    %c0_i32_1 = arith.constant 0 : i32
    return %c0_i32, %c0_i32_0 : i32, i32
  }
  func.func @transform_8(%arg0: i32) -> (i32, i32) {
    %c0_i32 = arith.constant 0 : i32
    %c0_i32_0 = arith.constant 0 : i32
    %c0_i32_1 = arith.constant 0 : i32
    return %c0_i32, %c0_i32_0 : i32, i32
  }
  func.func @transform_9(%arg0: i32) -> (i32, i32) {
    %c0_i32 = arith.constant 0 : i32
    %c0_i32_0 = arith.constant 0 : i32
    %c0_i32_1 = arith.constant 0 : i32
    return %c0_i32, %c0_i32_0 : i32, i32
  }
  func.func @transform_10(%arg0: i32) -> (i32, i32) {
    %c0_i32 = arith.constant 0 : i32
    %c0_i32_0 = arith.constant 0 : i32
    %c0_i32_1 = arith.constant 0 : i32
    return %c0_i32, %c0_i32_0 : i32, i32
  }
  func.func @transform_11(%arg0: i32) -> (i32, i32, i32) {
    %c0_i32 = arith.constant 0 : i32
    %c0_i32_0 = arith.constant 0 : i32
    %c0_i32_1 = arith.constant 0 : i32
    return %arg0, %c0_i32, %c0_i32_0 : i32, i32, i32
  }
}

</mosaic_0001>

<bundles_post_ra>
// kernel: tpu_custom_call.1
= control target key start
LH: loop header
LB: loop body
LE: loop exit
PB: predicated region body
PF: predicated region fallthrough
CT: control target
= control target key end

     0   :  { %s4053_s17 = smov 0   ;;  %s5267_s0 = inlined_call_operand.vmem [shape: bf16[16,2,8,8], index: 0, kind: input, shape index: {}]   ;;  %s5268_s1 = inlined_call_operand.vmem [shape: f32[1,8], index: 1, kind: input, shape index: {}]   ;;  %s5269_s2 = inlined_call_operand.vmem [shape: f32[1,8], index: 2, kind: input, shape index: {}]   ;;  %s5270_s3 = inlined_call_operand.vmem [shape: bf16[36,8], index: 3, kind: input, shape index: {}]   ;;  %s5271_s4 = inlined_call_operand.vmem [shape: f32[1,8], index: 4, kind: input, shape index: {}]   ;;  %s5272_s5 = inlined_call_operand.vmem [shape: f32[1,8], index: 5, kind: input, shape index: {}]   ;;  %s5273_s6 = inlined_call_operand.vmem [shape: f32[1,8], index: 6, kind: input, shape index: {}]   ;;  %s5274_s7 = inlined_call_operand.vmem [shape: bf16[72,8], index: 7, kind: input, shape index: {}]   ;;  %s5275_s8 = inlined_call_operand.vmem [shape: f32[1,8], index: 8, kind: input, shape index: {}]   ;;  %s5276_s9 = inlined_call_operand.vmem [shape: bf16[4,8], index: 9, kind: input, shape index: {}]   ;;  %s5277_s10 = inlined_call_operand.vmem [shape: f32[1,8], index: 10, kind: input, shape index: {}]   ;;  %s5278_s11 = inlined_call_operand.vmem [shape: f32[2,64,8], index: 11, kind: output, shape index: {}]  }
   0x1 LB: > { %s4059_s18 = sadd.s32 4294967295, %s3978_s17   ;;  %p3703_p0 = scmp.ge.s32.totalorder %s3978_s17, 1  ;;  %s3978_s17 = sphi %s4053_s17, %s21_s17  }
   0x2   : > { %p339_p1 = scmp.lt.s32.totalorder %s3978_s17, 3 }
   0x4   : > { %p340_p2 = pnand %p3703_p0, %p339_p1 }
   0x5   : > { %s3704_s19 = sshll.u32 (!%p340_p2), %s4059_s18, 3  ;;  %s3981_s28 = smov (!%p340_p2), 124  }
   0x6   : > { %343 = sbr.rel (%p340_p2) target bundleno = 969 (0x3c9), region = 64  ;;  %p381_p3 = scmp.lt.s32.totalorder (!%p340_p2), %s3704_s19, 15 }
   0x7   : > { %s3982_s29 = smov (!%p340_p2), 4   ;;  %s3983_s30 = smov (!%p340_p2), 8  }
   0x8   : > { %s3984_s12 = smov (!%p340_p2), 16   ;;  %s3985_s13 = smov (!%p340_p2), 20  }
   0x9   : > { %s3986_s16 = smov (!%p340_p2), 28   ;;  %s3989_s21 = smov (!%p340_p2), 24  }
   0xa   : > { %s3990_s22 = smov (!%p340_p2), 64   ;;  %s3991_s23 = smov (!%p340_p2), 40  }
   0xb   : > { %vm393_vm0 = vcmask 60416   ;;  %vm395_vm1 = vcmask 57344   ;;  %vm405_vm2 = vsmask.f32 256  ;;  %v3980_v0 = vmov 0   ;;  %s5290_s19 = smov (!%p381_p3, %s3704_s19), 15 }
   0xc   : > { %396 = vst.msk [vmem:[#allocation2 + $0x4] sm:$0x1] %vm395_vm1, %v3980_v0  ;;  %401 = vst.msk [vmem:[#allocation2 + $0x94] sm:$0x1] %vm395_vm1, %v3980_v0  ;;  %v422_v2 = vld [vmem:[#allocation2 + $0x28] sm:$0x1] }
   0xd   : > { %397 = vst.msk [vmem:[#allocation2 + $0x8] sm:$0xf] %vm393_vm0, %v3980_v0  ;;  %400 = vst.msk [vmem:[#allocation2 + $0x90] sm:$0xf] %vm393_vm0, %v3980_v0  ;;  %vm467_vm4 = vsmask.f32 7938 }
   0xe   : > { %402 = vst.msk [vmem:[#allocation2 + $0x98] sm:$0xf] %vm393_vm0, %v3980_v0  ;;  %394 = vst.msk [vmem:[#allocation2] sm:$0xf] %vm393_vm0, %v3980_v0  ;;  %v416_v4 = vld [vmem:[#allocation2 + $0x18] sm:$0x1] }
   0xf   : > { %403 = vst.msk [vmem:[#allocation2 + $0x9c] sm:$0x1] %vm395_vm1, %v3980_v0  ;;  %398 = vst.msk [vmem:[#allocation2 + $0xc] sm:$0x1] %vm395_vm1, %v3980_v0  ;;  %v428_v6 = vld [vmem:[#allocation2 + $0x38] sm:$0x1] }
  0x10   : > { %529 = vst.msk [vmem:[#allocation4] sm:$0xf] %vm393_vm0, %v3980_v0  ;;  %532 = vst.msk [vmem:[#allocation4 + $0x48] sm:$0xf] %vm393_vm0, %v3980_v0  ;;  %v413_v7 = vld [vmem:[#allocation2 + $0x10] sm:$0x1] }
  0x11   : > { %530 = vst.msk [vmem:[#allocation4 + $0x4] sm:$0x1] %vm395_vm1, %v3980_v0  ;;  %533 = vst.msk [vmem:[#allocation4 + $0x4c] sm:$0x1] %vm395_vm1, %v3980_v0  ;;  %v419_v10 = vld [vmem:[#allocation2 + $0x20] sm:$0x1] }
  0x12   : > { %vm4076_vm3 = vmand %vm395_vm1, %vm405_vm2  ;;  %v425_v12 = vld [vmem:[#allocation2 + $0x30] sm:$0x1]  ;;  %v431_v13 = vld [vmem:[#allocation2 + $0x40] sm:$0x1]  ;;  %s3798_s20 = sshll.u32 %s5290_s19, 3  ;;  %vm1052_vm10 = vcmask 27648  }
  0x13   : > { %v423_v3 = vsel %vm4076_vm3, 0, %v422_v2  ;;  %v417_v5 = vsel %vm4076_vm3, 0, %v416_v4  ;;  %v429_v8 = vsel %vm4076_vm3, 0, %v428_v6  ;;  %v414_v9 = vsel %vm4076_vm3, 0, %v413_v7  ;;  %v4094_v14 = vld [vmem:[%s5268_s1] ss:$0 sm:$0xff]  ;;  %s4103_s25 = scalar_lea.vmem %s5267_s0, %s3798_s20  ;;  %vm4113_vm5 = vmand %vm395_vm1, %vm467_vm4 }
  0x14   : > { %424 = vst [vmem:[#allocation2 + $0x28] sm:$0x1] %v423_v3  ;;  %418 = vst [vmem:[#allocation2 + $0x18] sm:$0x1] %v417_v5  ;;  %v420_v11 = vsel %vm4076_vm3, 0, %v419_v10  ;;  %v426_v15 = vsel %vm4076_vm3, 0, %v425_v12 }
  0x15   : > { %430 = vst [vmem:[#allocation2 + $0x38] sm:$0x1] %v429_v8  ;;  %415 = vst [vmem:[#allocation2 + $0x10] sm:$0x1] %v414_v9  ;;  %v432_v16 = vsel %vm4076_vm3, 0, %v431_v13  ;;  %v3856_v26 = vld [vmem:[%s4103_s25 + $0x8] sm:$0xff]  }
  0x16   : > { %421 = vst [vmem:[#allocation2 + $0x20] sm:$0x1] %v420_v11  ;;  %v410_v17 = vld [vmem:[#allocation2 + $0x8] sm:$0x1]  ;;  %v461_v18 = vld [vmem:[#allocation2 + $0x90] sm:$0x1]  ;;  %v3831_v31 = vunpack.c.h.bf16 %v3856_v26  ;;  %v3830_v33 = vunpack.c.l.bf16 %v3856_v26  ;;  %vm4171_vm9 = vmand %vm393_vm0, %vm467_vm4 }
  0x17   : > { %v464_v19 = vld [vmem:[#allocation2 + $0x98] sm:$0x1]  ;;  %427 = vst [vmem:[#allocation2 + $0x30] sm:$0x1] %v426_v15  ;;  %433 = vst [vmem:[#allocation2 + $0x40] sm:$0x1] %v432_v16 }
  0x18   : > { %v484_v20 = vld [vmem:[#allocation2 + $0x2c] sm:$0x1]  ;;  %v411_v21 = vsel %vm4076_vm3, 0, %v410_v17  ;;  %v462_v22 = vsel %vm4076_vm3, 0, %v461_v18  ;;  %v465_v23 = vsel %vm4076_vm3, 0, %v464_v19  ;;  %v3825_v32 = vld [vmem:[%s4103_s25] sm:$0xff]   ;;  %v636_v42 = vmul.f32 %v3831_v31, %v4094_v14 }
  0x19   : > { %v469_v25 = vld [vmem:[#allocation2 + $0x4] sm:$0x1]  ;;  %v4121_v27 = vld [vmem:[%s5269_s2] ss:$0 sm:$0xff]  ;;  %412 = vst [vmem:[#allocation2 + $0x8] sm:$0x1] %v411_v21  ;;  %v3827_v38 = vunpack.c.h.bf16 %v3825_v32  ;;  %v3826_v39 = vunpack.c.l.bf16 %v3825_v32  ;;  %v635_v43 = vmul.f32 %v3830_v33, %v4094_v14 }
  0x1a   : > { %463 = vst [vmem:[#allocation2 + $0x90] sm:$0x1] %v462_v22  ;;  %466 = vst [vmem:[#allocation2 + $0x98] sm:$0x1] %v465_v23  ;;  %v470_v28 = vsel %vm4113_vm5, 0, %v469_v25  ;;  %v3857_v45 = vld [vmem:[%s4103_s25 + $0x10] sm:$0xff]   ;;  %v659_v48 = vadd.f32 %v4121_v27, %v636_v42 }
  0x1b   : > { %v523_v29 = vld [vmem:[#allocation2 + $0x94] sm:$0x1]  ;;  %v526_v30 = vld [vmem:[#allocation2 + $0x9c] sm:$0x1]  ;;  %471 = vst [vmem:[#allocation2 + $0x4] sm:$0x1] %v470_v28  ;;  %v634_v44 = vmul.f32 %v3827_v38, %v4094_v14  ;;  %v633_v46 = vmul.f32 %v3826_v39, %v4094_v14  ;;  %v3835_v49 = vunpack.c.h.bf16 %v3857_v45  ;;  %v658_v50 = vadd.f32 %v4121_v27, %v635_v43 }
  0x1c   : > { %v524_v34 = vsel %vm4113_vm5, 0, %v523_v29  ;;  %v527_v35 = vsel %vm4113_vm5, 0, %v526_v30  ;;  %v407_v36 = vld [vmem:[#allocation2] sm:$0x1]  ;;  %v472_v37 = vld [vmem:[#allocation2 + $0xc] sm:$0x1]  ;;  %v3834_v51 = vunpack.c.l.bf16 %v3857_v45 }
  0x1d   : > { %525 = vst [vmem:[#allocation2 + $0x94] sm:$0x1] %v524_v34  ;;  %528 = vst [vmem:[#allocation2 + $0x9c] sm:$0x1] %v527_v35  ;;  %v408_v40 = vsel %vm4076_vm3, 0, %v407_v36  ;;  %v473_v41 = vsel %vm4113_vm5, 0, %v472_v37  ;;  %v657_v54 = vadd.f32 %v4121_v27, %v634_v44  ;;  %v656_v55 = vadd.f32 %v4121_v27, %v633_v46 }
  0x1e   : > { %vm1077_vm6 = vsmask.f32 3328  ;;  %409 = vst [vmem:[#allocation2] sm:$0x1] %v408_v40  ;;  %474 = vst [vmem:[#allocation2 + $0xc] sm:$0x1] %v473_v41  ;;  %v638_v59 = vmul.f32 %v3835_v49, %v4094_v14  ;;  %v637_v61 = vmul.f32 %v3834_v51, %v4094_v14 }
  0x1f   : > { %vm1078_vm7 = vsmask.f32 7440  ;;  %v485_v47 = vsel %vm4113_vm5, 0, %v484_v20  ;;  %v4144_v52 = vld [vmem:[%s4103_s25 + $0x18] sm:$0xff]   ;;  %v675_v58 = vmax.f32 %v659_v48, 0.0  ;;  %v674_v60 = vmax.f32 %v658_v50, 0.0 }
  0x20   : > { %486 = vst [vmem:[#allocation2 + $0x2c] sm:$0x1] %v485_v47  ;;  %v478_v53 = vld [vmem:[#allocation2 + $0x1c] sm:$0x1]  ;;  %v3838_v56 = vunpack.c.l.bf16 %v4144_v52  ;;  %v1012_v62 = vld [vmem:[#allocation2 + $0x8] sm:$0xf]  ;;  %v661_v9 = vadd.f32 %v4121_v27, %v638_v59  ;;  %v4161_v17 = vadd.f32 %v4121_v27, %v637_v61  ;;  %vm4165_vm8 = vmor %vm1077_vm6, %vm1078_vm7 }
  0x21   : > { %v479_v57 = vsel %vm4113_vm5, 0, %v478_v53  ;;  %v1061_v63 = vld [vmem:[#allocation2 + $0x8] sm:$0xf]  ;;  %1028 = vrot.lane.b32.xlu0 %v1012_v62, %s3981_s28  ;;  %v3803_v7 = vpack.c.bf16 %v675_v58, %v675_v58  ;;  %v673_v8 = vmax.f32 %v657_v54, 0.0  ;;  %v672_v10 = vmax.f32 %v656_v55, 0.0  ;;  %v4184_v59 = vld [vmem:[%s4103_s25 + $0x20] sm:$0xff]  }
  0x22   : > { %480 = vst [vmem:[#allocation2 + $0x1c] sm:$0x1] %v479_v57  ;;  %v1225_v0 = vld [vmem:[#allocation2 + $0x8] sm:$0xf]  ;;  %v4154_v2 = vmul.f32 %v3838_v56, %v4094_v14  ;;  %v1081_v3 = vshrl.u32 %v1061_v63, 16  ;;  %v1084_v4 = vshll.u32 %v1061_v63, 16  ;;  %v4158_v16 = vpack.c.bf16 %v674_v60, %v674_v60 }
  0x23   : > { %v1242_v5 = vshrl.u32 %v1225_v0, 16  ;;  %v1245_v6 = vshll.u32 %v1225_v0, 16  ;;  %v777_v23 = vshrl.u32 %v3803_v7, 16  ;;  %v780_v25 = vshll.u32 %v3803_v7, 16  ;;  %v933_v39 = vld [vmem:[#allocation2 + $0x28] sm:$0xf] }
  0x24   : > { %v1083_v12 = vrot.slane %v1081_v3, 4  ;;  %v1086_v13 = vrot.slane %v1084_v4, 5  ;;  %v3801_v26 = vpack.c.bf16 %v673_v8, %v673_v8  ;;  %v677_v32 = vmax.f32 %v661_v9, 0.0  ;;  %v921_v47 = vld [vmem:[#allocation2 + $0x18] sm:$0xf]  ;;  %s3992_s24 = smov 32  }
  0x25   : > { %v1062_v11 = vld [vmem:[#allocation2 + $0xc] sm:$0x1]  ;;  %v1244_v19 = vrot.slane %v1242_v5, 4  ;;  %v1247_v20 = vrot.slane %v1245_v6, 5  ;;  %v779_v34 = vrot.slane %v777_v23, 7  ;;  %v3800_v41 = vpack.c.bf16 %v672_v10, %v672_v10  ;;  %p387_p4 = scmp.lt.s32.totalorder %s4059_s18, 1 }
  0x26   : > { %v1226_v15 = vld [vmem:[#allocation2 + $0xc] sm:$0x1]  ;;  %v1090_v18 = vshll.u32 %v1062_v11, 16  ;;  %v1087_v22 = vor.u32 %v1086_v13, %v1083_v12  ;;  %v761_v35 = vshrl.u32 %v3801_v26, 16  ;;  %v764_v36 = vshll.u32 %v3801_v26, 16 }
  0x27   : > { %v1251_v21 = vshll.u32 %v1226_v15, 16  ;;  %v1248_v30 = vor.u32 %v1247_v20, %v1244_v19  ;;  %v3805_v40 = vpack.c.bf16 %v677_v32, %v677_v32  ;;  %v769_v42 = vshrl.u32 %v4158_v16, 16  ;;  %v936_v53 = vld [vmem:[#allocation2 + $0x2c] sm:$0x1]  ;;  %v945_v57 = vld [vmem:[#allocation2 + $0x38] sm:$0xf] }
  0x28   : > { %v1092_v29 = vrot.slane %v1090_v18, 5  ;;  %v1088_v33 = vrot.slane %v1087_v22, 4  ;;  %v782_v44 = vor.u32 %v780_v25, %v779_v34  ;;  %v783_v45 = vrot.slane %v779_v34, 4  ;;  %v915_v62 = vld [vmem:[#allocation2 + $0x10] sm:$0xf]  ;;  %s5292_s18 = smov (!%p387_p4, %s4059_s18), 1 }
  0x29   : > { %v1253_v31 = vrot.slane %v1251_v21, 5  ;;  %v1249_v37 = vrot.slane %v1248_v30, 4  ;;  %v763_v46 = vrot.slane %v761_v35, 7  ;;  %v793_v49 = vshrl.u32 %v3805_v40, 16  ;;  %v924_v7 = vld [vmem:[#allocation2 + $0x1c] sm:$0x1] }
  0x2a   : > { %v1093_v43 = vsel %vm4165_vm8, %v1088_v33, %v1092_v29  ;;  %v796_v50 = vshll.u32 %v3805_v40, 16  ;;  %v753_v51 = vshrl.u32 %v3800_v41, 16  ;;  %v934_v54 = vsel %vm4171_vm9, %v782_v44, %v933_v39  ;;  %v490_v8 = vld [vmem:[#allocation2 + $0x3c] sm:$0x1]  ;;  %v927_v11 = vld [vmem:[#allocation2 + $0x20] sm:$0xf] }
  0x2b   : > { %1192 = vrot.lane.b32.xlu0 %v1093_v43, %s3982_s29  ;;  %v1254_v48 = vsel %vm4165_vm8, %v1249_v37, %v1253_v31  ;;  %v766_v55 = vor.u32 %v764_v36, %v763_v46  ;;  %v767_v56 = vrot.slane %v763_v46, 4  ;;  %v756_v58 = vshll.u32 %v3800_v41, 16  ;;  %935 = vst [vmem:[#allocation2 + $0x28] sm:$0xf] %v934_v54  ;;  %v481_v12 = vld [vmem:[#allocation2 + $0x24] sm:$0x1] }
  0x2c   : > { %v4186_v60 = vrot.slane %v793_v49, 7  ;;  %v4188_v61 = vrot.slane %v753_v51, 7  ;;  %v4190_v63 = vrot.slane %v769_v42, 7  ;;  %v772_v0 = vshll.u32 %v4158_v16, 16  ;;  %v475_v13 = vld [vmem:[#allocation2 + $0x14] sm:$0x1] }
  0x2d   : > { %v922_v3 = vsel %vm4171_vm9, %v766_v55, %v921_v47  ;;  %v676_v4 = vmax.f32 %v4161_v17, 0.0  ;;  %v662_v5 = vadd.f32 %v4121_v27, %v4154_v2  ;;  %v937_v6 = vsel %vm4076_vm3, %v783_v45, %v936_v53  ;;  %v493_v20 = vld [vmem:[#allocation2 + $0x44] sm:$0x1]  ;;  %v487_v21 = vld [vmem:[#allocation2 + $0x34] sm:$0x1] }
  0x2e   : > { %923 = vst [vmem:[#allocation2 + $0x18] sm:$0xf] %v922_v3  ;;  %v798_v9 = vor.u32 %v796_v50, %v4186_v60  ;;  %v758_v10 = vor.u32 %v756_v58, %v4188_v61  ;;  %938 = vst [vmem:[#allocation2 + $0x2c] sm:$0x1] %v937_v6  ;;  %v3839_v15 = vunpack.c.h.bf16 %v4144_v52  ;;  %v3843_v2 = vunpack.c.h.bf16 %v4184_v59  ;;  %v434_v26 = vld [vmem:[#allocation2 + $0x48] sm:$0x1] }
  0x2f   : > { %1353 = vrot.lane.b32.xlu0 %v1254_v48, %s3982_s29  ;;  %v799_v16 = vrot.slane %v4186_v60, 4  ;;  %v774_v17 = vor.u32 %v772_v0, %v4190_v63  ;;  %v3804_v18 = vpack.c.bf16 %v676_v4, %v676_v4  ;;  %v678_v19 = vmax.f32 %v662_v5, 0.0  ;;  %v939_v33 = vld [vmem:[#allocation2 + $0x30] sm:$0xf]  ;;  %v951_v47 = vld [vmem:[#allocation2 + $0x40] sm:$0xf] }
  0x30   : > { %v946_v22 = vsel %vm4171_vm9, %v798_v9, %v945_v57  ;;  %v916_v23 = vsel %vm4171_vm9, %v758_v10, %v915_v62  ;;  %v925_v25 = vsel %vm4076_vm3, %v767_v56, %v924_v7  ;;  %v491_v52 = vsel %vm4113_vm5, 0, %v490_v8  ;;  %v4230_v44 = vld [vmem:[%s4103_s25 + $0x30] sm:$0xff]   ;;  %v4244_v58 = vld [vmem:[%s4103_s25 + $0x28] sm:$0xff]   ;;  %v4882_v24 = vld [vmem:[%s5273_s6] ss:$0 sm:$0xff] }
  0x31   : > { %947 = vst [vmem:[#allocation2 + $0x38] sm:$0xf] %v946_v22  ;;  %917 = vst [vmem:[#allocation2 + $0x10] sm:$0xf] %v916_v23  ;;  %v928_v29 = vsel %vm4171_vm9, %v774_v17, %v927_v11  ;;  %v785_v30 = vshrl.u32 %v3804_v18, 16  ;;  %v788_v31 = vshll.u32 %v3804_v18, 16  ;;  %v3806_v32 = vpack.c.bf16 %v678_v19, %v678_v19 }
  0x32   : > { %926 = vst [vmem:[#allocation2 + $0x1c] sm:$0x1] %v925_v25  ;;  %492 = vst [vmem:[#allocation2 + $0x3c] sm:$0x1] %v491_v52  ;;  %v482_v34 = vsel %vm4113_vm5, 0, %v481_v12  ;;  %v476_v35 = vsel %vm4113_vm5, 0, %v475_v13  ;;  %v3842_v50 = vunpack.c.l.bf16 %v4184_v59  ;;  %v640_v56 = vmul.f32 %v3839_v15, %v4094_v14 }
  0x33   : > { %929 = vst [vmem:[#allocation2 + $0x20] sm:$0xf] %v928_v29  ;;  %v494_v36 = vsel %vm4113_vm5, 0, %v493_v20  ;;  %v488_v37 = vsel %vm4113_vm5, 0, %v487_v21  ;;  %v1014_v39 = vld [vmem:[#allocation2 + $0x28] sm:$0xf]  ;;  %v4241_v57 = vmul.f32 %v3843_v2, %v4094_v14  ;;  %v3851_v17 = vunpack.c.h.bf16 %v4230_v44 }
  0x34   : > { %v4225_v40 = vrot.slane %v785_v30, 7  ;;  %v801_v41 = vshrl.u32 %v3806_v32, 16  ;;  %v804_v42 = vshll.u32 %v3806_v32, 16  ;;  %483 = vst [vmem:[#allocation2 + $0x24] sm:$0x1] %v482_v34  ;;  %v435_v43 = vsel %vm4076_vm3, 0, %v434_v26  ;;  %1032 = vrot.lane.b32.xlu1 %v1014_v39, %s3981_s28 }
  0x35   : > { %477 = vst [vmem:[#allocation2 + $0x14] sm:$0x1] %v476_v35  ;;  %495 = vst [vmem:[#allocation2 + $0x44] sm:$0x1] %v494_v36  ;;  %v759_v45 = vrot.slane %v4188_v61, 4  ;;  %v775_v46 = vrot.slane %v4190_v63, 4  ;;  %v3847_v18 = vunpack.c.h.bf16 %v4244_v58  ;;  %v4260_v25 = vadd.f32 %v4121_v27, %v640_v56 }
  0x36   : > { %489 = vst [vmem:[#allocation2 + $0x34] sm:$0x1] %v488_v37  ;;  %v1065_v48 = vld [vmem:[#allocation2 + $0x28] sm:$0xf]  ;;  %436 = vst [vmem:[#allocation2 + $0x48] sm:$0x1] %v435_v43  ;;  %v790_v53 = vor.u32 %v788_v31, %v4225_v40 }
  0x37   : > { %v1229_v49 = vld [vmem:[#allocation2 + $0x28] sm:$0xf]  ;;  %v1013_v51 = vld [vmem:[#allocation2 + $0x18] sm:$0xf]  ;;  %v4237_v54 = vrot.slane %v801_v41, 7  ;;  %v791_v62 = vrot.slane %v4225_v40, 4 }
  0x38   : > { %v1066_v55 = vld [vmem:[#allocation2 + $0x2c] sm:$0x1]  ;;  %1030 = vrot.lane.b32.xlu0 %v1013_v51, %s3981_s28  ;;  %v1109_v0 = vshrl.u32 %v1065_v48, 16  ;;  %v1112_v3 = vshll.u32 %v1065_v48, 16  ;;  %v1063_v5 = vld [vmem:[#allocation2 + $0x18] sm:$0xf]  ;;  %v940_v6 = vsel %vm4171_vm9, %v790_v53, %v939_v33 }
  0x39   : > { %v1118_v4 = vshll.u32 %v1066_v55, 16  ;;  %v806_v7 = vor.u32 %v804_v42, %v4237_v54  ;;  %v1095_v8 = vshrl.u32 %v1063_v5, 16  ;;  %v1230_v9 = vld [vmem:[#allocation2 + $0x2c] sm:$0x1]  ;;  %v1270_v10 = vshrl.u32 %v1229_v49, 16 }
  0x3a   : > { %v1015_v11 = vld [vmem:[#allocation2 + $0x38] sm:$0xf]  ;;  %v1386_v12 = vld [vmem:[#allocation2 + $0x10] sm:$0xf]  ;;  %941 = vst [vmem:[#allocation2 + $0x30] sm:$0xf] %v940_v6 }
  0x3b   : > { %v1111_v13 = vrot.slane %v1109_v0, 4  ;;  %v1114_v15 = vrot.slane %v1112_v3, 5  ;;  %v1227_v2 = vld [vmem:[#allocation2 + $0x18] sm:$0xf]  ;;  %1034 = vrot.lane.b32.xlu1 %v1015_v11, %s3981_s28  ;;  %v1387_v19 = vld [vmem:[#allocation2 + $0x20] sm:$0xf]  ;;  %v952_v21 = vsel %vm4171_vm9, %v806_v7, %v951_v47 }
  0x3c   : > { %v807_v20 = vrot.slane %v4237_v54, 4  ;;  %v4257_v22 = vrot.slane %v1118_v4, 5  ;;  %v1064_v23 = vld [vmem:[#allocation2 + $0x1c] sm:$0x1]  ;;  %1402 = vrot.lane.b32.xlu0 %v1386_v12, %s3983_s30  ;;  %953 = vst [vmem:[#allocation2 + $0x40] sm:$0xf] %v952_v21 }
  0x3d   : > { %v1115_v52 = vor.u32 %v1114_v15, %v1111_v13  ;;  %v1097_v26 = vrot.slane %v1095_v8, 4  ;;  %v1098_v29 = vshll.u32 %v1063_v5, 16  ;;  %v1104_v30 = vshll.u32 %v1064_v23, 16  ;;  %v948_v31 = vld [vmem:[#allocation2 + $0x3c] sm:$0x1] }
  0x3e   : > { %v1272_v32 = vrot.slane %v1270_v10, 4  ;;  %v1273_v33 = vshll.u32 %v1229_v49, 16  ;;  %v1279_v34 = vshll.u32 %v1230_v9, 16  ;;  %v949_v35 = vsel %vm4076_vm3, %v799_v16, %v948_v31  ;;  %v1067_v36 = vld [vmem:[#allocation2 + $0x38] sm:$0xf] }
  0x3f   : > { %v1116_v37 = vrot.slane %v1115_v52, 4  ;;  %v1100_v39 = vrot.slane %v1098_v29, 5  ;;  %v1106_v41 = vrot.slane %v1104_v30, 5  ;;  %950 = vst [vmem:[#allocation2 + $0x3c] sm:$0x1] %v949_v35  ;;  %v1123_v42 = vshrl.u32 %v1067_v36, 16  ;;  %1404 = vrot.lane.b32.xlu1 %v1387_v19, %s3983_s30 }
  0x40   : > { %v1228_v43 = vld [vmem:[#allocation2 + $0x1c] sm:$0x1]  ;;  %v1275_v47 = vrot.slane %v1273_v33, 5  ;;  %v4268_v48 = vrot.slane %v1279_v34, 5  ;;  %v1126_v51 = vshll.u32 %v1067_v36, 16  ;;  %v1256_v49 = vshrl.u32 %v1227_v2, 16 }
  0x41   : > { %v1231_v53 = vld [vmem:[#allocation2 + $0x38] sm:$0xf]  ;;  %v1121_v60 = vsel %vm4165_vm8, %v1116_v37, %v4257_v22  ;;  %v1101_v16 = vor.u32 %v1100_v39, %v1097_v26  ;;  %v1125_v55 = vrot.slane %v1123_v42, 4  ;;  %v1259_v56 = vshll.u32 %v1227_v2, 16  ;;  %v930_v0 = vld [vmem:[#allocation2 + $0x24] sm:$0x1] }
  0x42   : > { %v1437_v3 = vld [vmem:[#allocation2 + $0x20] sm:$0xf]  ;;  %v1388_v4 = vld [vmem:[#allocation2 + $0x30] sm:$0xf]  ;;  %v1276_v5 = vor.u32 %v1275_v47, %v1272_v32  ;;  %v1128_v6 = vrot.slane %v1126_v51, 5  ;;  %v1258_v7 = vrot.slane %v1256_v49, 4  ;;  %v931_v2 = vsel %vm4076_vm3, %v775_v46, %v930_v0 }
  0x43   : > { %v1265_v8 = vshll.u32 %v1228_v43, 16  ;;  %1406 = vrot.lane.b32.xlu0 %v1388_v4, %s3983_s30  ;;  %v1102_v9 = vrot.slane %v1101_v16, 4  ;;  %v1261_v10 = vrot.slane %v1259_v56, 5  ;;  %v1284_v11 = vshrl.u32 %v1231_v53, 16  ;;  %v918_v13 = vld [vmem:[#allocation2 + $0x14] sm:$0x1] }
  0x44   : > { %v1287_v12 = vshll.u32 %v1231_v53, 16  ;;  %v1389_v15 = vld [vmem:[#allocation2 + $0x40] sm:$0xf]  ;;  %v1277_v19 = vrot.slane %v1276_v5, 4  ;;  %v1129_v21 = vor.u32 %v1128_v6, %v1125_v55  ;;  %932 = vst [vmem:[#allocation2 + $0x24] sm:$0x1] %v931_v2  ;;  %v919_v46 = vsel %vm4076_vm3, %v759_v45, %v918_v13 }
  0x45   : > { %v4274_v22 = vrot.slane %v1265_v8, 5  ;;  %1408 = vrot.lane.b32.xlu1 %v1389_v15, %s3983_s30  ;;  %v1107_v23 = vsel %vm4165_vm8, %v1102_v9, %v1106_v41  ;;  %v1262_v52 = vor.u32 %v1261_v10, %v1258_v7  ;;  %v1286_v26 = vrot.slane %v1284_v11, 4  ;;  %v1435_v30 = vld [vmem:[#allocation2 + $0x10] sm:$0xf]  ;;  %920 = vst [vmem:[#allocation2 + $0x14] sm:$0x1] %v919_v46 }
  0x46   : > { %v1289_v29 = vrot.slane %v1287_v12, 5  ;;  %v1282_v31 = vsel %vm4165_vm8, %v1277_v19, %v4268_v48  ;;  %v1068_v32 = vld [vmem:[#allocation2 + $0x3c] sm:$0x1]  ;;  %v1130_v33 = vrot.slane %v1129_v21, 4  ;;  %v1466_v34 = vshrl.u32 %v1437_v3, 16 }
  0x47   : > { %v1232_v63 = vld [vmem:[#allocation2 + $0x3c] sm:$0x1]  ;;  %1196 = vrot.lane.b32.xlu0 %v1121_v60, %s3982_s29  ;;  %v1132_v35 = vshll.u32 %v1068_v32, 16  ;;  %v1263_v36 = vrot.slane %v1262_v52, 4  ;;  %v954_v41 = vld [vmem:[#allocation2 + $0x44] sm:$0x1]  ;;  %v4299_v16 = vadd.f32 %v4121_v27, %v4241_v57 }
  0x48   : > { %v1290_v37 = vor.u32 %v1289_v29, %v1286_v26  ;;  %v1293_v39 = vshll.u32 %v1232_v63, 16  ;;  %v1468_v42 = vrot.slane %v1466_v34, 4  ;;  %v1469_v43 = vshll.u32 %v1437_v3, 16  ;;  %v1441_v51 = vld [vmem:[#allocation2 + $0x40] sm:$0xf] }
  0x49   : > { %v1452_v47 = vshrl.u32 %v1435_v30, 16  ;;  %v1455_v48 = vshll.u32 %v1435_v30, 16  ;;  %1194 = vrot.lane.b32.xlu1 %v1107_v23, %s3982_s29  ;;  %v1134_v49 = vrot.slane %v1132_v35, 5  ;;  %v1268_v61 = vsel %vm4165_vm8, %v1263_v36, %v4274_v22  ;;  %v942_v53 = vld [vmem:[#allocation2 + $0x34] sm:$0x1] }
  0x4a   : > { %v4295_v45 = vrot.slane %v1290_v37, 4  ;;  %v1439_v60 = vld [vmem:[#allocation2 + $0x30] sm:$0xf]  ;;  %v1471_v55 = vrot.slane %v1469_v43, 5  ;;  %v955_v3 = vsel %vm4076_vm3, %v807_v20, %v954_v41  ;;  %v1295_v5 = vrot.slane %v1293_v39, 5 }
  0x4b   : > { %v1454_v56 = vrot.slane %v1452_v47, 4  ;;  %v1457_v0 = vrot.slane %v1455_v48, 5  ;;  %1357 = vrot.lane.b32.xlu0 %v1282_v31, %s3982_s29  ;;  %v1135_v4 = vsel %vm4165_vm8, %v1130_v33, %v1134_v49  ;;  %956 = vst [vmem:[#allocation2 + $0x44] sm:$0x1] %v955_v3  ;;  %v1494_v6 = vshrl.u32 %v1441_v51, 16 }
  0x4c   : > { %v1497_v7 = vshll.u32 %v1441_v51, 16  ;;  %v1598_v8 = vld [vmem:[#allocation2 + $0x20] sm:$0xf]  ;;  %v1438_v57 = vld [vmem:[#allocation2 + $0x24] sm:$0x1]  ;;  %v1472_v9 = vor.u32 %v1471_v55, %v1468_v42  ;;  %v943_v54 = vsel %vm4076_vm3, %v791_v62, %v942_v53  ;;  %v1480_v11 = vshrl.u32 %v1439_v60, 16 }
  0x4d   : > { %v1458_v10 = vor.u32 %v1457_v0, %v1454_v56  ;;  %v1596_v20 = vld [vmem:[#allocation2 + $0x10] sm:$0xf]  ;;  %1198 = vrot.lane.b32.xlu1 %v1135_v4, %s3982_s29  ;;  %v1475_v12 = vshll.u32 %v1438_v57, 16  ;;  %v1496_v13 = vrot.slane %v1494_v6, 4  ;;  %944 = vst [vmem:[#allocation2 + $0x34] sm:$0x1] %v943_v54  ;;  %v1296_v46 = vsel %vm4165_vm8, %v4295_v45, %v1295_v5 }
  0x4e   : > { %v1499_v15 = vrot.slane %v1497_v7, 5  ;;  %v1483_v19 = vshll.u32 %v1439_v60, 16  ;;  %v1599_v21 = vld [vmem:[#allocation2 + $0x24] sm:$0x1]  ;;  %v1473_v22 = vrot.slane %v1472_v9, 4  ;;  %v1482_v52 = vrot.slane %v1480_v11, 4 }
  0x4f   : > { %v1436_v2 = vld [vmem:[#allocation2 + $0x14] sm:$0x1]  ;;  %v1459_v23 = vrot.slane %v1458_v10, 4  ;;  %v1627_v26 = vshrl.u32 %v1598_v8, 16  ;;  %v1477_v29 = vrot.slane %v1475_v12, 5  ;;  %v1630_v32 = vshll.u32 %v1598_v8, 16 }
  0x50   : > { %v1461_v40 = vshll.u32 %v1436_v2, 16  ;;  %v1500_v30 = vor.u32 %v1499_v15, %v1496_v13  ;;  %v1485_v31 = vrot.slane %v1483_v19, 5  ;;  %v1636_v33 = vshll.u32 %v1599_v21, 16  ;;  %v1597_v63 = vld [vmem:[#allocation2 + $0x14] sm:$0x1] }
  0x51   : > { %v1629_v62 = vrot.slane %v1627_v26, 4  ;;  %v1613_v34 = vshrl.u32 %v1596_v20, 16  ;;  %1355 = vrot.lane.b32.xlu1 %v1268_v61, %s3982_s29  ;;  %v1478_v35 = vsel %vm4165_vm8, %v1473_v22, %v1477_v29  ;;  %v1602_v39 = vld [vmem:[#allocation2 + $0x40] sm:$0xf]  ;;  %v1632_v43 = vrot.slane %v1630_v32, 5 }
  0x52   : > { %v1463_v36 = vrot.slane %v1461_v40, 5  ;;  %v1486_v37 = vor.u32 %v1485_v31, %v1482_v52  ;;  %v1442_v41 = vld [vmem:[#allocation2 + $0x44] sm:$0x1]  ;;  %v1501_v42 = vrot.slane %v1500_v30, 4  ;;  %v1616_v48 = vshll.u32 %v1596_v20, 16 }
  0x53   : > { %v1615_v47 = vrot.slane %v1613_v34, 4  ;;  %v1600_v51 = vld [vmem:[#allocation2 + $0x30] sm:$0xf]  ;;  %v1503_v61 = vshll.u32 %v1442_v41, 16  ;;  %v4321_v53 = vrot.slane %v1636_v33, 5  ;;  %v1622_v60 = vshll.u32 %v1597_v63, 16 }
  0x54   : > { %v1464_v49 = vsel %vm4165_vm8, %v1459_v23, %v1463_v36  ;;  %v1603_v45 = vld [vmem:[#allocation2 + $0x44] sm:$0x1]  ;;  %v1440_v55 = vld [vmem:[#allocation2 + $0x34] sm:$0x1]  ;;  %v1633_v56 = vor.u32 %v1632_v43, %v1629_v62  ;;  %v1618_v0 = vrot.slane %v1616_v48, 5  ;;  %v1655_v3 = vshrl.u32 %v1602_v39, 16 }
  0x55   : > { %1563 = vrot.lane.b32.xlu0 %v1464_v49, %s3984_s12  ;;  %v1658_v4 = vshll.u32 %v1602_v39, 16  ;;  %1359 = vrot.lane.b32.xlu1 %v1296_v46, %s3982_s29  ;;  %v1505_v5 = vrot.slane %v1503_v61, 5  ;;  %v1487_v6 = vrot.slane %v1486_v37, 4  ;;  %v1489_v7 = vshll.u32 %v1440_v55, 16  ;;  %v1601_v11 = vld [vmem:[#allocation2 + $0x34] sm:$0x1] }
  0x56   : > { %v1664_v8 = vshll.u32 %v1603_v45, 16  ;;  %v1634_v57 = vrot.slane %v1633_v56, 4  ;;  %v1619_v9 = vor.u32 %v1618_v0, %v1615_v47  ;;  %v1657_v10 = vrot.slane %v1655_v3, 4  ;;  %v1809_v15 = vld [vmem:[#allocation2 + $0x28] sm:$0xf] }
  0x57   : > { %v1660_v54 = vrot.slane %v1658_v4, 5  ;;  %v1491_v20 = vrot.slane %v1489_v7, 5  ;;  %v1624_v12 = vrot.slane %v1622_v60, 5  ;;  %v1641_v13 = vshrl.u32 %v1600_v51, 16  ;;  %v1807_v30 = vld [vmem:[#allocation2 + $0x18] sm:$0xf] }
  0x58   : > { %v4328_v19 = vmul.f32 %v3851_v17, %v4094_v14  ;;  %v1506_v21 = vsel %vm4165_vm8, %v1501_v42, %v1505_v5  ;;  %v1620_v22 = vrot.slane %v1619_v9, 4  ;;  %v1644_v23 = vshll.u32 %v1600_v51, 16  ;;  %v1810_v62 = vld [vmem:[#allocation2 + $0x2c] sm:$0x1]  ;;  %v1811_v49 = vld [vmem:[#allocation2 + $0x38] sm:$0xf] }
  0x59   : > { %v1661_v2 = vor.u32 %v1660_v54, %v1657_v10  ;;  %1565 = vrot.lane.b32.xlu1 %v1478_v35, %s3984_s12  ;;  %v1492_v52 = vsel %vm4165_vm8, %v1487_v6, %v1491_v20  ;;  %v1643_v26 = vrot.slane %v1641_v13, 4  ;;  %v1650_v29 = vshll.u32 %v1601_v11, 16  ;;  %v1808_v35 = vld [vmem:[#allocation2 + $0x1c] sm:$0x1]  ;;  %v496_v42 = vld [vmem:[#allocation2 + $0x4c] sm:$0x1] }
  0x5a   : > { %v679_v40 = vmax.f32 %v4260_v25, 0.0  ;;  %1567 = vrot.lane.b32.xlu0 %v1492_v52, %s3984_s12  ;;  %v1639_v14 = vsel %vm4165_vm8, %v1634_v57, %v4321_v53  ;;  %v4340_v17 = vrot.slane %v1664_v8, 5  ;;  %v1646_v31 = vrot.slane %v1644_v23, 5  ;;  %v440_v25 = vld [vmem:[#allocation2 + $0x58] sm:$0x1] }
  0x5b   : > { %v1838_v32 = vshrl.u32 %v1809_v15, 16  ;;  %v1625_v33 = vsel %vm4165_vm8, %v1620_v22, %v1624_v12  ;;  %v1662_v63 = vrot.slane %v1661_v2, 4  ;;  %v1841_v46 = vshll.u32 %v1809_v15, 16  ;;  %v957_v53 = vld [vmem:[#allocation2 + $0x48] sm:$0xf] }
  0x5c   : > { %v3807_v34 = vpack.c.bf16 %v679_v40, %v679_v40  ;;  %v1647_v36 = vor.u32 %v1646_v31, %v1643_v26  ;;  %v1652_v37 = vrot.slane %v1650_v29, 5  ;;  %v1824_v41 = vshrl.u32 %v1807_v30, 16  ;;  %v1812_v5 = vld [vmem:[#allocation2 + $0x3c] sm:$0x1]  ;;  %v1970_v9 = vld [vmem:[#allocation2 + $0x28] sm:$0xf] }
  0x5d   : > { %v1840_v39 = vrot.slane %v1838_v32, 4  ;;  %1569 = vrot.lane.b32.xlu1 %v1506_v21, %s3984_s12  ;;  %v1843_v48 = vrot.slane %v1841_v46, 5  ;;  %v1847_v51 = vshll.u32 %v1810_v62, 16  ;;  %v1827_v45 = vshll.u32 %v1807_v30, 16  ;;  %v1758_v10 = vld [vmem:[#allocation2 + $0x18] sm:$0xf] }
  0x5e   : > { %v809_v43 = vshrl.u32 %v3807_v34, 16  ;;  %v812_v47 = vshll.u32 %v3807_v34, 16  ;;  %1724 = vrot.lane.b32.xlu0 %v1625_v33, %s3984_s12  ;;  %v1648_v61 = vrot.slane %v1647_v36, 4  ;;  %v1826_v60 = vrot.slane %v1824_v41, 4  ;;  %v1968_v12 = vld [vmem:[#allocation2 + $0x18] sm:$0xf] }
  0x5f   : > { %v1833_v55 = vshll.u32 %v1808_v35, 16  ;;  %v1667_v56 = vsel %vm4165_vm8, %v1662_v63, %v4340_v17  ;;  %v441_v3 = vsel %vm4076_vm3, 0, %v440_v25  ;;  %v681_v4 = vmax.f32 %v4299_v16, 0.0  ;;  %v1971_v2 = vld [vmem:[#allocation2 + $0x2c] sm:$0x1] }
  0x60   : > { %v4349_v0 = vrot.slane %v809_v43, 7  ;;  %v1653_v6 = vsel %vm4165_vm8, %v1648_v61, %v1652_v37  ;;  %v1844_v7 = vor.u32 %v1843_v48, %v1840_v39  ;;  %v1829_v8 = vrot.slane %v1827_v45, 5  ;;  %442 = vst [vmem:[#allocation2 + $0x58] sm:$0x1] %v441_v3  ;;  %v1759_v40 = vld [vmem:[#allocation2 + $0x28] sm:$0xf] }
  0x61   : > { %v497_v57 = vsel %vm4113_vm5, 0, %v496_v42  ;;  %1726 = vrot.lane.b32.xlu1 %v1639_v14, %s3984_s12  ;;  %v4360_v11 = vrot.slane %v1847_v51, 5  ;;  %v4362_v20 = vrot.slane %v1833_v55, 5  ;;  %v3809_v16 = vpack.c.bf16 %v681_v4, %v681_v4  ;;  %v4371_v62 = vld [vmem:[#allocation2 + $0x1c] sm:$0x1] }
  0x62   : > { %v814_v54 = vor.u32 %v812_v47, %v4349_v0  ;;  %498 = vst [vmem:[#allocation2 + $0x4c] sm:$0x1] %v497_v57  ;;  %1728 = vrot.lane.b32.xlu0 %v1653_v6, %s3984_s12  ;;  %v815_v13 = vrot.slane %v4349_v0, 4  ;;  %v1830_v15 = vor.u32 %v1829_v8, %v1826_v60  ;;  %v1852_v21 = vshrl.u32 %v1811_v49, 16  ;;  %v1760_v32 = vld [vmem:[#allocation2 + $0x38] sm:$0xf] }
  0x63   : > { %v1855_v22 = vshll.u32 %v1811_v49, 16  ;;  %v825_v52 = vshrl.u32 %v3809_v16, 16  ;;  %v828_v26 = vshll.u32 %v3809_v16, 16  ;;  %v3846_v29 = vunpack.c.l.bf16 %v4244_v58  ;;  %v452_v35 = vld [vmem:[#allocation2 + $0x78] sm:$0x1] }
  0x64   : > { %v958_v23 = vsel %vm4171_vm9, %v814_v54, %v957_v53  ;;  %v4369_v30 = vrot.slane %v1844_v7, 4  ;;  %v1854_v14 = vrot.slane %v1852_v21, 4  ;;  %v1861_v31 = vshll.u32 %v1812_v5, 16  ;;  %v446_v45 = vld [vmem:[#allocation2 + $0x68] sm:$0x1]  ;;  %v4418_v21 = vld [vmem:[%s4103_s25 + $0x38] sm:$0xff]  }
  0x65   : > { %959 = vst [vmem:[#allocation2 + $0x48] sm:$0xf] %v958_v23  ;;  %v1857_v17 = vrot.slane %v1855_v22, 5  ;;  %1730 = vrot.lane.b32.xlu1 %v1667_v56, %s3984_s12  ;;  %v1831_v33 = vrot.slane %v1830_v15, 4  ;;  %v4374_v63 = vrot.slane %v825_v52, 7  ;;  %v1999_v34 = vshrl.u32 %v1970_v9, 16 }
  0x66   : > { %v2002_v46 = vshll.u32 %v1970_v9, 16  ;;  %1774 = vrot.lane.b32.xlu0 %v1758_v10, %s3985_s13  ;;  %v1985_v36 = vshrl.u32 %v1968_v12, 16  ;;  %v1988_v37 = vshll.u32 %v1968_v12, 16  ;;  %v669_v39 = vadd.f32 %v4121_v27, %v4328_v19  ;;  %v502_v3 = vld [vmem:[#allocation2 + $0x5c] sm:$0x1] }
  0x67   : > { %v1858_v25 = vor.u32 %v1857_v17, %v1854_v14  ;;  %v830_v41 = vor.u32 %v828_v26, %v4374_v63  ;;  %v969_v42 = vld [vmem:[#allocation2 + $0x58] sm:$0xf]  ;;  %v2001_v43 = vrot.slane %v1999_v34, 4  ;;  %v2008_v48 = vshll.u32 %v1971_v2, 16 }
  0x68   : > { %v2004_v47 = vrot.slane %v2002_v46, 5  ;;  %v4382_v61 = vrot.slane %v1861_v31, 5  ;;  %v1987_v53 = vrot.slane %v1985_v36, 4  ;;  %v1990_v60 = vrot.slane %v1988_v37, 5 }
  0x69   : > { %v960_v51 = vld [vmem:[#allocation2 + $0x4c] sm:$0x1]  ;;  %v4380_v49 = vrot.slane %v1858_v25, 4  ;;  %1776 = vrot.lane.b32.xlu1 %v1759_v40, %s3985_s13  ;;  %v970_v55 = vsel %vm4171_vm9, %v830_v41, %v969_v42  ;;  %v1994_v0 = vshll.u32 %v4371_v62, 16  ;;  %v1850_v4 = vsel %vm4165_vm8, %v4369_v30, %v4360_v11  ;;  %v4406_v11 = vld [vmem:[%s5268_s1] ss:$0 sm:$0xff] }
  0x6a   : > { %v961_v19 = vsel %vm4076_vm3, %v815_v13, %v960_v51  ;;  %v2005_v56 = vor.u32 %v2004_v47, %v2001_v43  ;;  %1778 = vrot.lane.b32.xlu0 %v1760_v32, %s3985_s13  ;;  %971 = vst [vmem:[#allocation2 + $0x58] sm:$0xf] %v970_v55  ;;  %v1991_v5 = vor.u32 %v1990_v60, %v1987_v53  ;;  %v453_v6 = vsel %vm4076_vm3, 0, %v452_v35 }
  0x6b   : > { %962 = vst [vmem:[#allocation2 + $0x4c] sm:$0x1] %v961_v19  ;;  %v685_v7 = vmax.f32 %v669_v39, 0.0  ;;  %v1836_v57 = vsel %vm4165_vm8, %v1831_v33, %v4362_v20  ;;  %v831_v9 = vrot.slane %v4374_v63, 4  ;;  %v4401_v54 = vrot.slane %v2008_v48, 5 }
  0x6c   : > { %v1761_v8 = vld [vmem:[#allocation2 + $0x48] sm:$0xf]  ;;  %454 = vst [vmem:[#allocation2 + $0x78] sm:$0x1] %v453_v6  ;;  %v644_v16 = vmul.f32 %v4406_v11, %v3847_v18  ;;  %v1864_v20 = vsel %vm4165_vm8, %v4380_v49, %v4382_v61  ;;  %v4415_v15 = vrot.slane %v2005_v56, 4  ;;  %v4421_v2 = vrot.slane %v1991_v5, 4 }
  0x6d   : > { %v1813_v10 = vld [vmem:[#allocation2 + $0x48] sm:$0xf]  ;;  %1780 = vrot.lane.b32.xlu1 %v1761_v8, %s3985_s13  ;;  %v3813_v23 = vpack.c.bf16 %v685_v7, %v685_v7  ;;  %v447_v18 = vsel %vm4076_vm3, 0, %v446_v45  ;;  %v4429_v17 = vrot.slane %v1994_v0, 5  ;;  %v503_v31 = vsel %vm4113_vm5, 0, %v502_v3 }
  0x6e   : > { %v1866_v12 = vshrl.u32 %v1813_v10, 16  ;;  %v1869_v13 = vshll.u32 %v1813_v10, 16  ;;  %v1016_v22 = vld [vmem:[#allocation2 + $0x48] sm:$0xf]  ;;  %v667_v52 = vadd.f32 %v4121_v27, %v644_v16  ;;  %1935 = vrot.lane.b32.xlu0 %v1836_v57, %s3986_s16  ;;  %448 = vst [vmem:[#allocation2 + $0x68] sm:$0x1] %v447_v18  ;;  %v643_v27 = vmul.f32 %v4406_v11, %v3846_v29 }
  0x6f   : > { %v1069_v26 = vld [vmem:[#allocation2 + $0x48] sm:$0xf]  ;;  %v857_v62 = vshrl.u32 %v3813_v23, 16  ;;  %v860_v32 = vshll.u32 %v3813_v23, 16  ;;  %504 = vst [vmem:[#allocation2 + $0x5c] sm:$0x1] %v503_v31  ;;  %v4439_v25 = vmul.f32 %v4406_v11, %v3842_v50  ;;  %v3854_v58 = vunpack.c.l.bf16 %v4418_v21 }
  0x70   : > { %v4426_v40 = vld [vmem:[#allocation2 + $0x48] sm:$0xf]  ;;  %v1868_v30 = vrot.slane %v1866_v12, 4  ;;  %v1871_v14 = vrot.slane %v1869_v13, 5  ;;  %v683_v33 = vmax.f32 %v667_v52, 0.0  ;;  %v1137_v46 = vshrl.u32 %v1069_v26, 16 }
  0x71   : > { %v1140_v35 = vshll.u32 %v1069_v26, 16  ;;  %1937 = vrot.lane.b32.xlu1 %v1850_v4, %s3986_s16  ;;  %v1017_v36 = vld [vmem:[#allocation2 + $0x58] sm:$0xf]  ;;  %v4442_v39 = vrot.slane %v857_v62, 7  ;;  %v2027_v42 = vshrl.u32 %v4426_v40, 16  ;;  %v2011_v59 = vsel %vm4165_vm8, %v4415_v15, %v4401_v54 }
  0x72   : > { %v1872_v34 = vor.u32 %v1871_v14, %v1868_v30  ;;  %v1814_v37 = vld [vmem:[#allocation2 + $0x4c] sm:$0x1]  ;;  %v3811_v41 = vpack.c.bf16 %v683_v33, %v683_v33  ;;  %1036 = vrot.lane.b32.xlu0 %v1016_v22, %s3981_s28  ;;  %v1997_v50 = vsel %vm4165_vm8, %v4421_v2, %v4429_v17  ;;  %v1071_v48 = vld [vmem:[#allocation2 + $0x58] sm:$0xf]  ;;  %v2030_v60 = vshll.u32 %v4426_v40, 16 }
  0x73   : > { %v1875_v43 = vshll.u32 %v1814_v37, 16  ;;  %v993_v47 = vld [vmem:[#allocation2 + $0x78] sm:$0xf]  ;;  %v862_v51 = vor.u32 %v860_v32, %v4442_v39  ;;  %v1070_v53 = vld [vmem:[#allocation2 + $0x4c] sm:$0x1]  ;;  %v1151_v55 = vshrl.u32 %v1071_v48, 16  ;;  %v647_v63 = vmul.f32 %v4406_v11, %v3854_v58 }
  0x74   : > { %v1873_v29 = vrot.slane %v1872_v34, 4  ;;  %v841_v49 = vshrl.u32 %v3811_v41, 16  ;;  %v844_v61 = vshll.u32 %v3811_v41, 16  ;;  %v1154_v19 = vshll.u32 %v1071_v48, 16  ;;  %v1975_v0 = vld [vmem:[#allocation2 + $0x4c] sm:$0x1] }
  0x75   : > { %v1877_v45 = vrot.slane %v1875_v43, 5  ;;  %v1139_v56 = vrot.slane %v1137_v46, 4  ;;  %v1972_v3 = vld [vmem:[#allocation2 + $0x38] sm:$0xf]  ;;  %1038 = vrot.lane.b32.xlu1 %v1017_v36, %s3981_s28  ;;  %v994_v4 = vsel %vm4171_vm9, %v862_v51, %v993_v47  ;;  %v981_v6 = vld [vmem:[#allocation2 + $0x68] sm:$0xf] }
  0x76   : > { %v4460_v5 = vrot.slane %v841_v49, 7  ;;  %v1142_v7 = vrot.slane %v1140_v35, 5  ;;  %v1146_v8 = vshll.u32 %v1070_v53, 16  ;;  %1939 = vrot.lane.b32.xlu0 %v1864_v20, %s3986_s16  ;;  %995 = vst [vmem:[#allocation2 + $0x78] sm:$0xf] %v994_v4  ;;  %v1153_v54 = vrot.slane %v1151_v55, 4 }
  0x77   : > { %v1878_v57 = vsel %vm4165_vm8, %v1873_v29, %v1877_v45  ;;  %v972_v10 = vld [vmem:[#allocation2 + $0x5c] sm:$0x1]  ;;  %v1156_v16 = vrot.slane %v1154_v19, 5  ;;  %v2029_v12 = vrot.slane %v2027_v42, 4  ;;  %v4473_v23 = vld [vmem:[%s5269_s2] ss:$0 sm:$0xff] }
  0x78   : > { %v846_v13 = vor.u32 %v844_v61, %v4460_v5  ;;  %v973_v15 = vsel %vm4076_vm3, %v831_v9, %v972_v10  ;;  %v1143_v22 = vor.u32 %v1142_v7, %v1139_v56  ;;  %v1973_v2 = vld [vmem:[#allocation2 + $0x3c] sm:$0x1]  ;;  %v4476_v20 = vadd.f32 %v4473_v23, %v643_v27  ;;  %v508_v30 = vld [vmem:[#allocation2 + $0x6c] sm:$0x1]  ;;  %v1235_v62 = vld [vmem:[#allocation2 + $0x58] sm:$0xf] }
  0x79   : > { %974 = vst [vmem:[#allocation2 + $0x5c] sm:$0x1] %v973_v15  ;;  %v1157_v18 = vor.u32 %v1156_v16, %v1153_v54  ;;  %v2032_v52 = vrot.slane %v2030_v60, 5  ;;  %v2036_v26 = vshll.u32 %v1975_v0, 16  ;;  %v514_v40 = vld [vmem:[#allocation2 + $0x7c] sm:$0x1]  ;;  %1941 = vrot.lane.b32.xlu1 %v1878_v57, %s3986_s16  ;;  %v4508_v4 = vadd.f32 %v4473_v23, %v4439_v25 }
  0x7a   : > { %v863_v9 = vrot.slane %v4442_v39, 4  ;;  %v982_v14 = vsel %vm4171_vm9, %v846_v13, %v981_v6  ;;  %v2013_v17 = vshrl.u32 %v1972_v3, 16  ;;  %v2016_v31 = vshll.u32 %v1972_v3, 16  ;;  %2096 = vrot.lane.b32.xlu0 %v1997_v50, %s3986_s16  ;;  %v1233_v46 = vld [vmem:[#allocation2 + $0x48] sm:$0xf] }
  0x7b   : > { %v847_v32 = vrot.slane %v4460_v5, 4  ;;  %983 = vst [vmem:[#allocation2 + $0x68] sm:$0xf] %v982_v14  ;;  %v4485_v33 = vrot.slane %v1146_v8, 5  ;;  %v2033_v27 = vor.u32 %v2032_v52, %v2029_v12  ;;  %v2022_v34 = vshll.u32 %v1973_v2, 16 }
  0x7c   : > { %v4487_v35 = vrot.slane %v1143_v22, 4  ;;  %v2015_v36 = vrot.slane %v2013_v17, 4  ;;  %v2018_v37 = vrot.slane %v2016_v31, 5  ;;  %v515_v41 = vsel %vm4113_vm5, 0, %v514_v40  ;;  %v1234_v10 = vld [vmem:[#allocation2 + $0x4c] sm:$0x1] }
  0x7d   : > { %v1158_v42 = vrot.slane %v1157_v18, 4  ;;  %v4491_v58 = vrot.slane %v2036_v26, 5  ;;  %516 = vst [vmem:[#allocation2 + $0x7c] sm:$0x1] %v515_v41  ;;  %v509_v29 = vsel %vm4113_vm5, 0, %v508_v30  ;;  %v1312_v43 = vshrl.u32 %v1235_v62, 16  ;;  %2098 = vrot.lane.b32.xlu1 %v2011_v59, %s3986_s16 }
  0x7e   : > { %v4496_v50 = vrot.slane %v2033_v27, 4  ;;  %v2019_v47 = vor.u32 %v2018_v37, %v2015_v36  ;;  %v1075_v48 = vld [vmem:[#allocation2 + $0x78] sm:$0xf]  ;;  %510 = vst [vmem:[#allocation2 + $0x6c] sm:$0x1] %v509_v29  ;;  %v1315_v51 = vshll.u32 %v1235_v62, 16  ;;  %v1149_v56 = vsel %vm4165_vm8, %v4487_v35, %v4485_v33 }
  0x7f   : > { %v1298_v49 = vshrl.u32 %v1233_v46, 16  ;;  %v1019_v61 = vld [vmem:[#allocation2 + $0x78] sm:$0xf]  ;;  %v4498_v53 = vrot.slane %v2022_v34, 5  ;;  %v1179_v60 = vshrl.u32 %v1075_v48, 16  ;;  %v1182_v45 = vshll.u32 %v1075_v48, 16 }
  0x80   : > { %v1314_v55 = vrot.slane %v1312_v43, 4  ;;  %v1072_v19 = vld [vmem:[#allocation2 + $0x5c] sm:$0x1]  ;;  %v4504_v59 = vrot.slane %v2019_v47, 4  ;;  %v1317_v3 = vrot.slane %v1315_v51, 5  ;;  %v2039_v16 = vsel %vm4165_vm8, %v4496_v50, %v4491_v58 }
  0x81   : > { %v1236_v0 = vld [vmem:[#allocation2 + $0x5c] sm:$0x1]  ;;  %v1160_v6 = vshll.u32 %v1072_v19, 16  ;;  %v1181_v7 = vrot.slane %v1179_v60, 4  ;;  %v1184_v8 = vrot.slane %v1182_v45, 5  ;;  %1042 = vrot.lane.b32.xlu1 %v1019_v61, %s3981_s28  ;;  %v1300_v13 = vrot.slane %v1298_v49, 4 }
  0x82   : > { %v1321_v57 = vshll.u32 %v1236_v0, 16  ;;  %v1018_v54 = vld [vmem:[#allocation2 + $0x68] sm:$0xf]  ;;  %v1301_v15 = vshll.u32 %v1233_v46, 16  ;;  %v4516_v22 = vadd.f32 %v4473_v23, %v647_v63  ;;  %v1318_v52 = vor.u32 %v1317_v3, %v1314_v55  ;;  %v1239_v26 = vld [vmem:[#allocation2 + $0x78] sm:$0xf] }
  0x83   : > { %v1073_v12 = vld [vmem:[#allocation2 + $0x68] sm:$0xf]  ;;  %1040 = vrot.lane.b32.xlu0 %v1018_v54, %s3981_s28  ;;  %v1162_v25 = vrot.slane %v1160_v6, 5  ;;  %v1307_v14 = vshll.u32 %v1234_v10, 16  ;;  %v3850_v31 = vunpack.c.l.bf16 %v4230_v44  ;;  %v3855_v62 = vunpack.c.h.bf16 %v4418_v21  ;;  %v443_v35 = vld [vmem:[#allocation2 + $0x60] sm:$0x1] }
  0x84   : > { %v1165_v2 = vshrl.u32 %v1073_v12, 16  ;;  %v1168_v18 = vshll.u32 %v1073_v12, 16  ;;  %v996_v40 = vld [vmem:[#allocation2 + $0x7c] sm:$0x1]  ;;  %v1303_v30 = vrot.slane %v1301_v15, 5  ;;  %v2025_v63 = vsel %vm4165_vm8, %v4504_v59, %v4498_v53  ;;  %s3987_s28 = smov 48  }
  0x85   : > { %v1237_v17 = vld [vmem:[#allocation2 + $0x68] sm:$0xf]  ;;  %v1163_v33 = vsel %vm4165_vm8, %v1158_v42, %v1162_v25  ;;  %v997_v27 = vsel %vm4076_vm3, %v863_v9, %v996_v40  ;;  %v984_v34 = vld [vmem:[#allocation2 + $0x6c] sm:$0x1]  ;;  %v1185_v44 = vor.u32 %v1184_v8, %v1181_v7  ;;  %v4537_v39 = vrot.slane %v1318_v52, 4 }
  0x86   : > { %v1167_v46 = vrot.slane %v1165_v2, 4  ;;  %1202 = vrot.lane.b32.xlu1 %v1163_v33, %s3982_s29  ;;  %998 = vst [vmem:[#allocation2 + $0x7c] sm:$0x1] %v997_v27  ;;  %v985_v36 = vsel %vm4076_vm3, %v847_v32, %v984_v34  ;;  %v1170_v37 = vrot.slane %v1168_v18, 5  ;;  %v1304_v41 = vor.u32 %v1303_v30, %v1300_v13  ;;  %v437_v29 = vld [vmem:[#allocation2 + $0x50] sm:$0x1] }
  0x87   : > { %1200 = vrot.lane.b32.xlu0 %v1149_v56, %s3982_s29  ;;  %986 = vst [vmem:[#allocation2 + $0x6c] sm:$0x1] %v985_v36  ;;  %v1340_v9 = vshrl.u32 %v1239_v26, 16  ;;  %v1343_v42 = vshll.u32 %v1239_v26, 16  ;;  %v1326_v58 = vshrl.u32 %v1237_v17, 16  ;;  %v4539_v43 = vrot.slane %v1321_v57, 5 }
  0x88   : > { %v4541_v50 = vrot.slane %v1307_v14, 5  ;;  %v1329_v47 = vshll.u32 %v1237_v17, 16  ;;  %v444_v5 = vsel %vm4076_vm3, 0, %v443_v35  ;;  %v455_v32 = vld [vmem:[#allocation2 + $0x80] sm:$0x1]  ;;  %v1171_v48 = vor.u32 %v1170_v37, %v1167_v46 }
  0x89   : > { %v1342_v51 = vrot.slane %v1340_v9, 4  ;;  %v1345_v49 = vrot.slane %v1343_v42, 5  ;;  %445 = vst [vmem:[#allocation2 + $0x60] sm:$0x1] %v444_v5  ;;  %v682_v61 = vmax.f32 %v4476_v20, 0.0  ;;  %v4547_v60 = vrot.slane %v1304_v41, 4 }
  0x8a   : > { %v449_v53 = vld [vmem:[#allocation2 + $0x70] sm:$0x1]  ;;  %2102 = vrot.lane.b32.xlu1 %v2039_v16, %s3986_s16  ;;  %v1328_v45 = vrot.slane %v1326_v58, 4  ;;  %v1331_v55 = vrot.slane %v1329_v47, 5  ;;  %v438_v19 = vsel %vm4076_vm3, 0, %v437_v29  ;;  %v1186_v56 = vrot.slane %v1185_v44, 4 }
  0x8b   : > { %2100 = vrot.lane.b32.xlu0 %v2025_v63, %s3986_s16  ;;  %v3810_v59 = vpack.c.bf16 %v682_v61, %v682_v61  ;;  %439 = vst [vmem:[#allocation2 + $0x50] sm:$0x1] %v438_v19  ;;  %v680_v0 = vmax.f32 %v4508_v4, 0.0  ;;  %v456_v20 = vsel %vm4076_vm3, 0, %v455_v32  ;;  %v1324_v3 = vsel %vm4165_vm8, %v4537_v39, %v4539_v43  ;;  %v505_v63 = vld [vmem:[#allocation2 + $0x64] sm:$0x1] }
  0x8c   : > { %457 = vst [vmem:[#allocation2 + $0x80] sm:$0x1] %v456_v20  ;;  %v686_v6 = vmax.f32 %v4516_v22, 0.0  ;;  %v450_v7 = vsel %vm4076_vm3, 0, %v449_v53  ;;  %v645_v8 = vmul.f32 %v4406_v11, %v3850_v31  ;;  %v1172_v10 = vrot.slane %v1171_v48, 4 }
  0x8d   : > { %v1076_v57 = vld [vmem:[#allocation2 + $0x7c] sm:$0x1]  ;;  %v1346_v4 = vor.u32 %v1345_v49, %v1342_v51  ;;  %v833_v16 = vshrl.u32 %v3810_v59, 16  ;;  %v3808_v12 = vpack.c.bf16 %v680_v0, %v680_v0  ;;  %451 = vst [vmem:[#allocation2 + $0x70] sm:$0x1] %v450_v7  ;;  %v1310_v25 = vsel %vm4165_vm8, %v4547_v60, %v4541_v50 }
  0x8e   : > { %v1240_v54 = vld [vmem:[#allocation2 + $0x7c] sm:$0x1]  ;;  %v1188_v13 = vshll.u32 %v1076_v57, 16  ;;  %v1074_v15 = vld [vmem:[#allocation2 + $0x6c] sm:$0x1]  ;;  %v1332_v18 = vor.u32 %v1331_v55, %v1328_v45  ;;  %v3814_v40 = vpack.c.bf16 %v686_v6, %v686_v6  ;;  %v668_v30 = vadd.f32 %v4473_v23, %v645_v8 }
  0x8f   : > { %v1349_v22 = vshll.u32 %v1240_v54, 16  ;;  %v1238_v2 = vld [vmem:[#allocation2 + $0x6c] sm:$0x1]  ;;  %v1174_v52 = vshll.u32 %v1074_v15, 16  ;;  %v4567_v26 = vrot.slane %v833_v16, 7  ;;  %v836_v31 = vshll.u32 %v3810_v59, 16 }
  0x90   : > { %v1190_v14 = vrot.slane %v1188_v13, 5  ;;  %v1335_v17 = vshll.u32 %v1238_v2, 16  ;;  %v817_v33 = vshrl.u32 %v3808_v12, 16  ;;  %v499_v27 = vld [vmem:[#allocation2 + $0x54] sm:$0x1]  ;;  %v1347_v46 = vrot.slane %v1346_v4, 4 }
  0x91   : > { %v1176_v34 = vrot.slane %v1174_v52, 5  ;;  %v975_v35 = vld [vmem:[#allocation2 + $0x60] sm:$0xf]  ;;  %v820_v44 = vshll.u32 %v3808_v12, 16  ;;  %v648_v36 = vmul.f32 %v4406_v11, %v3855_v62  ;;  %v1333_v41 = vrot.slane %v1332_v18, 4 }
  0x92   : > { %v1191_v37 = vsel %vm4165_vm8, %v1186_v56, %v1190_v14  ;;  %v838_v9 = vor.u32 %v836_v31, %v4567_v26  ;;  %v4576_v42 = vrot.slane %v817_v33, 7  ;;  %v517_v58 = vld [vmem:[#allocation2 + $0x84] sm:$0x1]  ;;  %v511_v29 = vld [vmem:[#allocation2 + $0x74] sm:$0x1]  ;;  %v1351_v47 = vrot.slane %v1349_v22, 5 }
  0x93   : > { %1206 = vrot.lane.b32.xlu1 %v1191_v37, %s3982_s29  ;;  %v1177_v50 = vsel %vm4165_vm8, %v1172_v10, %v1176_v34  ;;  %v963_v5 = vld [vmem:[#allocation2 + $0x50] sm:$0xf]  ;;  %v865_v21 = vshrl.u32 %v3814_v40, 16  ;;  %v868_v32 = vshll.u32 %v3814_v40, 16  ;;  %v1337_v11 = vrot.slane %v1335_v17, 5  ;;  %v1029_v20 = vpop.permute.xlu0 %1028 }
  0x94   : > { %1204 = vrot.lane.b32.xlu0 %v1177_v50, %s3982_s29  ;;  %v976_v62 = vsel %vm4171_vm9, %v838_v9, %v975_v35  ;;  %v822_v48 = vor.u32 %v820_v44, %v4576_v42  ;;  %v684_v51 = vmax.f32 %v668_v30, 0.0  ;;  %v506_v61 = vsel %vm4113_vm5, 0, %v505_v63  ;;  %v458_v60 = vld [vmem:[#allocation2 + $0x88] sm:$0x1]  ;;  %v999_v55 = vld [vmem:[#allocation2 + $0x80] sm:$0xf] }
  0x95   : > { %977 = vst [vmem:[#allocation2 + $0x60] sm:$0xf] %v976_v62  ;;  %v4585_v49 = vrot.slane %v865_v21, 7  ;;  %v500_v53 = vsel %vm4113_vm5, 0, %v499_v27  ;;  %507 = vst [vmem:[#allocation2 + $0x64] sm:$0x1] %v506_v61  ;;  %v1352_v6 = vsel %vm4165_vm8, %v1347_v46, %v1351_v47  ;;  %v1338_v43 = vsel %vm4165_vm8, %v1333_v41, %v1337_v11 }
  0x96   : > { %v964_v45 = vsel %vm4171_vm9, %v822_v48, %v963_v5  ;;  %v3812_v19 = vpack.c.bf16 %v684_v51, %v684_v51  ;;  %501 = vst [vmem:[#allocation2 + $0x54] sm:$0x1] %v500_v53  ;;  %v518_v56 = vsel %vm4113_vm5, 0, %v517_v58  ;;  %v512_v59 = vsel %vm4113_vm5, 0, %v511_v29  ;;  %1053 = vst.msk [vmem:[#allocation3] sm:$0xf] %vm1052_vm10, %v1029_v20 }
  0x97   : > { %1363 = vrot.lane.b32.xlu1 %v1324_v3, %s3982_s29  ;;  %965 = vst [vmem:[#allocation2 + $0x50] sm:$0xf] %v964_v45  ;;  %v870_v0 = vor.u32 %v868_v32, %v4585_v49  ;;  %519 = vst [vmem:[#allocation2 + $0x84] sm:$0x1] %v518_v56  ;;  %v459_v57 = vsel %vm4076_vm3, 0, %v458_v60  ;;  %v671_v10 = vadd.f32 %v4473_v23, %v648_v36  ;;  %v839_v54 = vrot.slane %v4567_v26, 4 }
  0x98   : > { %513 = vst [vmem:[#allocation2 + $0x74] sm:$0x1] %v512_v59  ;;  %1361 = vrot.lane.b32.xlu0 %v1310_v25, %s3982_s29  ;;  %v849_v7 = vshrl.u32 %v3812_v19, 16  ;;  %v852_v8 = vshll.u32 %v3812_v19, 16  ;;  %v4610_v39 = vld [vmem:[#allocation2 + $0x68] sm:$0xf] }
  0x99   : > { %v1000_v3 = vsel %vm4171_vm9, %v870_v0, %v999_v55  ;;  %460 = vst [vmem:[#allocation2 + $0x88] sm:$0x1] %v459_v57  ;;  %v823_v4 = vrot.slane %v4576_v42, 4  ;;  %v871_v16 = vrot.slane %v4585_v49, 4  ;;  %v987_v13 = vld [vmem:[#allocation2 + $0x70] sm:$0xf] }
  0x9a   : > { %1001 = vst [vmem:[#allocation2 + $0x80] sm:$0xf] %v1000_v3  ;;  %v851_v12 = vrot.slane %v849_v7, 7  ;;  %vm1216_vm11 = vcmask 60448   ;;  %vm1377_vm12 = vcmask 93248   ;;  %v687_v15 = vmax.f32 %v671_v10, 0.0 }
  0x9b   : > { %1367 = vrot.lane.b32.xlu1 %v1352_v6, %s3982_s29  ;;  %v1894_v25 = vshrl.u32 %v4610_v39, 16  ;;  %v1897_v52 = vshll.u32 %v4610_v39, 16  ;;  %vm1426_vm13 = vcmask 126048   ;;  %vm2197_vm14 = vcmask 1041408  }
  0x9c   : > { %1365 = vrot.lane.b32.xlu0 %v1338_v43, %s3982_s29  ;;  %v1391_v22 = vld [vmem:[#allocation2 + $0x60] sm:$0xf]  ;;  %v854_v23 = vor.u32 %v852_v8, %v851_v12  ;;  %v855_v2 = vrot.slane %v851_v12, 4  ;;  %v978_v26 = vld [vmem:[#allocation2 + $0x64] sm:$0x1]  ;;  %v4624_v17 = vpack.c.bf16 %v687_v15, %v687_v15  ;;  %vm1587_vm15 = vcmask 158848  }
  0x9d   : > { %v1445_v18 = vld [vmem:[#allocation2 + $0x60] sm:$0xf]  ;;  %v966_v14 = vld [vmem:[#allocation2 + $0x54] sm:$0x1]  ;;  %v979_v63 = vsel %vm4076_vm3, %v839_v54, %v978_v26  ;;  %v1193_v58 = vpop.permute.xlu0 %1192  ;;  %vm1748_vm1 = vcmask 191648   ;;  %vm1798_vm2 = vcmask 224448  }
  0x9e   : > { %v1522_v40 = vshrl.u32 %v1445_v18, 16  ;;  %v1525_v30 = vshll.u32 %v1445_v18, 16  ;;  %v1390_v31 = vld [vmem:[#allocation2 + $0x50] sm:$0xf]  ;;  %v988_v33 = vsel %vm4171_vm9, %v854_v23, %v987_v13  ;;  %v967_v27 = vsel %vm4076_vm3, %v823_v4, %v966_v14  ;;  %v1002_v46 = vld [vmem:[#allocation2 + $0x84] sm:$0x1] }
  0x9f   : > { %v1443_v34 = vld [vmem:[#allocation2 + $0x50] sm:$0xf]  ;;  %1412 = vrot.lane.b32.xlu1 %v1391_v22, %s3983_s30  ;;  %989 = vst [vmem:[#allocation2 + $0x70] sm:$0xf] %v988_v33  ;;  %980 = vst [vmem:[#allocation2 + $0x64] sm:$0x1] %v979_v63  ;;  %v1003_v9 = vsel %vm4076_vm3, %v871_v16, %v1002_v46 }
  0xa0   : > { %v1524_v35 = vrot.slane %v1522_v40, 4  ;;  %v1527_v44 = vrot.slane %v1525_v30, 5  ;;  %968 = vst [vmem:[#allocation2 + $0x54] sm:$0x1] %v967_v27  ;;  %v1508_v36 = vshrl.u32 %v1443_v34, 16  ;;  %v1511_v37 = vshll.u32 %v1443_v34, 16  ;;  %1410 = vrot.lane.b32.xlu0 %v1390_v31, %s3983_s30 }
  0xa1   : > { %v990_v41 = vld [vmem:[#allocation2 + $0x74] sm:$0x1]  ;;  %v1606_v29 = vld [vmem:[#allocation2 + $0x60] sm:$0xf]  ;;  %v1604_v50 = vld [vmem:[#allocation2 + $0x50] sm:$0xf]  ;;  %v1354_v7 = vpop.permute.xlu0 %1353 }
  0xa2   : > { %v991_v42 = vsel %vm4076_vm3, %v855_v2, %v990_v41  ;;  %v873_v47 = vshrl.u32 %v4624_v17, 16  ;;  %v876_v5 = vshll.u32 %v4624_v17, 16  ;;  %v1393_v21 = vld [vmem:[#allocation2 + $0x80] sm:$0xf]  ;;  %v1528_v32 = vor.u32 %v1527_v44, %v1524_v35  ;;  %1004 = vst [vmem:[#allocation2 + $0x84] sm:$0x1] %v1003_v9 }
  0xa3   : > { %v1510_v11 = vrot.slane %v1508_v36, 4  ;;  %v1513_v62 = vrot.slane %v1511_v37, 5  ;;  %v1449_v48 = vld [vmem:[#allocation2 + $0x80] sm:$0xf]  ;;  %992 = vst [vmem:[#allocation2 + $0x74] sm:$0x1] %v991_v42  ;;  %1416 = vrot.lane.b32.xlu1 %v1393_v21, %s3983_s30 }
  0xa4   : > { %1217 = vst.msk [vmem:[#allocation3] sm:$0xf] %vm1216_vm11, %v1193_v58  ;;  %v1550_v51 = vshrl.u32 %v1449_v48, 16  ;;  %v1553_v49 = vshll.u32 %v1449_v48, 16  ;;  %v1683_v61 = vshrl.u32 %v1606_v29, 16  ;;  %v1686_v53 = vshll.u32 %v1606_v29, 16 }
  0xa5   : > { %v4641_v60 = vld [vmem:[#allocation2 + $0x80] sm:$0xf]  ;;  %v1529_v45 = vrot.slane %v1528_v32, 4  ;;  %v1514_v55 = vor.u32 %v1513_v62, %v1510_v11  ;;  %v1669_v19 = vshrl.u32 %v1604_v50, 16  ;;  %v1672_v56 = vshll.u32 %v1604_v50, 16  ;;  %s3988_s29 = smov 56  }
  0xa6   : > { %v1552_v59 = vrot.slane %v1550_v51, 4  ;;  %v1555_v0 = vrot.slane %v1553_v49, 5  ;;  %v1685_v20 = vrot.slane %v1683_v61, 4  ;;  %v1688_v6 = vrot.slane %v1686_v53, 5  ;;  %1378 = vst.msk [vmem:[#allocation3] sm:$0xf] %vm1377_vm12, %v1354_v7  ;;  %v1033_v44 = vpop.permute.xlu1 %1032 }
  0xa7   : > { %v1515_v8 = vrot.slane %v1514_v55, 4  ;;  %v1671_v57 = vrot.slane %v1669_v19, 4  ;;  %v1674_v43 = vrot.slane %v1672_v56, 5  ;;  %v1711_v3 = vshrl.u32 %v4641_v60, 16  ;;  %v1392_v10 = vld [vmem:[#allocation2 + $0x70] sm:$0xf] }
  0xa8   : > { %v1446_v54 = vld [vmem:[#allocation2 + $0x64] sm:$0x1]  ;;  %v1444_v4 = vld [vmem:[#allocation2 + $0x54] sm:$0x1]  ;;  %v1556_v16 = vor.u32 %v1555_v0, %v1552_v59  ;;  %1414 = vrot.lane.b32.xlu0 %v1392_v10, %s3983_s30  ;;  %v1447_v15 = vld [vmem:[#allocation2 + $0x70] sm:$0xf]  ;;  %v1689_v40 = vor.u32 %v1688_v6, %v1685_v20 }
  0xa9   : > { %v1531_v12 = vshll.u32 %v1446_v54, 16  ;;  %v1517_v13 = vshll.u32 %v1444_v4, 16  ;;  %v1607_v22 = vld [vmem:[#allocation2 + $0x64] sm:$0x1]  ;;  %v1536_v26 = vshrl.u32 %v1447_v15, 16  ;;  %v1539_v33 = vshll.u32 %v1447_v15, 16 }
  0xaa   : > { %v1450_v23 = vld [vmem:[#allocation2 + $0x84] sm:$0x1]  ;;  %v1557_v2 = vrot.slane %v1556_v16, 4  ;;  %v1448_v18 = vld [vmem:[#allocation2 + $0x74] sm:$0x1]  ;;  %v1692_v46 = vshll.u32 %v1607_v22, 16  ;;  %v1675_v35 = vor.u32 %v1674_v43, %v1671_v57  ;;  %v1031_v62 = vpop.permute.xlu0 %1030 }
  0xab   : > { %v1533_v30 = vrot.slane %v1531_v12, 5  ;;  %v1519_v14 = vrot.slane %v1517_v13, 5  ;;  %v1559_v31 = vshll.u32 %v1450_v23, 16  ;;  %v1605_v63 = vld [vmem:[#allocation2 + $0x54] sm:$0x1]  ;;  %v1538_v27 = vrot.slane %v1536_v26, 4 }
  0xac   : > { %v1545_v34 = vshll.u32 %v1448_v18, 16  ;;  %v1541_v9 = vrot.slane %v1539_v33, 5  ;;  %1055 = vst.msk [vmem:[#allocation3 + $0x8] sm:$0xf] %vm1052_vm10, %v1033_v44  ;;  %v1611_v42 = vld [vmem:[#allocation2 + $0x84] sm:$0x1] }
  0xad   : > { %v1534_v36 = vsel %vm4165_vm8, %v1529_v45, %v1533_v30  ;;  %v1520_v37 = vsel %vm4165_vm8, %v1515_v8, %v1519_v14  ;;  %v1561_v41 = vrot.slane %v1559_v31, 5  ;;  %v1608_v58 = vld [vmem:[#allocation2 + $0x70] sm:$0xf]  ;;  %v1690_v50 = vrot.slane %v1689_v40, 4  ;;  %v1609_v11 = vld [vmem:[#allocation2 + $0x74] sm:$0x1]  ;;  %v1035_v7 = vpop.permute.xlu1 %1034 }
  0xae   : > { %1573 = vrot.lane.b32.xlu1 %v1534_v36, %s3984_s12  ;;  %1571 = vrot.lane.b32.xlu0 %v1520_v37, %s3984_s12  ;;  %v1547_v29 = vrot.slane %v1545_v34, 5  ;;  %v1694_v21 = vrot.slane %v1692_v46, 5  ;;  %v1678_v32 = vshll.u32 %v1605_v63, 16  ;;  %v1542_v51 = vor.u32 %v1541_v9, %v1538_v27  ;;  %1054 = vst.msk [vmem:[#allocation3 + $0x4] sm:$0xf] %vm1052_vm10, %v1031_v62 }
  0xaf   : > { %v1562_v48 = vsel %vm4165_vm8, %v1557_v2, %v1561_v41  ;;  %v1713_v49 = vrot.slane %v1711_v3, 4  ;;  %v1714_v61 = vshll.u32 %v4641_v60, 16  ;;  %v1815_v53 = vld [vmem:[#allocation2 + $0x58] sm:$0xf]  ;;  %v1676_v45 = vrot.slane %v1675_v35, 4  ;;  %v1403_v60 = vpop.permute.xlu0 %1402 }
  0xb0   : > { %v1680_v55 = vrot.slane %v1678_v32, 5  ;;  %v1720_v19 = vshll.u32 %v1611_v42, 16  ;;  %v1697_v56 = vshrl.u32 %v1608_v58, 16  ;;  %v1543_v59 = vrot.slane %v1542_v51, 4  ;;  %1056 = vst.msk [vmem:[#allocation3 + $0xc] sm:$0xf] %vm1052_vm10, %v1035_v7 }
  0xb1   : > { %v1716_v0 = vrot.slane %v1714_v61, 5  ;;  %v1700_v20 = vshll.u32 %v1608_v58, 16  ;;  %v1706_v6 = vshll.u32 %v1609_v11, 16  ;;  %v1695_v8 = vsel %vm4165_vm8, %v1690_v50, %v1694_v21  ;;  %1427 = vst.msk [vmem:[#allocation3] sm:$0xf] %vm1426_vm13, %v1403_v60  ;;  %v4679_v14 = vpop.permute.xlu1 %1404 }
  0xb2   : > { %1577 = vrot.lane.b32.xlu1 %v1562_v48, %s3984_s12  ;;  %v1699_v57 = vrot.slane %v1697_v56, 4  ;;  %v4664_v43 = vrot.slane %v873_v47, 7  ;;  %v1880_v3 = vshrl.u32 %v1815_v53, 16  ;;  %v1548_v10 = vsel %vm4165_vm8, %v1543_v59, %v1547_v29  ;;  %v1005_v12 = vld [vmem:[#allocation2 + $0x88] sm:$0xf] }
  0xb3   : > { %v1717_v54 = vor.u32 %v1716_v0, %v1713_v49  ;;  %v1722_v4 = vrot.slane %v1720_v19, 5  ;;  %v1702_v16 = vrot.slane %v1700_v20, 5  ;;  %v520_v13 = vld [vmem:[#allocation2 + $0x8c] sm:$0x1]  ;;  %1575 = vrot.lane.b32.xlu0 %v1548_v10, %s3984_s12  ;;  %v1896_v47 = vrot.slane %v1894_v25, 4 }
  0xb4   : > { %v878_v15 = vor.u32 %v876_v5, %v4664_v43  ;;  %v1818_v22 = vld [vmem:[#allocation2 + $0x6c] sm:$0x1]  ;;  %v1899_v23 = vrot.slane %v1897_v52, 5  ;;  %v1883_v2 = vshll.u32 %v1815_v53, 16  ;;  %v1681_v18 = vsel %vm4165_vm8, %v1676_v45, %v1680_v55  ;;  %v1819_v31 = vld [vmem:[#allocation2 + $0x78] sm:$0xf] }
  0xb5   : > { %v1718_v26 = vrot.slane %v1717_v54, 4  ;;  %v1703_v40 = vor.u32 %v1702_v16, %v1699_v57  ;;  %v1708_v30 = vrot.slane %v1706_v6, 5  ;;  %v1816_v5 = vld [vmem:[#allocation2 + $0x5c] sm:$0x1]  ;;  %v521_v39 = vsel %vm4113_vm5, 0, %v520_v13  ;;  %v1407_v63 = vpop.permute.xlu0 %1406 }
  0xb6   : > { %1734 = vrot.lane.b32.xlu1 %v1695_v8, %s3984_s12  ;;  %v1006_v17 = vsel %vm4171_vm9, %v878_v15, %v1005_v12  ;;  %v1903_v33 = vshll.u32 %v1818_v22, 16  ;;  %522 = vst [vmem:[#allocation2 + $0x8c] sm:$0x1] %v521_v39  ;;  %v1882_v27 = vrot.slane %v1880_v3, 4  ;;  %v1885_v34 = vrot.slane %v1883_v2, 5 }
  0xb7   : > { %v1723_v25 = vsel %vm4165_vm8, %v1718_v26, %v1722_v4  ;;  %v1704_v52 = vrot.slane %v1703_v40, 4  ;;  %1007 = vst [vmem:[#allocation2 + $0x88] sm:$0xf] %v1006_v17  ;;  %1732 = vrot.lane.b32.xlu0 %v1681_v18, %s3984_s12  ;;  %v1908_v46 = vshrl.u32 %v1819_v31, 16  ;;  %v1911_v35 = vshll.u32 %v1819_v31, 16  ;;  %v4692_v9 = vpop.permute.xlu1 %1408 }
  0xb8   : > { %v1900_v36 = vor.u32 %v1899_v23, %v1896_v47  ;;  %v1889_v37 = vshll.u32 %v1816_v5, 16  ;;  %v1976_v41 = vld [vmem:[#allocation2 + $0x58] sm:$0xf]  ;;  %v1820_v42 = vld [vmem:[#allocation2 + $0x7c] sm:$0x1]  ;;  %v879_v29 = vrot.slane %v4664_v43, 4  ;;  %v1886_v11 = vor.u32 %v1885_v34, %v1882_v27 }
  0xb9   : > { %v1709_v44 = vsel %vm4165_vm8, %v1704_v52, %v1708_v30  ;;  %v1763_v58 = vld [vmem:[#allocation2 + $0x68] sm:$0xf]  ;;  %v4695_v50 = vrot.slane %v1903_v33, 5  ;;  %v1762_v32 = vld [vmem:[#allocation2 + $0x58] sm:$0xf]  ;;  %v1197_v62 = vpop.permute.xlu0 %1196  ;;  %v1910_v48 = vrot.slane %v1908_v46, 4 }
  0xba   : > { %1738 = vrot.lane.b32.xlu1 %v1723_v25, %s3984_s12  ;;  %v1978_v21 = vld [vmem:[#allocation2 + $0x68] sm:$0xf]  ;;  %v1913_v51 = vrot.slane %v1911_v35, 5  ;;  %v2041_v49 = vshrl.u32 %v1976_v41, 16  ;;  %v1901_v61 = vrot.slane %v1900_v36, 4  ;;  %v4698_v53 = vrot.slane %v1889_v37, 5 }
  0xbb   : > { %1736 = vrot.lane.b32.xlu0 %v1709_v44, %s3984_s12  ;;  %1219 = vst.msk [vmem:[#allocation3 + $0x8] sm:$0xf] %vm1216_vm11, %v1197_v62  ;;  %v1917_v45 = vshll.u32 %v1820_v42, 16  ;;  %v2044_v55 = vshll.u32 %v1976_v41, 16  ;;  %v1980_v19 = vld [vmem:[#allocation2 + $0x78] sm:$0xf]  ;;  %v1195_v56 = vpop.permute.xlu1 %1194 }
  0xbc   : > { %v2055_v20 = vshrl.u32 %v1978_v21, 16  ;;  %v2058_v6 = vshll.u32 %v1978_v21, 16  ;;  %v1764_v8 = vld [vmem:[#allocation2 + $0x78] sm:$0xf]  ;;  %1218 = vst.msk [vmem:[#allocation3 + $0x4] sm:$0xf] %vm1216_vm11, %v1195_v56  ;;  %v1914_v54 = vor.u32 %v1913_v51, %v1910_v48  ;;  %v1906_v17 = vsel %vm4165_vm8, %v1901_v61, %v4695_v50 }
  0xbd   : > { %v1008_v59 = vld [vmem:[#allocation2 + $0x8c] sm:$0x1]  ;;  %v1887_v10 = vrot.slane %v1886_v11, 4  ;;  %v1358_v4 = vpop.permute.xlu0 %1357  ;;  %v2043_v12 = vrot.slane %v2041_v49, 4  ;;  %v2069_v13 = vshrl.u32 %v1980_v19, 16  ;;  %v2046_v23 = vrot.slane %v2044_v55, 5 }
  0xbe   : > { %1784 = vrot.lane.b32.xlu1 %v1763_v58, %s3985_s13  ;;  %v1821_v0 = vld [vmem:[#allocation2 + $0x88] sm:$0xf]  ;;  %v1009_v57 = vsel %vm4076_vm3, %v879_v29, %v1008_v59  ;;  %v1979_v16 = vld [vmem:[#allocation2 + $0x6c] sm:$0x1]  ;;  %1380 = vst.msk [vmem:[#allocation3 + $0x8] sm:$0xf] %vm1377_vm12, %v1358_v4 }
  0xbf   : > { %v1765_v7 = vld [vmem:[#allocation2 + $0x88] sm:$0xf]  ;;  %v1922_v60 = vshrl.u32 %v1821_v0, 16  ;;  %v1925_v43 = vshll.u32 %v1821_v0, 16  ;;  %1782 = vrot.lane.b32.xlu0 %v1762_v32, %s3985_s13  ;;  %1010 = vst [vmem:[#allocation2 + $0x8c] sm:$0x1] %v1009_v57  ;;  %v1199_v18 = vpop.permute.xlu1 %1198  ;;  %v1892_v25 = vsel %vm4165_vm8, %v1887_v10, %v4698_v53  ;;  %v2047_v34 = vor.u32 %v2046_v23, %v2043_v12 }
  0xc0   : > { %v1982_v3 = vld [vmem:[#allocation2 + $0x88] sm:$0xf]  ;;  %v1977_v47 = vld [vmem:[#allocation2 + $0x5c] sm:$0x1]  ;;  %v2072_v2 = vshll.u32 %v1980_v19, 16  ;;  %v2057_v26 = vrot.slane %v2055_v20, 4 }
  0xc1   : > { %v1924_v15 = vrot.slane %v1922_v60, 4  ;;  %v1927_v22 = vrot.slane %v1925_v43, 5  ;;  %1429 = vst.msk [vmem:[#allocation3 + $0x8] sm:$0xf] %vm1426_vm13, %v1407_v63  ;;  %v2060_v40 = vrot.slane %v2058_v6, 5  ;;  %v2083_v30 = vshrl.u32 %v1982_v3, 16 }
  0xc2   : > { %1788 = vrot.lane.b32.xlu1 %v1765_v7, %s3985_s13  ;;  %v2086_v31 = vshll.u32 %v1982_v3, 16  ;;  %1220 = vst.msk [vmem:[#allocation3 + $0xc] sm:$0xf] %vm1216_vm11, %v1199_v18  ;;  %v2064_v5 = vshll.u32 %v1979_v16, 16  ;;  %v1919_v33 = vrot.slane %v1917_v45, 5  ;;  %v2050_v63 = vshll.u32 %v1977_v47, 16 }
  0xc3   : > { %v3950_v39 = vld [vmem:[%s5270_s3 + $0x10] ss:$0 sps:$4 sm:$0x33]   ;;  %1786 = vrot.lane.b32.xlu0 %v1764_v8, %s3985_s13  ;;  %v1928_v52 = vor.u32 %v1927_v22, %v1924_v15  ;;  %v1915_v27 = vrot.slane %v1914_v54, 4  ;;  %v1981_v46 = vld [vmem:[#allocation2 + $0x7c] sm:$0x1]  ;;  %v2061_v37 = vor.u32 %v2060_v40, %v2057_v26  ;;  %v1356_v41 = vpop.permute.xlu1 %1355 }
  0xc4   : > { %v2071_v35 = vrot.slane %v2069_v13, 4  ;;  %v2074_v44 = vrot.slane %v2072_v2, 5  ;;  %v3952_v36 = vld [vmem:[%s5270_s3 + $0x8] sm:$0xff]   ;;  %v2085_v42 = vrot.slane %v2083_v30, 4  ;;  %v2088_v58 = vrot.slane %v2086_v31, 5  ;;  %3926 = vmatprep.subr.msk.bf16.mxu0 %vm2197_vm14, %v3950_v39  ;;  %v3953_v55 = vld [vmem:[%s5270_s3] sm:$0xff]  }
  0xc5   : > { %1379 = vst.msk [vmem:[#allocation3 + $0x4] sm:$0xf] %vm1377_vm12, %v1356_v41  ;;  %v2199_v21 = vsel %vm2197_vm14, %v3950_v39, 0  ;;  %v1929_v32 = vrot.slane %v1928_v52, 4  ;;  %v2066_v62 = vrot.slane %v2064_v5, 5  ;;  %v2078_v48 = vshll.u32 %v1981_v46, 16 }
  0xc6   : > { %1945 = vrot.lane.b32.xlu1 %v1906_v17, %s3986_s16  ;;  %v1822_v29 = vld [vmem:[#allocation2 + $0x8c] sm:$0x1]  ;;  %1428 = vst.msk [vmem:[#allocation3 + $0x4] sm:$0xf] %vm1426_vm13, %v4679_v14  ;;  %3885 = vmatpush3.bf16.msra.mxu0 %v2199_v21  ;;  %v1920_v51 = vsel %vm4165_vm8, %v1915_v27, %v1919_v33  ;;  %v2048_v49 = vrot.slane %v2047_v34, 4  ;;  %v2052_v61 = vrot.slane %v2050_v63, 5  ;;  %v2075_v53 = vor.u32 %v2074_v44, %v2071_v35 }
  0xc7   : > { %v1983_v50 = vld [vmem:[#allocation2 + $0x8c] sm:$0x1]  ;;  %1943 = vrot.lane.b32.xlu0 %v1892_v25, %s3986_s16  ;;  %v1931_v11 = vshll.u32 %v1822_v29, 16  ;;  %v1564_v45 = vpop.permute.xlu0 %1563  ;;  %3886 = vmatprep.subr.bf16.mxu0 %v3952_v36  ;;  %v2062_v56 = vrot.slane %v2061_v37, 4  ;;  %v2089_v59 = vor.u32 %v2088_v58, %v2085_v42  ;;  %v1360_v20 = vpop.permute.xlu1 %1359  ;;  %v2080_v8 = vrot.slane %v2078_v48, 5 }
  0xc8   : > { %v2092_v0 = vshll.u32 %v1983_v50, 16  ;;  %1588 = vst.msk [vmem:[#allocation3] sm:$0xf] %vm1587_vm15, %v1564_v45  ;;  %v2053_v6 = vsel %vm4165_vm8, %v2048_v49, %v2052_v61  ;;  %v2076_v7 = vrot.slane %v2075_v53, 4  ;;  %v543_v54 = vld [vmem:[#allocation4 + $0x18] sm:$0x1] }
  0xc9   : > { %v1933_v19 = vrot.slane %v1931_v11, 5  ;;  %1381 = vst.msk [vmem:[#allocation3 + $0xc] sm:$0xf] %vm1377_vm12, %v1360_v20  ;;  %v2067_v57 = vsel %vm4165_vm8, %v2062_v56, %v2066_v62  ;;  %v2090_v60 = vrot.slane %v2089_v59, 4  ;;  %v573_v4 = vld [vmem:[#allocation4 + $0x1c] sm:$0x1] }
  0xca   : > { %1430 = vst.msk [vmem:[#allocation3 + $0xc] sm:$0xf] %vm1426_vm13, %v4692_v9  ;;  %3887 = vmatpush3.bf16.msra.mxu0 %v3952_v36  ;;  %v2094_v43 = vrot.slane %v2092_v0, 5  ;;  %v2081_v9 = vsel %vm4165_vm8, %v2076_v7, %v2080_v8  ;;  %v544_v13 = vsel %vm4076_vm3, 0, %v543_v54  ;;  %v574_v15 = vsel %vm4113_vm5, 0, %v573_v4 }
  0xcb   : > { %v1934_v14 = vsel %vm4165_vm8, %v1929_v32, %v1933_v19  ;;  %1947 = vrot.lane.b32.xlu0 %v1920_v51, %s3986_s16  ;;  %3888 = vmatprep.subr.bf16.mxu0 %v3953_v55  ;;  %v1566_v3 = vpop.permute.xlu1 %1565  ;;  %545 = vst [vmem:[#allocation4 + $0x18] sm:$0x1] %v544_v13  ;;  %575 = vst [vmem:[#allocation4 + $0x1c] sm:$0x1] %v574_v15  ;;  %vm1959_vm4 = vcmask 257248   ;;  %vm2120_vm6 = vcmask 290048  }
  0xcc   : > { %1949 = vrot.lane.b32.xlu1 %v1934_v14, %s3986_s16  ;;  %1589 = vst.msk [vmem:[#allocation3 + $0x4] sm:$0xf] %vm1587_vm15, %v1566_v3  ;;  %v1568_v10 = vpop.permute.xlu0 %1567  ;;  %v2095_v16 = vsel %vm4165_vm8, %v2090_v60, %v2094_v43  ;;  %vm2184_vm7 = vcmask 293888   ;;  %v561_v13 = vld [vmem:[#allocation4 + $0x48] sm:$0x1] }
  0xcd   : > { %1590 = vst.msk [vmem:[#allocation3 + $0x8] sm:$0xf] %vm1587_vm15, %v1568_v10  ;;  %v564_v15 = vld [vmem:[#allocation4 + $0x4] sm:$0x1] }
  0xce   : > { %3889 = vmatpush3.bf16.msra.mxu0 %v3953_v55 }
  0xcf   : > { %2104 = vrot.lane.b32.xlu0 %v2053_v6, %s3986_s16  ;;  %v1570_v12 = vpop.permute.xlu1 %1569 }
  0xd0   : > { %2106 = vrot.lane.b32.xlu1 %v2067_v57, %s3986_s16  ;;  %1591 = vst.msk [vmem:[#allocation3 + $0xc] sm:$0xf] %vm1587_vm15, %v1570_v12  ;;  %v1725_v22 = vpop.permute.xlu0 %1724 }
  0xd1   : > { %1749 = vst.msk [vmem:[#allocation3] sm:$0xf] %vm1748_vm1, %v1725_v22  ;;  %v562_v22 = vsel %vm4076_vm3, 0, %v561_v13  ;;  %v582_v13 = vld [vmem:[#allocation4 + $0x34] sm:$0x1] }
  0xd2   : > { %563 = vst [vmem:[#allocation4 + $0x48] sm:$0x1] %v562_v22  ;;  %v583_v22 = vsel %vm4113_vm5, 0, %v582_v13 }
  0xd3   : > { %2108 = vrot.lane.b32.xlu0 %v2081_v9, %s3986_s16  ;;  %v1727_v47 = vpop.permute.xlu1 %1726  ;;  %584 = vst [vmem:[#allocation4 + $0x34] sm:$0x1] %v583_v22 }
  0xd4   : > { %2110 = vrot.lane.b32.xlu1 %v2095_v16, %s3986_s16  ;;  %1750 = vst.msk [vmem:[#allocation3 + $0x4] sm:$0xf] %vm1748_vm1, %v1727_v47  ;;  %v1729_v23 = vpop.permute.xlu0 %1728  ;;  %v534_v16 = vld [vmem:[#allocation4] sm:$0x1]  ;;  %v565_v47 = vsel %vm4113_vm5, 0, %v564_v15 }
  0xd5   : > { %1751 = vst.msk [vmem:[#allocation3 + $0x8] sm:$0xf] %vm1748_vm1, %v1729_v23  ;;  %v535_v12 = vsel %vm4076_vm3, 0, %v534_v16  ;;  %566 = vst [vmem:[#allocation4 + $0x4] sm:$0x1] %v565_v47 }
  0xd6   : > { %536 = vst [vmem:[#allocation4] sm:$0x1] %v535_v12  ;;  %v537_v23 = vld [vmem:[#allocation4 + $0x8] sm:$0x1]  ;;  %v552_v12 = vld [vmem:[#allocation4 + $0x30] sm:$0x1] }
  0xd7   : > { %v1731_v2 = vpop.permute.xlu1 %1730  ;;  %v553_v15 = vsel %vm4076_vm3, 0, %v552_v12  ;;  %v4871_v47 = vld [vmem:[%s5271_s4] ss:$0 sm:$0xff] }
  0xd8   : > { %1752 = vst.msk [vmem:[#allocation3 + $0xc] sm:$0xf] %vm1748_vm1, %v1731_v2  ;;  %v1775_v18 = vpop.permute.xlu0 %1774  ;;  %v567_v2 = vld [vmem:[#allocation4 + $0xc] sm:$0x1]  ;;  %554 = vst [vmem:[#allocation4 + $0x30] sm:$0x1] %v553_v15 }
  0xd9   : > { %1799 = vst.msk [vmem:[#allocation3] sm:$0xf] %vm1798_vm2, %v1775_v18  ;;  %v538_v18 = vsel %vm4076_vm3, 0, %v537_v23 }
  0xda   : > { %539 = vst [vmem:[#allocation4 + $0x8] sm:$0x1] %v538_v18 }
  0xdb   : > { %v1777_v26 = vpop.permute.xlu1 %1776 }
  0xdc   : > { %1800 = vst.msk [vmem:[#allocation3 + $0x4] sm:$0xf] %vm1798_vm2, %v1777_v26  ;;  %v1779_v40 = vpop.permute.xlu0 %1778  ;;  %v568_v26 = vsel %vm4113_vm5, 0, %v567_v2  ;;  %v4876_v2 = vld [vmem:[%s5272_s5] ss:$0 sm:$0xff] }
  0xdd   : > { %1801 = vst.msk [vmem:[#allocation3 + $0x8] sm:$0xf] %vm1798_vm2, %v1779_v40  ;;  %v591_v40 = vld [vmem:[#allocation4 + $0x4c] sm:$0x1]  ;;  %569 = vst [vmem:[#allocation4 + $0xc] sm:$0x1] %v568_v26 }
  0xdf   : > { %v1781_v30 = vpop.permute.xlu1 %1780 }
  0xe0   : > { %1802 = vst.msk [vmem:[#allocation3 + $0xc] sm:$0xf] %vm1798_vm2, %v1781_v30  ;;  %v1936_v31 = vpop.permute.xlu0 %1935  ;;  %v546_v30 = vld [vmem:[#allocation4 + $0x20] sm:$0x1] }
  0xe1   : > { %1960 = vst.msk [vmem:[#allocation3] sm:$0xf] %vm1959_vm4, %v1936_v31  ;;  %v576_v31 = vld [vmem:[#allocation4 + $0x24] sm:$0x1] }
  0xe3   : > { %v1938_v17 = vpop.permute.xlu1 %1937 }
  0xe4   : > { %1961 = vst.msk [vmem:[#allocation3 + $0x4] sm:$0xf] %vm1959_vm4, %v1938_v17  ;;  %v1037_v5 = vpop.permute.xlu0 %1036  ;;  %v2481_v17 = vld [vmem:[#allocation4] sm:$0xf] }
  0xe5   : > { %1057 = vst.msk [vmem:[#allocation3 + $0x10] sm:$0xf] %vm1052_vm10, %v1037_v5  ;;  %v547_v5 = vsel %vm4076_vm3, 0, %v546_v30 }
  0xe6   : > { %548 = vst [vmem:[#allocation4 + $0x20] sm:$0x1] %v547_v5 }
  0xe7   : > { %v1039_v39 = vpop.permute.xlu1 %1038 }
  0xe8   : > { %1058 = vst.msk [vmem:[#allocation3 + $0x14] sm:$0xf] %vm1052_vm10, %v1039_v39  ;;  %v1940_v25 = vpop.permute.xlu0 %1939  ;;  %v577_v39 = vsel %vm4113_vm5, 0, %v576_v31 }
  0xe9   : > { %1962 = vst.msk [vmem:[#allocation3 + $0x8] sm:$0xf] %vm1959_vm4, %v1940_v25  ;;  %v2498_v25 = vshrl.u32 %v2481_v17, 16  ;;  %578 = vst [vmem:[#allocation4 + $0x24] sm:$0x1] %v577_v39 }
  0xeb   : > { %v1942_v52 = vpop.permute.xlu1 %1941 }
  0xec   : > { %1963 = vst.msk [vmem:[#allocation3 + $0xc] sm:$0xf] %vm1959_vm4, %v1942_v52  ;;  %v2097_v33 = vpop.permute.xlu0 %2096  ;;  %v2501_v52 = vshll.u32 %v2481_v17, 16 }
  0xed   : > { %2121 = vst.msk [vmem:[#allocation3] sm:$0xf] %vm2120_vm6, %v2097_v33  ;;  %v592_v33 = vsel %vm4113_vm5, 0, %v591_v40 }
  0xee   : > { %593 = vst [vmem:[#allocation4 + $0x4c] sm:$0x1] %v592_v33 }
  0xef   : > { %v2099_v63 = vpop.permute.xlu1 %2098 }
  0xf0   : > { %2122 = vst.msk [vmem:[#allocation3 + $0x4] sm:$0xf] %vm2120_vm6, %v2099_v63  ;;  %v540_v63 = vld [vmem:[#allocation4 + $0x10] sm:$0x1] }
  0xf3   : > { %v1043_v27 = vpop.permute.xlu1 %1042 }
  0xf4   : > { %1060 = vst.msk [vmem:[#allocation3 + $0x1c] sm:$0xf] %vm1052_vm10, %v1043_v27  ;;  %v570_v27 = vld [vmem:[#allocation4 + $0x14] sm:$0x1] }
  0xf5   : > { %v1041_v34 = vpop.permute.xlu0 %1040 }
  0xf6   : > { %1059 = vst.msk [vmem:[#allocation3 + $0x18] sm:$0xf] %vm1052_vm10, %v1041_v34  ;;  %v2500_v34 = vrot.slane %v2498_v25, 4  ;;  %vm2674_vm10 = vcmask 1042432  }
  0xf7   : > { %v3951_v35 = vld [vmem:[#allocation3] sm:$0xff]  }
  0xf8   : > { %v1203_v46 = vpop.permute.xlu1 %1202  ;;  %3890 = vmatprep.mubr.msk.bf16.mxu0 %vm2184_vm7, %v3951_v35  ;;  %v541_v35 = vsel %vm4076_vm3, 0, %v540_v63 }
  0xf9   : > { %1222 = vst.msk [vmem:[#allocation3 + $0x14] sm:$0xf] %vm1216_vm11, %v1203_v46  ;;  %v1201_v44 = vpop.permute.xlu0 %1200  ;;  %v2503_v46 = vrot.slane %v2501_v52, 5  ;;  %542 = vst [vmem:[#allocation4 + $0x10] sm:$0x1] %v541_v35 }
  0xfa   : > { %1221 = vst.msk [vmem:[#allocation3 + $0x10] sm:$0xf] %vm1216_vm11, %v1201_v44  ;;  %v571_v44 = vsel %vm4113_vm5, 0, %v570_v27 }
  0xfb   : > { %572 = vst [vmem:[#allocation4 + $0x14] sm:$0x1] %v571_v44 }
  0xfc   : > { %v2103_v36 = vpop.permute.xlu1 %2102 }
  0xfd   : > { %2124 = vst.msk [vmem:[#allocation3 + $0xc] sm:$0xf] %vm2120_vm6, %v2103_v36  ;;  %v2101_v37 = vpop.permute.xlu0 %2100  ;;  %v2482_v36 = vld [vmem:[#allocation4 + $0x4] sm:$0x1] }
  0xfe   : > { %2123 = vst.msk [vmem:[#allocation3 + $0x8] sm:$0xf] %vm2120_vm6, %v2101_v37  ;;  %v3113_v37 = vld [vmem:[#allocation4 + $0x48] sm:$0xf] }
 0x100   : > { %v2423_v15 = vld [vmem:[#allocation4 + $0x10] sm:$0xf] }
 0x102   : > { %v2426_v22 = vld [vmem:[#allocation4 + $0x14] sm:$0x1] }
 0x105   : > { %v1207_v41 = vpop.permute.xlu1 %1206  ;;  %v3954_v42 = vld [vmem:[#allocation3 + $0x8] sm:$0xff]  }
 0x106   : > { %1224 = vst.msk [vmem:[#allocation3 + $0x1c] sm:$0xf] %vm1216_vm11, %v1207_v41  ;;  %v1205_v58 = vpop.permute.xlu0 %1204  ;;  %3891 = vmatmul.mubr.msk.bf16.vlgmr.msra.gmra.mxu0 %vm2184_vm7, %v3954_v42  ;;  %v3057_v41 = vld [vmem:[#allocation4 + $0x48] sm:$0xf]  ;;  %v2504_v42 = vor.u32 %v2503_v46, %v2500_v34 }
 0x107   : > { %1223 = vst.msk [vmem:[#allocation3 + $0x18] sm:$0xf] %vm1216_vm11, %v1205_v58  ;;  %v2507_v58 = vshll.u32 %v2482_v36, 16  ;;  %3080 = vrot.lane.b32.xlu1 %v3057_v41, %s3987_s28  ;;  %vm2675_vm11 = vcmask 1046532  }
 0x109   : > { %v1364_v29 = vpop.permute.xlu1 %1363 }
 0x10a   : > { %1383 = vst.msk [vmem:[#allocation3 + $0x14] sm:$0xf] %vm1377_vm12, %v1364_v29  ;;  %v1362_v50 = vpop.permute.xlu0 %1361  ;;  %v3214_v29 = vshrl.u32 %v3113_v37, 16 }
 0x10b   : > { %1382 = vst.msk [vmem:[#allocation3 + $0x10] sm:$0xf] %vm1377_vm12, %v1362_v50  ;;  %v3217_v50 = vshll.u32 %v3113_v37, 16 }
 0x10d   : > { %v1368_v21 = vpop.permute.xlu1 %1367 }
 0x10e   : > { %1385 = vst.msk [vmem:[#allocation3 + $0x1c] sm:$0xf] %vm1377_vm12, %v1368_v21  ;;  %v1366_v32 = vpop.permute.xlu0 %1365  ;;  %v2642_v21 = vld [vmem:[#allocation4] sm:$0xe] }
 0x10f   : > { %1384 = vst.msk [vmem:[#allocation3 + $0x18] sm:$0xf] %vm1377_vm12, %v1366_v32  ;;  %v2643_v32 = vld [vmem:[#allocation4 + $0x4] sm:$0x1]  ;;  %vm4841_vm12 = vmor %vm2674_vm10, %vm2675_vm11 }
 0x111   : > { %v1413_v11 = vpop.permute.xlu1 %1412 }
 0x112   : > { %1432 = vst.msk [vmem:[#allocation3 + $0x14] sm:$0xf] %vm1426_vm13, %v1413_v11  ;;  %v1411_v62 = vpop.permute.xlu0 %1410  ;;  %v2505_v11 = vrot.slane %v2504_v42, 4  ;;  %v2429_v42 = vld [vmem:[#allocation4 + $0x18] sm:$0xf] }
 0x113   : > { %1431 = vst.msk [vmem:[#allocation3 + $0x10] sm:$0xf] %vm1426_vm13, %v1411_v62  ;;  %v2509_v62 = vrot.slane %v2507_v58, 5 }
 0x115   : > { %v1417_v48 = vpop.permute.xlu1 %1416 }
 0x116   : > { %1434 = vst.msk [vmem:[#allocation3 + $0x1c] sm:$0xf] %vm1426_vm13, %v1417_v48  ;;  %v3216_v48 = vrot.slane %v3214_v29, 4 }
 0x11a   : > { %v1415_v51 = vpop.permute.xlu0 %1414 }
 0x11b   : > { %1433 = vst.msk [vmem:[#allocation3 + $0x18] sm:$0xf] %vm1426_vm13, %v1415_v51  ;;  %v3219_v51 = vrot.slane %v3217_v50, 5  ;;  %vm2733_vm13 = vcmask 191616  }
 0x120   : > { %v1574_v49 = vpop.permute.xlu1 %1573  ;;  %v1572_v61 = vpop.permute.xlu0 %1571 }
 0x121   : > { %1593 = vst.msk [vmem:[#allocation3 + $0x14] sm:$0xf] %vm1587_vm15, %v1574_v49  ;;  %1592 = vst.msk [vmem:[#allocation3 + $0x10] sm:$0xf] %vm1587_vm15, %v1572_v61  ;;  %v3749_v49 = vrot.slane %v2642_v21, 9  ;;  %v2510_v61 = vsel %vm4165_vm8, %v2505_v11, %v2509_v62 }
 0x122   : > { %2609 = vrot.lane.b32.xlu0 %v2510_v61, %s3983_s30  ;;  %v2432_v21 = vld [vmem:[#allocation4 + $0x1c] sm:$0x1] }
 0x124   : > { %v1578_v53 = vpop.permute.xlu1 %1577 }
 0x125   : > { %1595 = vst.msk [vmem:[#allocation3 + $0x1c] sm:$0xf] %vm1587_vm15, %v1578_v53  ;;  %v1576_v45 = vpop.permute.xlu0 %1575 }
 0x126   : > { %1594 = vst.msk [vmem:[#allocation3 + $0x18] sm:$0xf] %vm1587_vm15, %v1576_v45  ;;  %v2679_v45 = vrot.slane %v2643_v32, 5  ;;  %vm3090_vm15 = vcmask 454016  }
 0x128   : > { %v1735_v55 = vpop.permute.xlu1 %1734 }
 0x129   : > { %1754 = vst.msk [vmem:[#allocation3 + $0x14] sm:$0xf] %vm1748_vm1, %v1735_v55  ;;  %v1733_v19 = vpop.permute.xlu0 %1732  ;;  %v3114_v55 = vld [vmem:[#allocation4 + $0x4c] sm:$0x1] }
 0x12a   : > { %1753 = vst.msk [vmem:[#allocation3 + $0x10] sm:$0xf] %vm1748_vm1, %v1733_v19  ;;  %v3220_v19 = vor.u32 %v3219_v51, %v3216_v48  ;;  %v2465_v51 = vld [vmem:[#allocation4] sm:$0xf] }
 0x12b   : > { %2473 = vst.msk [vmem:[#allocation5] sm:$0xf] %vm393_vm0, %v2465_v51 }
 0x12c   : > { %v1739_v56 = vpop.permute.xlu1 %1738 }
 0x12d   : > { %1756 = vst.msk [vmem:[#allocation3 + $0x1c] sm:$0xf] %vm1748_vm1, %v1739_v56  ;;  %v1737_v59 = vpop.permute.xlu0 %1736  ;;  %v3223_v56 = vshll.u32 %v3114_v55, 16 }
 0x12e   : > { %1755 = vst.msk [vmem:[#allocation3 + $0x18] sm:$0xf] %vm1748_vm1, %v1737_v59  ;;  %v2680_v59 = vsel %vm4841_vm12, %v3749_v49, %v2679_v45  ;;  %vm3251_vm1 = vcmask 519616  }
 0x12f   : > { %2709 = vrot.lane.b32.xlu0 %v2680_v59, %s3984_s12 }
 0x130   : > { %v1785_v0 = vpop.permute.xlu1 %1784 }
 0x131   : > { %1804 = vst.msk [vmem:[#allocation3 + $0x14] sm:$0xf] %vm1798_vm2, %v1785_v0  ;;  %v1783_v20 = vpop.permute.xlu0 %1782  ;;  %v3221_v0 = vrot.slane %v3220_v19, 4  ;;  %v2417_v19 = vld [vmem:[#allocation4 + $0x8] sm:$0xf] }
 0x132   : > { %1803 = vst.msk [vmem:[#allocation3 + $0x10] sm:$0xf] %vm1798_vm2, %v1783_v20  ;;  %v3225_v20 = vrot.slane %v3223_v56, 5  ;;  %v2420_v56 = vld [vmem:[#allocation4 + $0xc] sm:$0x1] }
 0x134   : > { %v1789_v14 = vpop.permute.xlu1 %1788 }
 0x135   : > { %1806 = vst.msk [vmem:[#allocation3 + $0x1c] sm:$0xf] %vm1798_vm2, %v1789_v14  ;;  %v1787_v6 = vpop.permute.xlu0 %1786  ;;  %v3226_v14 = vsel %vm4165_vm8, %v3221_v0, %v3225_v20 }
 0x136   : > { %1805 = vst.msk [vmem:[#allocation3 + $0x18] sm:$0xf] %vm1798_vm2, %v1787_v6  ;;  %3241 = vrot.lane.b32.xlu1 %v3226_v14, %s3988_s29  ;;  %v555_v6 = vld [vmem:[#allocation4 + $0x38] sm:$0x1]  ;;  %vm3348_vm2 = vcmask 585216  }
 0x138   : > { %v1946_v7 = vpop.permute.xlu1 %1945 }
 0x139   : > { %1965 = vst.msk [vmem:[#allocation3 + $0x14] sm:$0xf] %vm1959_vm4, %v1946_v7  ;;  %v1944_v8 = vpop.permute.xlu0 %1943  ;;  %v585_v7 = vld [vmem:[#allocation4 + $0x3c] sm:$0x1] }
 0x13a   : > { %1964 = vst.msk [vmem:[#allocation3 + $0x10] sm:$0xf] %vm1959_vm4, %v1944_v8  ;;  %v556_v8 = vsel %vm4076_vm3, 0, %v555_v6 }
 0x13b   : > { %557 = vst [vmem:[#allocation4 + $0x38] sm:$0x1] %v556_v8 }
 0x13d   : > { %v1948_v57 = vpop.permute.xlu0 %1947 }
 0x13e   : > { %v1950_v60 = vpop.permute.xlu1 %1949  ;;  %1966 = vst.msk [vmem:[#allocation3 + $0x18] sm:$0xf] %vm1959_vm4, %v1948_v57  ;;  %v586_v57 = vsel %vm4113_vm5, 0, %v585_v7 }
 0x13f   : > { %1967 = vst.msk [vmem:[#allocation3 + $0x1c] sm:$0xf] %vm1959_vm4, %v1950_v60  ;;  %587 = vst [vmem:[#allocation4 + $0x3c] sm:$0x1] %v586_v57  ;;  %v549_v60 = vld [vmem:[#allocation4 + $0x28] sm:$0x1] }
 0x140   : > { %vm3428_vm4 = vcmask 588800  }
 0x141   : > { %v2105_v43 = vpop.permute.xlu0 %2104 }
 0x142   : > { %v2107_v3 = vpop.permute.xlu1 %2106  ;;  %2125 = vst.msk [vmem:[#allocation3 + $0x10] sm:$0xf] %vm2120_vm6, %v2105_v43  ;;  %v579_v43 = vld [vmem:[#allocation4 + $0x2c] sm:$0x1] }
 0x143   : > { %2126 = vst.msk [vmem:[#allocation3 + $0x14] sm:$0xf] %vm2120_vm6, %v2107_v3  ;;  %v550_v3 = vsel %vm4076_vm3, 0, %v549_v60 }
 0x144   : > { %551 = vst [vmem:[#allocation4 + $0x28] sm:$0x1] %v550_v3 }
 0x145   : > { %v2109_v10 = vpop.permute.xlu0 %2108 }
 0x146   : > { %v2111_v9 = vpop.permute.xlu1 %2110  ;;  %2127 = vst.msk [vmem:[#allocation3 + $0x18] sm:$0xf] %vm2120_vm6, %v2109_v10  ;;  %v580_v10 = vsel %vm4113_vm5, 0, %v579_v43 }
 0x147   : > { %2128 = vst.msk [vmem:[#allocation3 + $0x1c] sm:$0xf] %vm2120_vm6, %v2111_v9  ;;  %581 = vst [vmem:[#allocation4 + $0x2c] sm:$0x1] %v580_v10  ;;  %v558_v9 = vld [vmem:[#allocation4 + $0x40] sm:$0x1] }
 0x148   : > { %v2435_v10 = vld [vmem:[#allocation4 + $0x20] sm:$0xf]  ;;  %vm3635_vm6 = vcmask 64512  }
 0x14a   : > { %v3955_v54 = vld [vmem:[#allocation3 + $0x10] sm:$0xff]  }
 0x14b   : > { %3894 = vmatprep.mubr.msk.bf16.mxu0 %vm2184_vm7, %v3955_v54  ;;  %v588_v54 = vld [vmem:[#allocation4 + $0x44] sm:$0x1] }
 0x14c   : > { %v589_v16 = vsel %vm4113_vm5, 0, %v588_v54  ;;  %vm2633_vm5 = vcmask 126016  }
 0x14d   : > { %590 = vst [vmem:[#allocation4 + $0x44] sm:$0x1] %v589_v16 }
 0x14e   : > { %v3956_v4 = vld [vmem:[#allocation3 + $0x18] sm:$0xff]  }
 0x14f   : > { %3895 = vmatmul.mubr.msk.bf16.gmra.mxu0 %vm2184_vm7, %v3956_v4  ;;  %v559_v4 = vsel %vm4076_vm3, 0, %v558_v9  ;;  %v2438_v9 = vld [vmem:[#allocation4 + $0x24] sm:$0x1] }
 0x150   : > { %560 = vst [vmem:[#allocation4 + $0x40] sm:$0x1] %v559_v4 }
 0x194   : > { %v2610_v0 = vpop.permute.xlu0 %2609 }
 0x195   : > { %2634 = vst.msk [vmem:[#allocation5] sm:$0xf] %vm2633_vm5, %v2610_v0 }
 0x1a1   : > { %v2710_v13 = vpop.permute.xlu0 %2709 }
 0x1a2   : > { %2734 = vst.msk [vmem:[#allocation5] sm:$0xf] %vm2733_vm13, %v2710_v13 }
 0x1c6   : > { %v3892_v23 = vpop.f32.mrf.mxu0 }
 0x1c7   : > { %v2244_v18 = vadd.f32 %v3892_v23, %v4871_v47 }
 0x1c8   : > { %v2235_v26 = vpop.f32.mrf.mxu0 }
 0x1c9   : > { %v2275_v40 = vmul.f32 %v4876_v2, %v2244_v18  ;;  %v2236_v30 = vadd.f32 %v4871_v47, %v2235_v26 }
 0x1ca   : > { %v3893_v31 = vpop.f32.mrf.mxu0 }
 0x1cb   : > { %v2290_v17 = vadd.f32 %v4882_v24, %v2275_v40  ;;  %v2273_v5 = vmul.f32 %v4876_v2, %v2236_v30  ;;  %v2247_v39 = vadd.f32 %v3893_v31, %v4871_v47 }
 0x1cc   : > { %v2238_v25 = vpop.f32.mrf.mxu0 }
 0x1cd   : > { %v2298_v52 = vmax.f32 %v2290_v17, 0.0  ;;  %v2288_v33 = vadd.f32 %v4882_v24, %v2273_v5  ;;  %v2276_v63 = vmul.f32 %v4876_v2, %v2247_v39  ;;  %v2239_v27 = vadd.f32 %v4871_v47, %v2238_v25 }
 0x1cf   : > { %v3818_v34 = vpack.c.bf16 %v2298_v52, %v2298_v52  ;;  %v2296_v46 = vmax.f32 %v2288_v33, 0.0  ;;  %v2291_v35 = vadd.f32 %v4882_v24, %v2276_v63  ;;  %v2274_v44 = vmul.f32 %v4876_v2, %v2239_v27 }
 0x1d1   : > { %v2353_v36 = vshrl.u32 %v3818_v34, 16  ;;  %v3816_v37 = vpack.c.bf16 %v2296_v46, %v2296_v46  ;;  %v2299_v41 = vmax.f32 %v2291_v35, 0.0  ;;  %v2289_v58 = vadd.f32 %v4882_v24, %v2274_v44 }
 0x1d2   : > { %v2356_v50 = vshll.u32 %v3818_v34, 16 }
 0x1d3   : > { %v2355_v29 = vrot.slane %v2353_v36, 7  ;;  %v2337_v32 = vshrl.u32 %v3816_v37, 16  ;;  %v3819_v11 = vpack.c.bf16 %v2299_v41, %v2299_v41  ;;  %v2340_v62 = vshll.u32 %v3816_v37, 16 }
 0x1d4   : > { %v2297_v48 = vmax.f32 %v2289_v58, 0.0 }
 0x1d5   : > { %v2358_v49 = vor.u32 %v2356_v50, %v2355_v29  ;;  %v2359_v61 = vrot.slane %v2355_v29, 4  ;;  %v2339_v45 = vrot.slane %v2337_v32, 7  ;;  %v2361_v55 = vshrl.u32 %v3819_v11, 16 }
 0x1d6   : > { %v3817_v59 = vpack.c.bf16 %v2297_v48, %v2297_v48  ;;  %v2364_v57 = vshll.u32 %v3819_v11, 16 }
 0x1d7   : > { %v2430_v20 = vsel %vm4171_vm9, %v2358_v49, %v2429_v42  ;;  %v2433_v14 = vsel %vm4076_vm3, %v2359_v61, %v2432_v21  ;;  %v2342_v6 = vor.u32 %v2340_v62, %v2339_v45  ;;  %v2343_v7 = vrot.slane %v2339_v45, 4 }
 0x1d8   : > { %2431 = vst [vmem:[#allocation4 + $0x18] sm:$0xf] %v2430_v20  ;;  %2434 = vst [vmem:[#allocation4 + $0x1c] sm:$0x1] %v2433_v14  ;;  %v2363_v8 = vrot.slane %v2361_v55, 7  ;;  %v2345_v60 = vshrl.u32 %v3817_v59, 16 }
 0x1d9   : > { %v2418_v43 = vsel %vm4171_vm9, %v2342_v6, %v2417_v19  ;;  %v2421_v3 = vsel %vm4076_vm3, %v2343_v7, %v2420_v56  ;;  %v2348_v12 = vshll.u32 %v3817_v59, 16 }
 0x1da   : > { %2419 = vst [vmem:[#allocation4 + $0x8] sm:$0xf] %v2418_v43  ;;  %2422 = vst [vmem:[#allocation4 + $0xc] sm:$0x1] %v2421_v3  ;;  %v2366_v54 = vor.u32 %v2364_v57, %v2363_v8  ;;  %v2367_v4 = vrot.slane %v2363_v8, 4  ;;  %v2347_v16 = vrot.slane %v2345_v60, 7 }
 0x1dc   : > { %v2436_v23 = vsel %vm4171_vm9, %v2366_v54, %v2435_v10  ;;  %v2439_v18 = vsel %vm4076_vm3, %v2367_v4, %v2438_v9  ;;  %v2350_v26 = vor.u32 %v2348_v12, %v2347_v16  ;;  %v2351_v40 = vrot.slane %v2347_v16, 4 }
 0x1dd   : > { %2437 = vst [vmem:[#allocation4 + $0x20] sm:$0xf] %v2436_v23  ;;  %2440 = vst [vmem:[#allocation4 + $0x24] sm:$0x1] %v2439_v18 }
 0x1de   : > { %v2424_v30 = vsel %vm4171_vm9, %v2350_v26, %v2423_v15  ;;  %v2427_v31 = vsel %vm4076_vm3, %v2351_v40, %v2426_v22 }
 0x1df   : > { %2425 = vst [vmem:[#allocation4 + $0x10] sm:$0xf] %v2424_v30  ;;  %2428 = vst [vmem:[#allocation4 + $0x14] sm:$0x1] %v2427_v31  ;;  %v3051_v17 = vld [vmem:[#allocation4 + $0x18] sm:$0xf] }
 0x1e0   : > { %v2744_v5 = vld [vmem:[#allocation4 + $0x18] sm:$0xf]  ;;  %3068 = vrot.lane.b32.xlu1 %v3051_v17, %s3987_s28  ;;  %v2649_v25 = vld [vmem:[#allocation4 + $0x1c] sm:$0x1] }
 0x1e1   : > { %v2648_v39 = vld [vmem:[#allocation4 + $0x18] sm:$0xe]  ;;  %2762 = vrot.lane.b32.xlu0 %v2744_v5, %s3989_s21  ;;  %v2691_v63 = vrot.slane %v2649_v25, 5  ;;  %v3263_v27 = vld [vmem:[#allocation4 + $0x1c] sm:$0x1] }
 0x1e2   : > { %v3752_v52 = vrot.slane %v2648_v39, 9  ;;  %v3262_v33 = vld [vmem:[#allocation4 + $0x18] sm:$0xe]  ;;  %v2957_v35 = vld [vmem:[#allocation4 + $0x1c] sm:$0x1]  ;;  %v3298_v37 = vrot.slane %v3263_v27, 5 }
 0x1e3   : > { %v3766_v34 = vrot.slane %v3262_v33, 9  ;;  %v2956_v46 = vld [vmem:[#allocation4 + $0x18] sm:$0xe]  ;;  %v2742_v36 = vld [vmem:[#allocation4 + $0x8] sm:$0xf]  ;;  %v2994_v42 = vrot.slane %v2957_v35, 5 }
 0x1e4   : > { %v2692_v44 = vsel %vm4841_vm12, %v3752_v52, %v2691_v63  ;;  %v3759_v41 = vrot.slane %v2956_v46, 9  ;;  %v2952_v50 = vld [vmem:[#allocation4 + $0x8] sm:$0xe]  ;;  %v2953_v21 = vld [vmem:[#allocation4 + $0xc] sm:$0x1] }
 0x1e5   : > { %2715 = vrot.lane.b32.xlu1 %v2692_v44, %s3984_s12  ;;  %2758 = vrot.lane.b32.xlu0 %v2742_v36, %s3989_s21  ;;  %v3299_v58 = vsel %vm4841_vm12, %v3766_v34, %v3298_v37  ;;  %v2644_v32 = vld [vmem:[#allocation4 + $0x8] sm:$0xe]  ;;  %v2645_v11 = vld [vmem:[#allocation4 + $0xc] sm:$0x1]  ;;  %v2745_v62 = vld [vmem:[#allocation4 + $0x20] sm:$0xf] }
 0x1e6   : > { %v2995_v29 = vsel %vm4841_vm12, %v3759_v41, %v2994_v42  ;;  %v3052_v48 = vld [vmem:[#allocation4 + $0x20] sm:$0xf]  ;;  %v3757_v51 = vrot.slane %v2952_v50, 9  ;;  %v2986_v49 = vrot.slane %v2953_v21, 5  ;;  %v3750_v61 = vrot.slane %v2644_v32, 9 }
 0x1e7   : > { %v2683_v45 = vrot.slane %v2645_v11, 5  ;;  %v3264_v56 = vld [vmem:[#allocation4 + $0x20] sm:$0xe]  ;;  %v3265_v59 = vld [vmem:[#allocation4 + $0x24] sm:$0x1] }
 0x1e8   : > { %v2987_v55 = vsel %vm4841_vm12, %v3757_v51, %v2986_v49  ;;  %v2958_v0 = vld [vmem:[#allocation4 + $0x20] sm:$0xe]  ;;  %v2959_v20 = vld [vmem:[#allocation4 + $0x24] sm:$0x1]  ;;  %v3050_v14 = vld [vmem:[#allocation4 + $0x10] sm:$0xf] }
 0x1e9   : > { %3326 = vrot.lane.b32.xlu1 %v3299_v58, %s3990_s22  ;;  %3020 = vrot.lane.b32.xlu0 %v2995_v29, %s3991_s23  ;;  %v2684_v19 = vsel %vm4841_vm12, %v3750_v61, %v2683_v45  ;;  %v2743_v6 = vld [vmem:[#allocation4 + $0x10] sm:$0xf]  ;;  %v3767_v7 = vrot.slane %v3264_v56, 9  ;;  %v3302_v8 = vrot.slane %v3265_v59, 5  ;;  %v3760_v57 = vrot.slane %v2958_v0, 9 }
 0x1ea   : > { %v2998_v60 = vrot.slane %v2959_v20, 5  ;;  %v2650_v43 = vld [vmem:[#allocation4 + $0x20] sm:$0xe]  ;;  %v2651_v3 = vld [vmem:[#allocation4 + $0x24] sm:$0x1] }
 0x1eb   : > { %v3303_v10 = vsel %vm4841_vm12, %v3767_v7, %v3302_v8  ;;  %v3753_v54 = vrot.slane %v2650_v43, 9  ;;  %v2695_v4 = vrot.slane %v2651_v3, 5  ;;  %v2468_v12 = vld [vmem:[#allocation4 + $0x18] sm:$0xf]  ;;  %v2466_v13 = vld [vmem:[#allocation4 + $0x8] sm:$0xf] }
 0x1ec   : > { %v2999_v9 = vsel %vm4841_vm12, %v3760_v57, %v2998_v60  ;;  %2476 = vst.msk [vmem:[#allocation5 + $0xc] sm:$0xf] %vm393_vm0, %v2468_v12  ;;  %2474 = vst.msk [vmem:[#allocation5 + $0x4] sm:$0xf] %vm393_vm0, %v2466_v13  ;;  %v2469_v15 = vld [vmem:[#allocation4 + $0x20] sm:$0xf] }
 0x1ed   : > { %2764 = vrot.lane.b32.xlu1 %v2745_v62, %s3989_s21  ;;  %3070 = vrot.lane.b32.xlu0 %v3052_v48, %s3987_s28  ;;  %v2696_v16 = vsel %vm4841_vm12, %v3753_v54, %v2695_v4  ;;  %2477 = vst.msk [vmem:[#allocation5 + $0x10] sm:$0xf] %vm393_vm0, %v2469_v15  ;;  %v2467_v22 = vld [vmem:[#allocation4 + $0x10] sm:$0xf]  ;;  %v2487_v34 = vld [vmem:[#allocation4 + $0x18] sm:$0xf] }
 0x1ee   : > { %2475 = vst.msk [vmem:[#allocation5 + $0x8] sm:$0xf] %vm393_vm0, %v2467_v22  ;;  %v2540_v37 = vshrl.u32 %v2487_v34, 16  ;;  %v2543_v41 = vshll.u32 %v2487_v34, 16  ;;  %v2453_v50 = vld [vmem:[#allocation4 + $0x38] sm:$0xf] }
 0x1ef   : > { %v2456_v51 = vld [vmem:[#allocation4 + $0x3c] sm:$0x1]  ;;  %v2441_v59 = vld [vmem:[#allocation4 + $0x28] sm:$0xf]  ;;  %v2444_v20 = vld [vmem:[#allocation4 + $0x2c] sm:$0x1] }
 0x1f0   : > { %v2542_v45 = vrot.slane %v2540_v37, 4  ;;  %v2459_v3 = vld [vmem:[#allocation4 + $0x40] sm:$0xf]  ;;  %v2646_v12 = vld [vmem:[#allocation4 + $0x10] sm:$0xe] }
 0x1f1   : > { %3016 = vrot.lane.b32.xlu0 %v2987_v55, %s3991_s23  ;;  %2711 = vrot.lane.b32.xlu1 %v2684_v19, %s3984_s12  ;;  %v2545_v55 = vrot.slane %v2543_v41, 5  ;;  %v2462_v22 = vld [vmem:[#allocation4 + $0x44] sm:$0x1]  ;;  %v2954_v37 = vld [vmem:[#allocation4 + $0x10] sm:$0xe] }
 0x1f2   : > { %v2955_v41 = vld [vmem:[#allocation4 + $0x14] sm:$0x1]  ;;  %v3758_v38 = vrot.slane %v2954_v37, 9  ;;  %v3102_v1 = vld [vmem:[#allocation4 + $0x1c] sm:$0x1] }
 0x1f5   : > { %3066 = vrot.lane.b32.xlu0 %v3050_v14, %s3987_s28  ;;  %2760 = vrot.lane.b32.xlu1 %v2743_v6, %s3989_s21 }
 0x1f9   : > { %3328 = vrot.lane.b32.xlu0 %v3303_v10, %s3990_s22  ;;  %3022 = vrot.lane.b32.xlu1 %v2999_v9, %s3991_s23  ;;  %v2488_v10 = vld [vmem:[#allocation4 + $0x1c] sm:$0x1] }
 0x1fd   : > { %2717 = vrot.lane.b32.xlu0 %v2696_v16, %s3984_s12  ;;  %v2546_v16 = vor.u32 %v2545_v55, %v2542_v45 }
 0x20f   : > { %v3896_v23 = vpop.f32.mrf.mxu0 }
 0x210   : > { %v2260_v18 = vadd.f32 %v3896_v23, %v4871_v47  ;;  %v2447_v23 = vld [vmem:[#allocation4 + $0x30] sm:$0xf] }
 0x211   : > { %v2251_v26 = vpop.f32.mrf.mxu0 }
 0x212   : > { %v2279_v40 = vmul.f32 %v4876_v2, %v2260_v18  ;;  %v2252_v30 = vadd.f32 %v4871_v47, %v2251_v26 }
 0x213   : > { %v3897_v31 = vpop.f32.mrf.mxu0 }
 0x214   : > { %v2294_v17 = vadd.f32 %v4882_v24, %v2279_v40  ;;  %v2277_v5 = vmul.f32 %v4876_v2, %v2252_v30  ;;  %v2263_v39 = vadd.f32 %v3897_v31, %v4871_v47 }
 0x215   : > { %v2254_v25 = vpop.f32.mrf.mxu0 }
 0x216   : > { %v2302_v52 = vmax.f32 %v2294_v17, 0.0  ;;  %v2292_v33 = vadd.f32 %v4882_v24, %v2277_v5  ;;  %v2280_v63 = vmul.f32 %v4876_v2, %v2263_v39  ;;  %v2255_v27 = vadd.f32 %v4871_v47, %v2254_v25  ;;  %v2795_v47 = vld [vmem:[#allocation4 + $0x18] sm:$0xf]  ;;  %v2647_v5 = vld [vmem:[#allocation4 + $0x14] sm:$0x1] }
 0x217   : > { %v2836_v6 = vshrl.u32 %v2795_v47, 16  ;;  %v2839_v7 = vshll.u32 %v2795_v47, 16  ;;  %v2450_v39 = vld [vmem:[#allocation4 + $0x34] sm:$0x1]  ;;  %v2549_v25 = vshll.u32 %v2488_v10, 16 }
 0x218   : > { %v3822_v46 = vpack.c.bf16 %v2302_v52, %v2302_v52  ;;  %v2300_v35 = vmax.f32 %v2292_v33, 0.0  ;;  %v2295_v44 = vadd.f32 %v4882_v24, %v2280_v63  ;;  %v2278_v36 = vmul.f32 %v4876_v2, %v2255_v27  ;;  %v2791_v47 = vld [vmem:[#allocation4 + $0x8] sm:$0xf] }
 0x219   : > { %v3751_v52 = vrot.slane %v2646_v12, 9  ;;  %v2838_v33 = vrot.slane %v2836_v6, 4  ;;  %v2841_v63 = vrot.slane %v2839_v7, 5  ;;  %v3261_v6 = vld [vmem:[#allocation4 + $0x14] sm:$0x1] }
 0x21a   : > { %v2385_v42 = vshrl.u32 %v3822_v46, 16  ;;  %v3820_v58 = vpack.c.bf16 %v2300_v35, %v2300_v35  ;;  %v2303_v29 = vmax.f32 %v2295_v44, 0.0  ;;  %v2293_v21 = vadd.f32 %v4882_v24, %v2278_v36  ;;  %v3101_v24 = vld [vmem:[#allocation4 + $0x18] sm:$0xf] }
 0x21b   : > { %v2388_v11 = vshll.u32 %v3822_v46, 16  ;;  %v3130_v18 = vshrl.u32 %v3101_v24, 16  ;;  %v3133_v26 = vshll.u32 %v3101_v24, 16  ;;  %v2547_v44 = vrot.slane %v2546_v16, 4 }
 0x21c   : > { %v2387_v32 = vrot.slane %v2385_v42, 7  ;;  %v2369_v62 = vshrl.u32 %v3820_v58, 16  ;;  %v3823_v48 = vpack.c.bf16 %v2303_v29, %v2303_v29  ;;  %v2372_v49 = vshll.u32 %v3820_v58, 16  ;;  %v2796_v29 = vld [vmem:[#allocation4 + $0x1c] sm:$0x1] }
 0x21d   : > { %v2301_v61 = vmax.f32 %v2293_v21, 0.0  ;;  %v2687_v36 = vrot.slane %v2647_v5, 5  ;;  %v3135_v21 = vrot.slane %v3133_v26, 5  ;;  %v3294_v12 = vrot.slane %v3261_v6, 5  ;;  %v2797_v26 = vld [vmem:[#allocation4 + $0x20] sm:$0xf] }
 0x21e   : > { %v2390_v19 = vor.u32 %v2388_v11, %v2387_v32  ;;  %v2391_v2 = vrot.slane %v2387_v32, 4  ;;  %v2371_v56 = vrot.slane %v2369_v62, 7  ;;  %v2393_v0 = vshrl.u32 %v3823_v48, 16  ;;  %v2483_v32 = vld [vmem:[#allocation4 + $0x8] sm:$0xf] }
 0x21f   : > { %v3821_v14 = vpack.c.bf16 %v2301_v61, %v2301_v61  ;;  %v2396_v54 = vshll.u32 %v3823_v48, 16  ;;  %v2842_v48 = vor.u32 %v2841_v63, %v2838_v33  ;;  %v2845_v61 = vshll.u32 %v2796_v29, 16 }
 0x220   : > { %v2454_v8 = vsel %vm4171_vm9, %v2390_v19, %v2453_v50  ;;  %v2457_v57 = vsel %vm4076_vm3, %v2391_v2, %v2456_v51  ;;  %v2374_v60 = vor.u32 %v2372_v49, %v2371_v56  ;;  %v2375_v43 = vrot.slane %v2371_v56, 4 }
 0x221   : > { %2455 = vst [vmem:[#allocation4 + $0x38] sm:$0xf] %v2454_v8  ;;  %2458 = vst [vmem:[#allocation4 + $0x3c] sm:$0x1] %v2457_v57  ;;  %v2395_v9 = vrot.slane %v2393_v0, 7  ;;  %v2377_v4 = vshrl.u32 %v3821_v14, 16 }
 0x222   : > { %v2442_v13 = vsel %vm4171_vm9, %v2374_v60, %v2441_v59  ;;  %v2445_v15 = vsel %vm4076_vm3, %v2375_v43, %v2444_v20  ;;  %v2380_v17 = vshll.u32 %v3821_v14, 16  ;;  %v3132_v50 = vrot.slane %v3130_v18, 4  ;;  %v3260_v14 = vld [vmem:[#allocation4 + $0x10] sm:$0xe]  ;;  %v2484_v57 = vld [vmem:[#allocation4 + $0xc] sm:$0x1] }
 0x223   : > { %2443 = vst [vmem:[#allocation4 + $0x28] sm:$0xf] %v2442_v13  ;;  %2446 = vst [vmem:[#allocation4 + $0x2c] sm:$0x1] %v2445_v15  ;;  %v2398_v40 = vor.u32 %v2396_v54, %v2395_v9  ;;  %v2399_v30 = vrot.slane %v2395_v9, 4  ;;  %v2379_v31 = vrot.slane %v2377_v4, 7  ;;  %v2688_v59 = vsel %vm4841_vm12, %v3751_v52, %v2687_v36 }
 0x224   : > { %v2551_v51 = vrot.slane %v2549_v25, 5  ;;  %v2990_v49 = vrot.slane %v2955_v41, 5  ;;  %v2512_v45 = vshrl.u32 %v2483_v32, 16  ;;  %v2515_v55 = vshll.u32 %v2483_v32, 16 }
 0x225   : > { %v2460_v27 = vsel %vm4171_vm9, %v2398_v40, %v2459_v3  ;;  %v2463_v34 = vsel %vm4076_vm3, %v2399_v30, %v2462_v22  ;;  %v2382_v46 = vor.u32 %v2380_v17, %v2379_v31  ;;  %v2383_v35 = vrot.slane %v2379_v31, 4  ;;  %v2792_v3 = vld [vmem:[#allocation4 + $0xc] sm:$0x1]  ;;  %v3103_v31 = vld [vmem:[#allocation4 + $0x20] sm:$0xf] }
 0x226   : > { %2461 = vst [vmem:[#allocation4 + $0x40] sm:$0xf] %v2460_v27  ;;  %2464 = vst [vmem:[#allocation4 + $0x44] sm:$0x1] %v2463_v34  ;;  %v2808_v19 = vshrl.u32 %v2791_v47, 16  ;;  %v2811_v2 = vshll.u32 %v2791_v47, 16  ;;  %v2552_v56 = vsel %vm4165_vm8, %v2547_v44, %v2551_v51  ;;  %v3136_v20 = vor.u32 %v3135_v21, %v3132_v50 }
 0x227   : > { %v2448_v42 = vsel %vm4171_vm9, %v2382_v46, %v2447_v23  ;;  %v2451_v58 = vsel %vm4076_vm3, %v2383_v35, %v2450_v39  ;;  %v2843_v0 = vrot.slane %v2842_v48, 4  ;;  %v2991_v7 = vsel %vm4841_vm12, %v3758_v38, %v2990_v49  ;;  %v2489_v34 = vld [vmem:[#allocation4 + $0x20] sm:$0xf]  ;;  %v2798_v49 = vld [vmem:[#allocation4 + $0x24] sm:$0x1] }
 0x228   : > { %2449 = vst [vmem:[#allocation4 + $0x30] sm:$0xf] %v2448_v42  ;;  %2452 = vst [vmem:[#allocation4 + $0x34] sm:$0x1] %v2451_v58  ;;  %v3055_v11 = vld [vmem:[#allocation4 + $0x38] sm:$0xf] }
 0x229   : > { %v2748_v62 = vld [vmem:[#allocation4 + $0x38] sm:$0xf]  ;;  %3076 = vrot.lane.b32.xlu1 %v3055_v11, %s3987_s28  ;;  %v2847_v24 = vrot.slane %v2845_v61, 5  ;;  %v3139_v8 = vshll.u32 %v3102_v1, 16  ;;  %v2514_v60 = vrot.slane %v2512_v45, 4  ;;  %v2517_v43 = vrot.slane %v2515_v55, 5 }
 0x22a   : > { %2770 = vrot.lane.b32.xlu0 %v2748_v62, %s3989_s21  ;;  %v2810_v10 = vrot.slane %v2808_v19, 4  ;;  %v2813_v9 = vrot.slane %v2811_v2, 5  ;;  %v3137_v4 = vrot.slane %v3136_v20, 4  ;;  %v3765_v16 = vrot.slane %v3260_v14, 9  ;;  %v3053_v46 = vld [vmem:[#allocation4 + $0x28] sm:$0xf] }
 0x22b   : > { %v2848_v54 = vsel %vm4165_vm8, %v2843_v0, %v2847_v24  ;;  %v3141_v13 = vrot.slane %v3139_v8, 5  ;;  %v2521_v15 = vshll.u32 %v2484_v57, 16  ;;  %v2817_v22 = vshll.u32 %v2792_v3, 16  ;;  %v2746_v35 = vld [vmem:[#allocation4 + $0x28] sm:$0xf] }
 0x22c   : > { %v2518_v23 = vor.u32 %v2517_v43, %v2514_v60  ;;  %v2814_v18 = vor.u32 %v2813_v9, %v2810_v10  ;;  %v3295_v30 = vsel %vm4841_vm12, %v3765_v16, %v3294_v12  ;;  %v2850_v39 = vshrl.u32 %v2797_v26, 16  ;;  %v2656_v44 = vld [vmem:[#allocation4 + $0x38] sm:$0xe]  ;;  %v2657_v36 = vld [vmem:[#allocation4 + $0x3c] sm:$0x1] }
 0x22d   : > { %2615 = vrot.lane.b32.xlu1 %v2552_v56, %s3983_s30  ;;  %v3142_v40 = vsel %vm4165_vm8, %v3137_v4, %v3141_v13  ;;  %v2523_v17 = vrot.slane %v2521_v15, 5  ;;  %v2819_v5 = vrot.slane %v2817_v22, 5  ;;  %v2853_v25 = vshll.u32 %v2797_v26, 16  ;;  %v2964_v37 = vld [vmem:[#allocation4 + $0x38] sm:$0xe] }
 0x22e   : > { %2713 = vrot.lane.b32.xlu0 %v2688_v59, %s3984_s12  ;;  %v2519_v52 = vrot.slane %v2518_v23, 4  ;;  %v2815_v33 = vrot.slane %v2814_v18, 4  ;;  %v3144_v63 = vshrl.u32 %v3103_v31, 16  ;;  %v3147_v27 = vshll.u32 %v3103_v31, 16  ;;  %v2965_v41 = vld [vmem:[#allocation4 + $0x3c] sm:$0x1] }
 0x22f   : > { %v2852_v42 = vrot.slane %v2850_v39, 4  ;;  %v2855_v58 = vrot.slane %v2853_v25, 5  ;;  %v2554_v29 = vshrl.u32 %v2489_v34, 16  ;;  %v2557_v50 = vshll.u32 %v2489_v34, 16  ;;  %v3104_v61 = vld [vmem:[#allocation4 + $0x24] sm:$0x1] }
 0x230   : > { %v2524_v21 = vsel %vm4165_vm8, %v2519_v52, %v2523_v17  ;;  %v2820_v32 = vsel %vm4165_vm8, %v2815_v33, %v2819_v5  ;;  %v3146_v11 = vrot.slane %v3144_v63, 4  ;;  %v3149_v62 = vrot.slane %v3147_v27, 5  ;;  %v2490_v45 = vld [vmem:[#allocation4 + $0x24] sm:$0x1]  ;;  %v2485_v2 = vld [vmem:[#allocation4 + $0x10] sm:$0xf] }
 0x231   : > { %3018 = vrot.lane.b32.xlu1 %v2991_v7, %s3991_s23  ;;  %v3756_v48 = vrot.slane %v2656_v44, 9  ;;  %v2707_v47 = vrot.slane %v2657_v36, 5  ;;  %v3763_v51 = vrot.slane %v2964_v37, 9  ;;  %v3010_v38 = vrot.slane %v2965_v41, 5  ;;  %v2793_v59 = vld [vmem:[#allocation4 + $0x10] sm:$0xf] }
 0x232   : > { %2923 = vrot.lane.b32.xlu0 %v2848_v54, %s3992_s24  ;;  %v2856_v1 = vor.u32 %v2855_v58, %v2852_v42  ;;  %v2556_v55 = vrot.slane %v2554_v29, 4  ;;  %v2559_v19 = vrot.slane %v2557_v50, 5  ;;  %v3150_v56 = vor.u32 %v3149_v62, %v3146_v11  ;;  %v3266_v10 = vld [vmem:[#allocation4 + $0x28] sm:$0xe]  ;;  %v3099_v54 = vld [vmem:[#allocation4 + $0x10] sm:$0xf] }
 0x233   : > { %v2708_v0 = vsel %vm4841_vm12, %v3756_v48, %v2707_v47  ;;  %v3011_v20 = vsel %vm4841_vm12, %v3763_v51, %v3010_v38  ;;  %v2859_v14 = vshll.u32 %v2798_v49, 16  ;;  %v3153_v6 = vshll.u32 %v3104_v61, 16  ;;  %v2749_v4 = vld [vmem:[#allocation4 + $0x40] sm:$0xf]  ;;  %v3267_v12 = vld [vmem:[#allocation4 + $0x2c] sm:$0x1] }
 0x234   : > { %v2563_v7 = vshll.u32 %v2490_v45, 16  ;;  %v2526_v24 = vshrl.u32 %v2485_v2, 16  ;;  %v2857_v8 = vrot.slane %v2856_v1, 4  ;;  %v2560_v57 = vor.u32 %v2559_v19, %v2556_v55  ;;  %v3056_v16 = vld [vmem:[#allocation4 + $0x40] sm:$0xf] }
 0x235   : > { %3229 = vrot.lane.b32.xlu1 %v3142_v40, %s3988_s29  ;;  %v2529_v60 = vshll.u32 %v2485_v2, 16  ;;  %v2822_v43 = vshrl.u32 %v2793_v59, 16  ;;  %v3151_v3 = vrot.slane %v3150_v56, 4  ;;  %v2825_v9 = vshll.u32 %v2793_v59, 16  ;;  %v2486_v5 = vld [vmem:[#allocation4 + $0x14] sm:$0x1] }
 0x236   : > { %3324 = vrot.lane.b32.xlu0 %v3295_v30, %s3990_s22  ;;  %v2861_v13 = vrot.slane %v2859_v14, 5  ;;  %v3155_v15 = vrot.slane %v3153_v6, 5  ;;  %v2565_v22 = vrot.slane %v2563_v7, 5  ;;  %v2528_v23 = vrot.slane %v2526_v24, 4  ;;  %v2960_v63 = vld [vmem:[#allocation4 + $0x28] sm:$0xe] }
 0x237   : > { %v2561_v18 = vrot.slane %v2560_v57, 4  ;;  %v2531_v26 = vrot.slane %v2529_v60, 5  ;;  %v2824_v40 = vrot.slane %v2822_v43, 4  ;;  %v3116_v30 = vshrl.u32 %v3099_v54, 16  ;;  %v2961_v27 = vld [vmem:[#allocation4 + $0x2c] sm:$0x1] }
 0x238   : > { %v3768_v31 = vrot.slane %v3266_v10, 9  ;;  %v3306_v17 = vrot.slane %v3267_v12, 5  ;;  %v2827_v39 = vrot.slane %v2825_v9, 5  ;;  %v3119_v25 = vshll.u32 %v3099_v54, 16  ;;  %v2652_v34 = vld [vmem:[#allocation4 + $0x28] sm:$0xe] }
 0x239   : > { %3072 = vrot.lane.b32.xlu1 %v3053_v46, %s3987_s28  ;;  %v2862_v52 = vsel %vm4165_vm8, %v2857_v8, %v2861_v13  ;;  %v3156_v33 = vsel %vm4165_vm8, %v3151_v3, %v3155_v15  ;;  %v2794_v46 = vld [vmem:[#allocation4 + $0x14] sm:$0x1]  ;;  %v2472_v44 = vld [vmem:[#allocation4 + $0x38] sm:$0xf]  ;;  %v2470_v36 = vld [vmem:[#allocation4 + $0x28] sm:$0xf]  ;;  %v2566_v29 = vsel %vm4165_vm8, %v2561_v18, %v2565_v22  ;;  %v2532_v47 = vor.u32 %v2531_v26, %v2528_v23 }
 0x23a   : > { %2766 = vrot.lane.b32.xlu0 %v2746_v35, %s3989_s21  ;;  %v2653_v35 = vld [vmem:[#allocation4 + $0x2c] sm:$0x1]  ;;  %v2535_v37 = vshll.u32 %v2486_v5, 16  ;;  %v3100_v41 = vld [vmem:[#allocation4 + $0x14] sm:$0x1]  ;;  %v3307_v58 = vsel %vm4841_vm12, %v3768_v31, %v3306_v17  ;;  %v3118_v50 = vrot.slane %v3116_v30, 4  ;;  %v2828_v51 = vor.u32 %v2827_v39, %v2824_v40 }
 0x23b   : > { %2480 = vst.msk [vmem:[#allocation5 + $0x1c] sm:$0xf] %vm393_vm0, %v2472_v44  ;;  %2478 = vst.msk [vmem:[#allocation5 + $0x14] sm:$0xf] %vm393_vm0, %v2470_v36  ;;  %v2471_v42 = vld [vmem:[#allocation4 + $0x30] sm:$0xf] }
 0x23c   : > { %2479 = vst.msk [vmem:[#allocation5 + $0x18] sm:$0xf] %vm393_vm0, %v2471_v42  ;;  %v3002_v11 = vrot.slane %v2961_v27, 5  ;;  %v3754_v62 = vrot.slane %v2652_v34, 9  ;;  %v2699_v48 = vrot.slane %v2653_v35, 5  ;;  %v2831_v38 = vshll.u32 %v2794_v46, 16 }
 0x23d   : > { %2611 = vrot.lane.b32.xlu1 %v2524_v21, %s3983_s30  ;;  %v3121_v21 = vrot.slane %v3119_v25, 5  ;;  %v3125_v49 = vshll.u32 %v3100_v41, 16  ;;  %v2495_v61 = vld [vmem:[#allocation4 + $0x38] sm:$0xf]  ;;  %v2537_v1 = vrot.slane %v2535_v37, 5  ;;  %vm2782_vm3 = vcmask 257216  }
 0x23e   : > { %2919 = vrot.lane.b32.xlu0 %v2820_v32, %s3992_s24  ;;  %v3761_v32 = vrot.slane %v2960_v63, 9  ;;  %v2700_v19 = vsel %vm4841_vm12, %v3754_v62, %v2699_v48  ;;  %v2496_v2 = vld [vmem:[#allocation4 + $0x3c] sm:$0x1]  ;;  %v2596_v56 = vshrl.u32 %v2495_v61, 16  ;;  %v2599_v59 = vshll.u32 %v2495_v61, 16 }
 0x23f   : > { %v3122_v45 = vor.u32 %v3121_v21, %v3118_v50  ;;  %v2829_v14 = vrot.slane %v2828_v51, 4  ;;  %v2833_v6 = vrot.slane %v2831_v38, 5  ;;  %v5034_v7 = vrot.slane %v3125_v49, 5  ;;  %v3054_v24 = vld [vmem:[#allocation4 + $0x30] sm:$0xf]  ;;  %v3958_v34 = vld [vmem:[%s5274_s7 + $0x18] sm:$0xff]  }
 0x240   : > { %v3003_v55 = vsel %vm4841_vm12, %v3761_v32, %v3002_v11  ;;  %v2966_v8 = vld [vmem:[#allocation4 + $0x40] sm:$0xe]  ;;  %v2967_v57 = vld [vmem:[#allocation4 + $0x44] sm:$0x1]  ;;  %v3109_v60 = vld [vmem:[#allocation4 + $0x38] sm:$0xf] }
 0x241   : > { %2723 = vrot.lane.b32.xlu1 %v2708_v0, %s3984_s12  ;;  %v2803_v0 = vld [vmem:[#allocation4 + $0x38] sm:$0xf]  ;;  %v2747_v43 = vld [vmem:[#allocation4 + $0x30] sm:$0xf]  ;;  %v2605_v9 = vshll.u32 %v2496_v2, 16  ;;  %v2598_v12 = vrot.slane %v2596_v56, 4  ;;  %v2834_v39 = vsel %vm4165_vm8, %v2829_v14, %v2833_v6 }
 0x242   : > { %3028 = vrot.lane.b32.xlu0 %v3011_v20, %s3991_s23  ;;  %v2533_v20 = vrot.slane %v2532_v47, 4  ;;  %v2654_v10 = vld [vmem:[#allocation4 + $0x30] sm:$0xe]  ;;  %v2892_v54 = vshrl.u32 %v2803_v0, 16  ;;  %v2601_v13 = vrot.slane %v2599_v59, 5  ;;  %v2895_v15 = vshll.u32 %v2803_v0, 16 }
 0x243   : > { %v3764_v22 = vrot.slane %v2966_v8, 9  ;;  %v3014_v23 = vrot.slane %v2967_v57, 5  ;;  %v3186_v18 = vshrl.u32 %v3109_v60, 16  ;;  %v3189_v26 = vshll.u32 %v3109_v60, 16  ;;  %v2799_v40 = vld [vmem:[#allocation4 + $0x28] sm:$0xf] }
 0x244   : > { %v2538_v30 = vsel %vm4165_vm8, %v2533_v20, %v2537_v1  ;;  %v3755_v31 = vrot.slane %v2654_v10, 9  ;;  %v2804_v17 = vld [vmem:[#allocation4 + $0x3c] sm:$0x1]  ;;  %v3957_v5 = vld [vmem:[%s5274_s7 + $0x20] ss:$0 sps:$4 sm:$0xff]   ;;  %vm3441_vm0 = vcmask 1043456   ;;  %v2602_v46 = vor.u32 %v2601_v13, %v2598_v12 }
 0x245   : > { %2772 = vrot.lane.b32.xlu1 %v2749_v4, %s3989_s21  ;;  %v3123_v4 = vrot.slane %v3122_v45, 4  ;;  %v2894_v63 = vrot.slane %v2892_v54, 4  ;;  %v3105_v27 = vld [vmem:[#allocation4 + $0x28] sm:$0xf]  ;;  %v2897_v35 = vrot.slane %v2895_v15, 5  ;;  %v2864_v36 = vshrl.u32 %v2799_v40, 16  ;;  %3927 = vmatprep.subr.msk.bf16.mxu1 %vm3441_vm0, %v3957_v5 }
 0x246   : > { %3078 = vrot.lane.b32.xlu0 %v3056_v16, %s3987_s28  ;;  %v2655_v16 = vld [vmem:[#allocation4 + $0x34] sm:$0x1]  ;;  %v5051_v44 = vld [vmem:[#allocation4 + $0x30] sm:$0xe]  ;;  %v3443_v37 = vsel %vm3441_vm0, %v3957_v5, 0  ;;  %v2901_v41 = vshll.u32 %v2804_v17, 16  ;;  %v3015_v48 = vsel %vm4841_vm12, %v3764_v22, %v3014_v23 }
 0x247   : > { %v2703_v25 = vrot.slane %v2655_v16, 5  ;;  %v3188_v42 = vrot.slane %v3186_v18, 4  ;;  %v2963_v50 = vld [vmem:[#allocation4 + $0x34] sm:$0x1]  ;;  %v3158_v21 = vshrl.u32 %v3105_v27, 16  ;;  %v3161_v32 = vshll.u32 %v3105_v27, 16  ;;  %3899 = vmatpush3.bf16.msra.mxu1 %v3443_v37 }
 0x248   : > { %v3111_v11 = vld [vmem:[#allocation4 + $0x40] sm:$0xf]  ;;  %v3128_v62 = vsel %vm4165_vm8, %v3123_v4, %v5034_v7  ;;  %v3762_v47 = vrot.slane %v5051_v44, 9  ;;  %v3268_v51 = vld [vmem:[#allocation4 + $0x30] sm:$0xe]  ;;  %3900 = vmatprep.subr.bf16.mxu1 %v3958_v34  ;;  %v2603_v1 = vrot.slane %v2602_v46, 4  ;;  %v2898_v45 = vor.u32 %v2897_v35, %v2894_v63 }
 0x249   : > { %2925 = vrot.lane.b32.xlu1 %v2862_v52, %s3992_s24  ;;  %v2607_v52 = vrot.slane %v2605_v9, 5  ;;  %v2491_v38 = vld [vmem:[#allocation4 + $0x28] sm:$0xf]  ;;  %v3960_v49 = vld [vmem:[%s5274_s7 + $0x10] sm:$0xff]   ;;  %v2704_v61 = vsel %vm4841_vm12, %v3755_v31, %v2703_v25  ;;  %v2866_v2 = vrot.slane %v2864_v36, 4  ;;  %v3200_v20 = vshrl.u32 %v3111_v11, 16 }
 0x24a   : > { %3231 = vrot.lane.b32.xlu0 %v3156_v33, %s3988_s29  ;;  %v2800_v59 = vld [vmem:[#allocation4 + $0x2c] sm:$0x1]  ;;  %v3203_v14 = vshll.u32 %v3111_v11, 16  ;;  %v3160_v6 = vrot.slane %v3158_v21, 4  ;;  %v3163_v7 = vrot.slane %v3161_v32, 5  ;;  %v2571_v8 = vshll.u32 %v2491_v38, 16 }
 0x24b   : > { %3901 = vmatpush3.bf16.msra.mxu1 %v3958_v34  ;;  %v2903_v57 = vrot.slane %v2901_v41, 5  ;;  %v3006_v60 = vrot.slane %v2963_v50, 5  ;;  %v2493_v9 = vld [vmem:[#allocation4 + $0x30] sm:$0xf]  ;;  %v2608_v54 = vsel %vm4165_vm8, %v2603_v1, %v2607_v52  ;;  %v2899_v4 = vrot.slane %v2898_v45, 4  ;;  %v3961_v5 = vld [vmem:[%s5274_s7 + $0x8] sm:$0xff]  }
 0x24c   : > { %3902 = vmatprep.subr.bf16.mxu1 %v3960_v49  ;;  %v2873_v12 = vshll.u32 %v2800_v59, 16  ;;  %v2805_v13 = vld [vmem:[#allocation4 + $0x40] sm:$0xf]  ;;  %v3106_v23 = vld [vmem:[#allocation4 + $0x2c] sm:$0x1]  ;;  %v3202_v18 = vrot.slane %v3200_v20, 4 }
 0x24d   : > { %3330 = vrot.lane.b32.xlu1 %v3307_v58, %s3990_s22  ;;  %v3191_v58 = vrot.slane %v3189_v26, 5  ;;  %v3205_v26 = vrot.slane %v3203_v14, 5  ;;  %v2573_v31 = vrot.slane %v2571_v8, 5  ;;  %v2582_v17 = vshrl.u32 %v2493_v9, 16  ;;  %v3112_v46 = vld [vmem:[#allocation4 + $0x44] sm:$0x1] }
 0x24e   : > { %2617 = vrot.lane.b32.xlu0 %v2566_v29, %s3983_s30  ;;  %v2867_v29 = vshll.u32 %v2799_v40, 16  ;;  %v3164_v40 = vor.u32 %v3163_v7, %v3160_v6  ;;  %v2585_v25 = vshll.u32 %v2493_v9, 16  ;;  %v2906_v52 = vshrl.u32 %v2805_v13, 16  ;;  %v2492_v35 = vld [vmem:[#allocation4 + $0x2c] sm:$0x1] }
 0x24f   : > { %v3192_v56 = vor.u32 %v3191_v58, %v3188_v42  ;;  %3903 = vmatpush3.bf16.msra.mxu1 %v3960_v49  ;;  %v2904_v63 = vsel %vm4165_vm8, %v2899_v4, %v2903_v57  ;;  %v3007_v27 = vsel %vm4841_vm12, %v3762_v47, %v3006_v60  ;;  %v3167_v34 = vshll.u32 %v3106_v23, 16  ;;  %v3107_v42 = vld [vmem:[#allocation4 + $0x30] sm:$0xf]  ;;  %v3518_v11 = vld [vmem:[%s5276_s9] sm:$0x3] }
 0x250   : > { %v2869_v0 = vrot.slane %v2867_v29, 5  ;;  %3904 = vmatprep.subr.bf16.mxu1 %v3961_v5  ;;  %v2875_v41 = vrot.slane %v2873_v12, 5  ;;  %v2801_v58 = vld [vmem:[#allocation4 + $0x30] sm:$0xf]  ;;  %v3165_v29 = vrot.slane %v3164_v40, 4  ;;  %v3206_v50 = vor.u32 %v3205_v26, %v3202_v18  ;;  %3928 = vmatprep.subr.msk.bf16.mxu0 %vm2197_vm14, %v3518_v11 }
 0x251   : > { %2719 = vrot.lane.b32.xlu1 %v2700_v19, %s3984_s12  ;;  %v3110_v19 = vld [vmem:[#allocation4 + $0x3c] sm:$0x1]  ;;  %v3193_v15 = vrot.slane %v3192_v56, 4  ;;  %v2584_v32 = vrot.slane %v2582_v17, 4  ;;  %v2587_v47 = vrot.slane %v2585_v25, 5  ;;  %v3560_v49 = vsel %vm2197_vm14, %v3518_v11, 0 }
 0x252   : > { %3024 = vrot.lane.b32.xlu0 %v3003_v55, %s3991_s23  ;;  %v3269_v55 = vld [vmem:[#allocation4 + $0x34] sm:$0x1]  ;;  %v3195_v10 = vshll.u32 %v3110_v19, 16  ;;  %v2870_v22 = vor.u32 %v2869_v0, %v2866_v2  ;;  %v3175_v1 = vshll.u32 %v3107_v42, 16  ;;  %v2878_v45 = vshrl.u32 %v2801_v58, 16  ;;  %3917 = vmatpush3.bf16.msra.mxu0 %v3560_v49 }
 0x253   : > { %v5036_v3 = vpop.permute.xlu0 %2762  ;;  %v3310_v16 = vrot.slane %v3269_v55, 5  ;;  %3905 = vmatpush3.bf16.msra.mxu1 %v3961_v5  ;;  %v2881_v55 = vshll.u32 %v2801_v58, 16  ;;  %v3169_v19 = vrot.slane %v3167_v34, 5  ;;  %v3209_v2 = vshll.u32 %v3112_v46, 16  ;;  %v2494_v6 = vld [vmem:[#allocation4 + $0x34] sm:$0x1] }
 0x254   : > { %v2871_v37 = vrot.slane %v2870_v22, 4  ;;  %v2577_v56 = vshll.u32 %v2492_v35, 16  ;;  %v3207_v0 = vrot.slane %v3206_v50, 4  ;;  %v2588_v7 = vor.u32 %v2587_v47, %v2584_v32  ;;  %v3108_v18 = vld [vmem:[#allocation4 + $0x34] sm:$0x1] }
 0x255   : > { %2768 = vrot.lane.b32.xlu1 %v2747_v43, %s3989_s21  ;;  %v3769_v43 = vrot.slane %v3268_v51, 9  ;;  %v2908_v51 = vrot.slane %v2906_v52, 4  ;;  %v3170_v20 = vsel %vm4165_vm8, %v3165_v29, %v3169_v19  ;;  %v3177_v60 = vrot.slane %v3175_v1, 5  ;;  %v2802_v26 = vld [vmem:[#allocation4 + $0x34] sm:$0x1] }
 0x256   : > { %3074 = vrot.lane.b32.xlu0 %v3054_v24, %s3987_s28  ;;  %v2568_v24 = vshrl.u32 %v2491_v38, 16  ;;  %v2876_v59 = vsel %vm4165_vm8, %v2871_v37, %v2875_v41  ;;  %v2579_v4 = vrot.slane %v2577_v56, 5  ;;  %vm3546_vm9 = vcmask 31744   ;;  %v3967_v37 = vld [vmem:[%s4103_s25 + $0x30] ss:$8 sps:$4 sm:$0xff]  }
 0x257   : > { %v2759_v33 = vpop.permute.xlu0 %2758  ;;  %v3311_v44 = vsel %vm4841_vm12, %v3769_v43, %v3310_v16  ;;  %v2880_v43 = vrot.slane %v2878_v45, 4  ;;  %v3963_v16 = vld [vmem:[%s4103_s25] ss:$8 sps:$4 sm:$0xff]   ;;  %v2591_v12 = vshll.u32 %v2494_v6, 16  ;;  %v2589_v40 = vrot.slane %v2588_v7, 4 }
 0x258   : > { %2783 = vst.msk [vmem:[#allocation5] sm:$0xf] %vm2782_vm3, %v2759_v33  ;;  %v2909_v33 = vshll.u32 %v2805_v13, 16  ;;  %3918 = vmatprep.mubr.msk.bf16.mxu0 %vm3546_vm9, %v3963_v16  ;;  %v3181_v25 = vshll.u32 %v3108_v18, 16  ;;  %v2887_v52 = vshll.u32 %v2802_v26, 16  ;;  %vm3040_vm14 = vcmask 388416  }
 0x259   : > { %2921 = vrot.lane.b32.xlu1 %v2834_v39, %s3992_s24  ;;  %v3197_v39 = vrot.slane %v3195_v10, 5  ;;  %v2883_v10 = vrot.slane %v2881_v55, 5  ;;  %v2593_v5 = vrot.slane %v2591_v12, 5  ;;  %v3270_v41 = vld [vmem:[#allocation4 + $0x38] sm:$0xe] }
 0x25a   : > { %2613 = vrot.lane.b32.xlu0 %v2538_v30, %s3983_s30  ;;  %v2570_v30 = vrot.slane %v2568_v24, 4  ;;  %v2911_v38 = vrot.slane %v2909_v33, 5  ;;  %v2806_v24 = vld [vmem:[#allocation4 + $0x44] sm:$0x1]  ;;  %v3183_v58 = vrot.slane %v3181_v25, 5  ;;  %v2889_v29 = vrot.slane %v2887_v52, 5 }
 0x25b   : > { %v3198_v36 = vsel %vm4165_vm8, %v3193_v15, %v3197_v39  ;;  %v2915_v13 = vshll.u32 %v2806_v24, 16  ;;  %v3964_v15 = vld [vmem:[%s4103_s25 + $0x10] ss:$8 sps:$4 sm:$0xff]   ;;  %v2884_v17 = vor.u32 %v2883_v10, %v2880_v43  ;;  %v2594_v34 = vsel %vm4165_vm8, %v2589_v40, %v2593_v5  ;;  %v3274_v32 = vld [vmem:[#allocation4 + $0x48] sm:$0xe] }
 0x25c   : > { %v2574_v21 = vor.u32 %v2573_v31, %v2570_v30  ;;  %v2912_v8 = vor.u32 %v2911_v38, %v2908_v51  ;;  %3919 = vmatmul.mubr.msk.bf16.vlgmr.msra.gmra.mxu0 %vm3546_vm9, %v3964_v15  ;;  %v3275_v11 = vld [vmem:[#allocation4 + $0x4c] sm:$0x1]  ;;  %v3770_v51 = vrot.slane %v3270_v41, 9  ;;  %v3772_v1 = vrot.slane %v3274_v32, 9 }
 0x25d   : > { %3030 = vrot.lane.b32.xlu1 %v3015_v48, %s3991_s23  ;;  %v5091_v48 = vpop.permute.xlu1 %3080  ;;  %v2917_v39 = vrot.slane %v2915_v13, 5  ;;  %v3322_v45 = vrot.slane %v3275_v11, 5 }
 0x25e   : > { %3227 = vrot.lane.b32.xlu0 %v3128_v62, %s3988_s29  ;;  %v3962_v62 = vld [vmem:[%s5274_s7] sm:$0xff]   ;;  %v2575_v14 = vrot.slane %v2574_v21, 4  ;;  %v2913_v30 = vrot.slane %v2912_v8, 4 }
 0x25f   : > { %3906 = vmatprep.subr.bf16.mxu1 %v3962_v62  ;;  %v3323_v19 = vsel %vm4841_vm12, %v3772_v1, %v3322_v45 }
 0x260   : > { %3907 = vmatpush3.bf16.msra.mxu1 %v3962_v62  ;;  %v2580_v23 = vsel %vm4165_vm8, %v2575_v14, %v2579_v4  ;;  %v2918_v46 = vsel %vm4165_vm8, %v2913_v30, %v2917_v39 }
 0x261   : > { %2623 = vrot.lane.b32.xlu1 %v2608_v54, %s3983_s30  ;;  %v5101_v9 = vpop.permute.xlu1 %3241  ;;  %v3211_v54 = vrot.slane %v3209_v2, 5 }
 0x262   : > { %2721 = vrot.lane.b32.xlu0 %v2704_v61, %s3984_s12  ;;  %v3172_v61 = vshrl.u32 %v3107_v42, 16  ;;  %v3271_v42 = vld [vmem:[#allocation4 + $0x3c] sm:$0x1] }
 0x263   : > { %v3212_v22 = vsel %vm4165_vm8, %v3207_v0, %v3211_v54  ;;  %v3314_v38 = vrot.slane %v3271_v42, 5 }
 0x264   : > { %v3174_v57 = vrot.slane %v3172_v61, 4  ;;  %v5131_v61 = vpop.permute.xlu0 %3020 }
 0x265   : > { %3026 = vrot.lane.b32.xlu1 %v3007_v27, %s3991_s23  ;;  %v5115_v33 = vpop.permute.xlu1 %3068  ;;  %v3273_v27 = vld [vmem:[#allocation4 + $0x44] sm:$0x1]  ;;  %v3315_v28 = vsel %vm4841_vm12, %v3770_v51, %v3314_v38 }
 0x266   : > { %2931 = vrot.lane.b32.xlu0 %v2904_v63, %s3992_s24  ;;  %v3178_v31 = vor.u32 %v3177_v60, %v3174_v57  ;;  %v3272_v63 = vld [vmem:[#allocation4 + $0x40] sm:$0xe]  ;;  %v3318_v21 = vrot.slane %v3273_v27, 5 }
 0x267   : > { %v3771_v50 = vrot.slane %v3272_v63, 9 }
 0x268   : > { %v3179_v35 = vrot.slane %v3178_v31, 4  ;;  %v5145_v56 = vpop.permute.xlu0 %3070 }
 0x269   : > { %3237 = vrot.lane.b32.xlu1 %v3198_v36, %s3988_s29  ;;  %v3966_v36 = vld [vmem:[%s4103_s25 + $0x20] ss:$8 sps:$4 sm:$0xff]   ;;  %v2716_v49 = vpop.permute.xlu1 %2715  ;;  %v3319_v55 = vsel %vm4841_vm12, %v3771_v50, %v3318_v21 }
 0x26a   : > { %3332 = vrot.lane.b32.xlu0 %v3311_v44, %s3990_s22  ;;  %v2885_v44 = vrot.slane %v2884_v17, 4  ;;  %3922 = vmatprep.mubr.msk.bf16.mxu0 %vm3546_vm9, %v3966_v36  ;;  %v3184_v62 = vsel %vm4165_vm8, %v3179_v35, %v3183_v58 }
 0x26b   : > { %3923 = vmatmul.mubr.msk.bf16.gmra.mxu0 %vm3546_vm9, %v3967_v37 }
 0x26c   : > { %v2890_v47 = vsel %vm4165_vm8, %v2885_v44, %v2889_v29  ;;  %v3017_v0 = vpop.permute.xlu0 %3016  ;;  %vm2943_vm8 = vcmask 322816  }
 0x26d   : > { %3233 = vrot.lane.b32.xlu1 %v3170_v20, %s3988_s29  ;;  %v5143_v2 = vpop.permute.xlu1 %3326 }
 0x26e   : > { %2927 = vrot.lane.b32.xlu0 %v2876_v59, %s3992_s24 }
 0x270   : > { %v3067_v14 = vpop.permute.xlu0 %3066 }
 0x271   : > { %2619 = vrot.lane.b32.xlu1 %v2580_v23, %s3983_s30  ;;  %v2765_v59 = vpop.permute.xlu1 %2764 }
 0x272   : > { %3239 = vrot.lane.b32.xlu0 %v3212_v22, %s3988_s29 }
 0x274   : > { %v5148_v7 = vpop.permute.xlu0 %3328 }
 0x275   : > { %2933 = vrot.lane.b32.xlu1 %v2918_v46, %s3992_s24  ;;  %v2712_v20 = vpop.permute.xlu1 %2711 }
 0x276   : > { %2621 = vrot.lane.b32.xlu0 %v2594_v34, %s3983_s30 }
 0x278   : > { %v2718_v8 = vpop.permute.xlu0 %2717 }
 0x279   : > { %2929 = vrot.lane.b32.xlu1 %v2890_v47, %s3992_s24  ;;  %v2761_v6 = vpop.permute.xlu1 %2760  ;;  %s3799_s24 = sshll.u32 %s5292_s18, 6 }
 0x27a   : > { %3235 = vrot.lane.b32.xlu0 %v3184_v62, %s3988_s29  ;;  %s5246_s28 = scalar_lea.vmem %s5278_s11, %s3799_s24 }
 0x27d   : > { %3334 = vrot.lane.b32.xlu1 %v3315_v28, %s3990_s22  ;;  %v3023_v24 = vpop.permute.xlu1 %3022  ;;  %v3773_v28 = vld [vmem:[%s5275_s8] ss:$0 sm:$0xff] }
 0x27e   : > { %3336 = vrot.lane.b32.xlu0 %v3319_v55, %s3990_s22  ;;  %v3787_v55 = vld [vmem:[%s5277_s10] ss:$0 sm:$0xff] }
 0x281   : > { %3338 = vrot.lane.b32.xlu1 %v3323_v19, %s3990_s22 }
 0x29b   : > { %v5150_v57 = vpop.permute.xlu1 %3076 }
 0x29c   : > { %v5152_v60 = vpop.permute.xlu0 %2770 }
 0x29f   : > { %v2616_v53 = vpop.permute.xlu1 %2615 }
 0x2a0   : > { %v2714_v43 = vpop.permute.xlu0 %2713  ;;  %2637 = vst.msk [vmem:[#allocation5 + $0xc] sm:$0xf] %vm2633_vm5, %v2616_v53 }
 0x2a1   : > { %2737 = vst.msk [vmem:[#allocation5 + $0xc] sm:$0xf] %vm2733_vm13, %v2716_v49 }
 0x2a2   : > { %2786 = vst.msk [vmem:[#allocation5 + $0xc] sm:$0xf] %vm2782_vm3, %v2765_v59 }
 0x2a3   : > { %v3019_v10 = vpop.permute.xlu1 %3018 }
 0x2a4   : > { %v2924_v54 = vpop.permute.xlu0 %2923 }
 0x2a7   : > { %v3230_v4 = vpop.permute.xlu1 %3229 }
 0x2a8   : > { %v3325_v16 = vpop.permute.xlu0 %3324 }
 0x2ab   : > { %v3073_v12 = vpop.permute.xlu1 %3072 }
 0x2ac   : > { %v2767_v13 = vpop.permute.xlu0 %2766 }
 0x2af   : > { %v2612_v15 = vpop.permute.xlu1 %2611 }
 0x2b0   : > { %v2920_v22 = vpop.permute.xlu0 %2919  ;;  %2635 = vst.msk [vmem:[#allocation5 + $0x4] sm:$0xf] %vm2633_vm5, %v2612_v15 }
 0x2b1   : > { %2944 = vst.msk [vmem:[#allocation5] sm:$0xf] %vm2943_vm8, %v2920_v22 }
 0x2b2   : > { %2735 = vst.msk [vmem:[#allocation5 + $0x4] sm:$0xf] %vm2733_vm13, %v2712_v20 }
 0x2b3   : > { %3041 = vst.msk [vmem:[#allocation5] sm:$0xf] %vm3040_vm14, %v3017_v0  ;;  %v2724_v23 = vpop.permute.xlu1 %2723 }
 0x2b4   : > { %2784 = vst.msk [vmem:[#allocation5 + $0x4] sm:$0xf] %vm2782_vm3, %v2761_v6  ;;  %v5163_v18 = vpop.permute.xlu0 %3028 }
 0x2b5   : > { %3091 = vst.msk [vmem:[#allocation5] sm:$0xf] %vm3090_vm15, %v3067_v14 }
 0x2b7   : > { %v2773_v26 = vpop.permute.xlu1 %2772 }
 0x2b8   : > { %v5165_v40 = vpop.permute.xlu0 %3078 }
 0x2bb   : > { %v2926_v30 = vpop.permute.xlu1 %2925 }
 0x2bc   : > { %v3232_v31 = vpop.permute.xlu0 %3231  ;;  %2947 = vst.msk [vmem:[#allocation5 + $0xc] sm:$0xf] %vm2943_vm8, %v2926_v30 }
 0x2bd   : > { %3044 = vst.msk [vmem:[#allocation5 + $0xc] sm:$0xf] %vm3040_vm14, %v3023_v24 }
 0x2be   : > { %3094 = vst.msk [vmem:[#allocation5 + $0xc] sm:$0xf] %vm3090_vm15, %v3073_v12 }
 0x2bf   : > { %v3331_v17 = vpop.permute.xlu1 %3330 }
 0x2c0   : > { %v2618_v5 = vpop.permute.xlu0 %2617 }
 0x2c1   : > { %2638 = vst.msk [vmem:[#allocation5 + $0x10] sm:$0xf] %vm2633_vm5, %v2618_v5 }
 0x2c2   : > { %2738 = vst.msk [vmem:[#allocation5 + $0x10] sm:$0xf] %vm2733_vm13, %v2718_v8 }
 0x2c3   : > { %2787 = vst.msk [vmem:[#allocation5 + $0x10] sm:$0xf] %vm2782_vm3, %v2767_v13  ;;  %v2720_v39 = vpop.permute.xlu1 %2719 }
 0x2c4   : > { %v3025_v25 = vpop.permute.xlu0 %3024 }
 0x2c7   : > { %v2769_v52 = vpop.permute.xlu1 %2768 }
 0x2c8   : > { %v3075_v63 = vpop.permute.xlu0 %3074 }
 0x2cb   : > { %v2922_v27 = vpop.permute.xlu1 %2921 }
 0x2cc   : > { %v2614_v34 = vpop.permute.xlu0 %2613  ;;  %2945 = vst.msk [vmem:[#allocation5 + $0x4] sm:$0xf] %vm2943_vm8, %v2922_v27 }
 0x2cd   : > { %2636 = vst.msk [vmem:[#allocation5 + $0x8] sm:$0xf] %vm2633_vm5, %v2614_v34 }
 0x2ce   : > { %3042 = vst.msk [vmem:[#allocation5 + $0x4] sm:$0xf] %vm3040_vm14, %v3019_v10 }
 0x2cf   : > { %2736 = vst.msk [vmem:[#allocation5 + $0x8] sm:$0xf] %vm2733_vm13, %v2714_v43  ;;  %v3031_v46 = vpop.permute.xlu1 %3030 }
 0x2d0   : > { %3092 = vst.msk [vmem:[#allocation5 + $0x4] sm:$0xf] %vm3090_vm15, %v5115_v33  ;;  %v3228_v35 = vpop.permute.xlu0 %3227 }
 0x2d1   : > { %2785 = vst.msk [vmem:[#allocation5 + $0x8] sm:$0xf] %vm2782_vm3, %v5036_v3 }
 0x2d2   : > { %3253 = vst.msk [vmem:[#allocation5 + $0x4] sm:$0xf] %vm3251_vm1, %v3230_v4  ;;  %3252 = vst.msk [vmem:[#allocation5] sm:$0xf] %vm3251_vm1, %v3228_v35 }
 0x2d3   : > { %2946 = vst.msk [vmem:[#allocation5 + $0x8] sm:$0xf] %vm2943_vm8, %v2924_v54  ;;  %v2624_v3 = vpop.permute.xlu1 %2623 }
 0x2d4   : > { %3350 = vst.msk [vmem:[#allocation5 + $0x4] sm:$0xf] %vm3348_vm2, %v5143_v2  ;;  %3349 = vst.msk [vmem:[#allocation5] sm:$0xf] %vm3348_vm2, %v3325_v16  ;;  %v2722_v33 = vpop.permute.xlu0 %2721 }
 0x2d5   : > { %3043 = vst.msk [vmem:[#allocation5 + $0x8] sm:$0xf] %vm3040_vm14, %v5131_v61 }
 0x2d6   : > { %3093 = vst.msk [vmem:[#allocation5 + $0x8] sm:$0xf] %vm3090_vm15, %v5145_v56 }
 0x2d7   : > { %3254 = vst.msk [vmem:[#allocation5 + $0x8] sm:$0xf] %vm3251_vm1, %v3232_v31  ;;  %v3027_v44 = vpop.permute.xlu1 %3026 }
 0x2d8   : > { %3351 = vst.msk [vmem:[#allocation5 + $0x8] sm:$0xf] %vm3348_vm2, %v5148_v7  ;;  %v2932_v36 = vpop.permute.xlu0 %2931 }
 0x2d9   : > { %2641 = vst.msk [vmem:[#allocation5 + $0x1c] sm:$0xf] %vm2633_vm5, %v2624_v3 }
 0x2da   : > { %2741 = vst.msk [vmem:[#allocation5 + $0x1c] sm:$0xf] %vm2733_vm13, %v2724_v23 }
 0x2db   : > { %2790 = vst.msk [vmem:[#allocation5 + $0x1c] sm:$0xf] %vm2782_vm3, %v2773_v26  ;;  %v3959_v37 = vld [vmem:[#allocation5] sm:$0xff]   ;;  %v3238_v41 = vpop.permute.xlu1 %3237 }
 0x2dc   : > { %3908 = vmatprep.mubr.msk.bf16.mxu1 %vm3428_vm4, %v3959_v37  ;;  %v3333_v42 = vpop.permute.xlu0 %3332 }
 0x2df   : > { %v3234_v58 = vpop.permute.xlu1 %3233 }
 0x2e0   : > { %v2928_v29 = vpop.permute.xlu0 %2927  ;;  %3255 = vst.msk [vmem:[#allocation5 + $0xc] sm:$0xf] %vm3251_vm1, %v3234_v58 }
 0x2e1   : > { %2948 = vst.msk [vmem:[#allocation5 + $0x10] sm:$0xf] %vm2943_vm8, %v2928_v29 }
 0x2e2   : > { %3352 = vst.msk [vmem:[#allocation5 + $0xc] sm:$0xf] %vm3348_vm2, %v3331_v17 }
 0x2e3   : > { %3045 = vst.msk [vmem:[#allocation5 + $0x10] sm:$0xf] %vm3040_vm14, %v3025_v25  ;;  %v2620_v50 = vpop.permute.xlu1 %2619 }
 0x2e4   : > { %3095 = vst.msk [vmem:[#allocation5 + $0x10] sm:$0xf] %vm3090_vm15, %v3075_v63  ;;  %v3240_v21 = vpop.permute.xlu0 %3239 }
 0x2e5   : > { %2639 = vst.msk [vmem:[#allocation5 + $0x14] sm:$0xf] %vm2633_vm5, %v2620_v50 }
 0x2e6   : > { %2739 = vst.msk [vmem:[#allocation5 + $0x14] sm:$0xf] %vm2733_vm13, %v2720_v39 }
 0x2e7   : > { %2788 = vst.msk [vmem:[#allocation5 + $0x14] sm:$0xf] %vm2782_vm3, %v2769_v52  ;;  %v2934_v32 = vpop.permute.xlu1 %2933 }
 0x2e8   : > { %v2622_v11 = vpop.permute.xlu0 %2621  ;;  %2951 = vst.msk [vmem:[#allocation5 + $0x1c] sm:$0xf] %vm2943_vm8, %v2934_v32 }
 0x2e9   : > { %2640 = vst.msk [vmem:[#allocation5 + $0x18] sm:$0xf] %vm2633_vm5, %v2622_v11  ;;  %v3965_v62 = vld [vmem:[#allocation5 + $0x8] sm:$0xff]  }
 0x2ea   : > { %3048 = vst.msk [vmem:[#allocation5 + $0x1c] sm:$0xf] %vm3040_vm14, %v3031_v46  ;;  %3909 = vmatmul.mubr.msk.bf16.vlgmr.msra.gmra.mxu1 %vm3428_vm4, %v3965_v62 }
 0x2eb   : > { %2740 = vst.msk [vmem:[#allocation5 + $0x18] sm:$0xf] %vm2733_vm13, %v2722_v33  ;;  %v2930_v47 = vpop.permute.xlu1 %2929 }
 0x2ec   : > { %3098 = vst.msk [vmem:[#allocation5 + $0x1c] sm:$0xf] %vm3090_vm15, %v5091_v48  ;;  %v3236_v51 = vpop.permute.xlu0 %3235 }
 0x2ed   : > { %2789 = vst.msk [vmem:[#allocation5 + $0x18] sm:$0xf] %vm2782_vm3, %v5152_v60 }
 0x2ee   : > { %2950 = vst.msk [vmem:[#allocation5 + $0x18] sm:$0xf] %vm2943_vm8, %v2932_v36  ;;  %2949 = vst.msk [vmem:[#allocation5 + $0x14] sm:$0xf] %vm2943_vm8, %v2930_v47 }
 0x2ef   : > { %3259 = vst.msk [vmem:[#allocation5 + $0x1c] sm:$0xf] %vm3251_vm1, %v5101_v9  ;;  %3256 = vst.msk [vmem:[#allocation5 + $0x10] sm:$0xf] %vm3251_vm1, %v3236_v51  ;;  %v3335_v48 = vpop.permute.xlu1 %3334 }
 0x2f0   : > { %3047 = vst.msk [vmem:[#allocation5 + $0x18] sm:$0xf] %vm3040_vm14, %v5163_v18  ;;  %3046 = vst.msk [vmem:[#allocation5 + $0x14] sm:$0xf] %vm3040_vm14, %v3027_v44  ;;  %v3337_v9 = vpop.permute.xlu0 %3336 }
 0x2f1   : > { %3097 = vst.msk [vmem:[#allocation5 + $0x18] sm:$0xf] %vm3090_vm15, %v5165_v40  ;;  %3096 = vst.msk [vmem:[#allocation5 + $0x14] sm:$0xf] %vm3090_vm15, %v5150_v57 }
 0x2f2   : > { %3353 = vst.msk [vmem:[#allocation5 + $0x10] sm:$0xf] %vm3348_vm2, %v3333_v42 }
 0x2f3   : > { %3258 = vst.msk [vmem:[#allocation5 + $0x18] sm:$0xf] %vm3251_vm1, %v3240_v21  ;;  %3257 = vst.msk [vmem:[#allocation5 + $0x14] sm:$0xf] %vm3251_vm1, %v3238_v41  ;;  %v3339_v38 = vpop.permute.xlu1 %3338 }
 0x2f4   : > { %3354 = vst.msk [vmem:[#allocation5 + $0x14] sm:$0xf] %vm3348_vm2, %v3335_v48  ;;  %3355 = vst.msk [vmem:[#allocation5 + $0x18] sm:$0xf] %vm3348_vm2, %v3337_v9 }
 0x2f5   : > { %3356 = vst.msk [vmem:[#allocation5 + $0x1c] sm:$0xf] %vm3348_vm2, %v3339_v38 }
 0x2fb   : > { %v3968_v49 = vld [vmem:[#allocation5 + $0x10] sm:$0xff]  }
 0x2fc   : > { %3912 = vmatprep.mubr.msk.bf16.mxu1 %vm3428_vm4, %v3968_v49  ;;  %v3969_v61 = vld [vmem:[#allocation5 + $0x18] sm:$0xff]  }
 0x2fd   : > { %3913 = vmatmul.mubr.msk.bf16.gmra.mxu1 %vm3428_vm4, %v3969_v61 }
 0x31c   : > { %v3920_v1 = vpop.f32.mrf.mxu0 }
 0x31d   : > { %v3605_v2 = vadd.f32 %v3920_v1, %v3787_v55 }
 0x31e   : > { %v3596_v45 = vpop.f32.mrf.mxu0 }
 0x31f   : > { %v3597_v0 = vadd.f32 %v3787_v55, %v3596_v45 }
 0x320   : > { %v3921_v19 = vpop.f32.mrf.mxu0 }
 0x321   : > { %v3608_v24 = vadd.f32 %v3921_v19, %v3787_v55 }
 0x322   : > { %v3599_v14 = vpop.f32.mrf.mxu0 }
 0x323   : > { %v3600_v53 = vadd.f32 %v3787_v55, %v3599_v14 }
 0x32b   : > { %v3924_v16 = vpop.f32.mrf.mxu0 }
 0x32c   : > { %v3621_v13 = vadd.f32 %v3924_v16, %v3787_v55 }
 0x32d   : > { %v3612_v12 = vpop.f32.mrf.mxu0 }
 0x32e   : > { %v3613_v26 = vadd.f32 %v3787_v55, %v3612_v12 }
 0x32f   : > { %v3925_v15 = vpop.f32.mrf.mxu0 }
 0x330   : > { %v3624_v5 = vadd.f32 %v3925_v15, %v3787_v55 }
 0x331   : > { %v3615_v31 = vpop.f32.mrf.mxu0 }
 0x332   : > { %v3616_v63 = vadd.f32 %v3787_v55, %v3615_v31 }
 0x3aa   : > { %v3910_v56 = vpop.f32.mrf.mxu1 }
 0x3ab   : > { %v3488_v59 = vadd.f32 %v3910_v56, %v3773_v28 }
 0x3ac   : > { %v3479_v20 = vpop.f32.mrf.mxu1 }
 0x3ad   : > { %v3629_v6 = vadd.f32 %v3605_v2, %v3488_v59  ;;  %v3480_v7 = vadd.f32 %v3773_v28, %v3479_v20 }
 0x3ae   : > { %v3911_v8 = vpop.f32.mrf.mxu1 }
 0x3af   : > { %3638 = vst.msk [vmem:[%s5246_s28 + $0x10] sm:$0xff] %vm3635_vm6, %v3629_v6  ;;  %v3627_v57 = vadd.f32 %v3597_v0, %v3480_v7  ;;  %v3491_v60 = vadd.f32 %v3911_v8, %v3773_v28 }
 0x3b0   : > { %v3482_v43 = vpop.f32.mrf.mxu1 }
 0x3b1   : > { %3636 = vst.msk [vmem:[%s5246_s28] sm:$0xff] %vm3635_vm6, %v3627_v57  ;;  %v3630_v10 = vadd.f32 %v3608_v24, %v3491_v60  ;;  %v3483_v54 = vadd.f32 %v3773_v28, %v3482_v43 }
 0x3b3   : > { %3639 = vst.msk [vmem:[%s5246_s28 + $0x18] sm:$0xff] %vm3635_vm6, %v3630_v10  ;;  %v3628_v4 = vadd.f32 %v3600_v53, %v3483_v54 }
 0x3b5   : > { %3637 = vst.msk [vmem:[%s5246_s28 + $0x8] sm:$0xff] %vm3635_vm6, %v3628_v4 }
 0x3bd   : > { %v3914_v22 = vpop.f32.mrf.mxu1 }
 0x3be   : > { %v3504_v23 = vadd.f32 %v3914_v22, %v3773_v28 }
 0x3bf   : > { %v3495_v18 = vpop.f32.mrf.mxu1 }
 0x3c0   : > { %v3633_v40 = vadd.f32 %v3621_v13, %v3504_v23  ;;  %v3496_v30 = vadd.f32 %v3773_v28, %v3495_v18 }
 0x3c1   : > { %v3915_v17 = vpop.f32.mrf.mxu1 }
 0x3c2   : > { %3642 = vst.msk [vmem:[%s5246_s28 + $0x30] sm:$0xff] %vm3635_vm6, %v3633_v40  ;;  %v3631_v39 = vadd.f32 %v3613_v26, %v3496_v30  ;;  %v3507_v25 = vadd.f32 %v3915_v17, %v3773_v28 }
 0x3c3   : > { %v3498_v52 = vpop.f32.mrf.mxu1 }
 0x3c4   : > { %3640 = vst.msk [vmem:[%s5246_s28 + $0x20] sm:$0xff] %vm3635_vm6, %v3631_v39  ;;  %v3634_v27 = vadd.f32 %v3624_v5, %v3507_v25  ;;  %v3499_v34 = vadd.f32 %v3773_v28, %v3498_v52 }
 0x3c6   : > { %3643 = vst.msk [vmem:[%s5246_s28 + $0x38] sm:$0xff] %vm3635_vm6, %v3634_v27  ;;  %v3632_v46 = vadd.f32 %v3616_v63, %v3499_v34 }
 0x3c8   : > { %3641 = vst.msk [vmem:[%s5246_s28 + $0x28] sm:$0xff] %vm3635_vm6, %v3632_v46 }
 0x3c9 PF: > { %s21_s17 = sadd.s32 1, %s3978_s17  }
 0x3ca   : > { %p18_p5 = scmp.ge.s32.totalorder %s21_s17, 4  }
 0x3cc   :  { %20 = sbr.rel (!%p18_p5) target bundleno = 1 (0x1), region = 101 }

</bundles_post_ra>
